<compile_context>
chip_gen: v5e
topology: v5e:2x2
jax: 0.10.0
libtpu: 0.0.40
codegen_flags: <defaults>
</compile_context>

<pallas_src>
import jax
import jax.numpy as jnp
import numpy as np
from jax import lax
from jax.experimental import pallas as pl
from jax.experimental.pallas import tpu as pltpu

# ---------------- hyperparameters (small, consistent with the module) -------
N_CLASSES = 4          # num_classes (N)
K_SHOT = 1             # samples_per_class (K) -- see NOTE above
INPUT_SIZE = 124       # flattened image size (784 in the original homework)
MODEL_SIZE = 32        # LSTM-1 hidden size (128 in the original)
BATCH = 2              # B

D1 = N_CLASSES + INPUT_SIZE            # layer-1 input features (= 128, lane-aligned)
H1 = MODEL_SIZE                        # layer-1 hidden
H2 = N_CLASSES                         # layer-2 hidden (= num_classes)
T = (K_SHOT + 1) * N_CLASSES * BATCH   # total LSTM steps (= 16)

assert K_SHOT == 1, "torch.stack([y1, y2]) in the reference only works for K=1"
assert D1 % 128 == 0, "feature dim must be lane aligned (pad INPUT_SIZE otherwise)"


# ---------------- shared LSTM cell math (torch gate order: i, f, g, o) ------
def _lstm_cell_ref(gates, h, c, H):
    i = jax.nn.sigmoid(gates[:, 0 * H:1 * H])
    f = jax.nn.sigmoid(gates[:, 1 * H:2 * H])
    g = jnp.tanh(gates[:, 2 * H:3 * H])
    o = jax.nn.sigmoid(gates[:, 3 * H:4 * H])
    c_new = f * c + i * g
    h_new = o * jnp.tanh(c_new)
    return h_new, c_new


# ---------------- Pallas kernel ---------------------------------------------
def mann_kernel(x_ref, wih1_ref, whh1_ref, b1_ref, w2_ref, b2_ref, y_ref):
    # ---- hoist loop-invariant weight/bias loads out of the recurrence ------
    whh1 = whh1_ref[...]          # (H1, 4*H1)
    w2 = w2_ref[...]              # (H1+H2, 4*H2)  (stacked [wih2.T ; whh2.T])
    b2 = b2_ref[...]              # (1, 4*H2)

    # ---- hot path #1: layer-1 input projection for the whole sequence ------
    # Single MXU matmul; the (T, 4*H1) = (16, 128) result stays in registers.
    xg1 = (jnp.dot(x_ref[...], wih1_ref[...],
                   preferred_element_type=jnp.float32) + b1_ref[...])

    def cell(gates, c, H):
        # 2 full-width EUP transcendentals instead of 4 sliced ones; the
        # i/f/g/o selection is cheap lane slicing.
        sig = jax.nn.sigmoid(gates)
        tah = jnp.tanh(gates)
        i = sig[:, 0 * H:1 * H]
        f = sig[:, 1 * H:2 * H]
        g = tah[:, 2 * H:3 * H]
        o = sig[:, 3 * H:4 * H]
        c_new = f * c + i * g
        h_new = o * jnp.tanh(c_new)
        return h_new, c_new

    h1 = jnp.zeros((1, H1), jnp.float32)
    c1 = jnp.zeros((1, H1), jnp.float32)
    h2 = jnp.zeros((1, H2), jnp.float32)
    c2 = jnp.zeros((1, H2), jnp.float32)

    # ---- hot path #2: the 2-layer LSTM recurrence, fully unrolled (T=16) ---
    rows = []
    for t in range(T):                                   # static indices
        g1 = xg1[t:t + 1, :] + jnp.dot(h1, whh1,
                                       preferred_element_type=jnp.float32)
        h1, c1 = cell(g1, c1, H1)

        # fused layer-2 input+recurrent projection: one small matmul per step
        hcat = jnp.concatenate([h1, h2], axis=1)         # (1, H1+H2)
        g2 = jnp.dot(hcat, w2, preferred_element_type=jnp.float32) + b2
        h2, c2 = cell(g2, c2, H2)

        rows.append(h2)

    # Single store after the recurrence (no per-step masked stores).
    y_ref[...] = jnp.concatenate(rows, axis=0)           # (T, H2)


def _run_lstm_kernel(X, params):
    wih1_t = params["wih1"].T                             # [D1, 4*H1]
    whh1_t = params["whh1"].T                             # [H1, 4*H1]
    # Fused layer-2 weight: [h1 | h2] @ [[wih2.T], [whh2.T]]
    w2_stacked = jnp.concatenate(
        [params["wih2"].T, params["whh2"].T], axis=0)     # [H1+H2, 4*H2]
    b1 = params["b1"]                                     # [1, 4*H1]
    b2 = params["b2"]                                     # [1, 4*H2]

    return pl.pallas_call(
        mann_kernel,
        out_shape=jax.ShapeDtypeStruct((T, H2), jnp.float32),
        in_specs=[pl.BlockSpec(memory_space=pltpu.MemorySpace.VMEM)] * 6,
        out_specs=pl.BlockSpec(memory_space=pltpu.MemorySpace.VMEM),
    )(X, wih1_t, whh1_t, b1, w2_stacked, b2)


# ---------------- wrapper reproducing the torch forward ---------------------
def _build_sequence(input_images, input_labels):
    """Builds the time-major [T, D1] input slab in torch's iteration order:
       i_s outer, i_c middle, b inner; the query step (i_s == K) gets zeroed
       labels."""
    K, N = K_SHOT, N_CLASSES
    labels = input_labels.at[:, K, :, :].set(0.0)
    feat = jnp.concatenate([input_images, labels], axis=-1)   # [B, K+1, N, D1]
    X = jnp.transpose(feat, (1, 2, 0, 3)).reshape((K + 1) * N * BATCH, D1)
    return X


def _reassemble(Y):
    """Mirrors the torch stack/reshape logic exactly (valid for K_SHOT == 1)."""
    assert K_SHOT == 1
    K, N, B = K_SHOT, N_CLASSES, BATCH
    y1 = Y[: K * N * B].reshape(-1, K, N, N)
    y2 = Y[K * N * B:].reshape(-1, K, N, N)
    return jnp.stack([y1, y2]).reshape(-1, K + 1, N, N)


def mann_forward(params, input_images, input_labels):
    X = _build_sequence(input_images, input_labels)
    Y = _run_lstm_kernel(X, params)
    return _reassemble(Y)


# ---------------- pure-JAX reference (for a correctness check) --------------
def _ref_lstm_seq(X, p):
    def step(carry, x):
        h1, c1, h2, c2 = carry
        g1 = x[None, :] @ p["wih1"].T + p["b1"] + h1 @ p["whh1"].T
        h1, c1 = _lstm_cell_ref(g1, h1, c1, H1)
        g2 = h1 @ p["wih2"].T + p["b2"] + h2 @ p["whh2"].T
        h2, c2 = _lstm_cell_ref(g2, h2, c2, H2)
        return (h1, c1, h2, c2), h2[0]

    init = (jnp.zeros((1, H1), jnp.float32), jnp.zeros((1, H1), jnp.float32),
            jnp.zeros((1, H2), jnp.float32), jnp.zeros((1, H2), jnp.float32))
    _, ys = lax.scan(step, init, X)
    return ys


def ref_forward(params, input_images, input_labels):
    X = _build_sequence(input_images, input_labels)
    Y = _ref_lstm_seq(X, params)
    return _reassemble(Y)


# ---------------- deterministic parameter init ------------------------------
def init_params(key):
    k1, k2, k3, k4 = jax.random.split(key, 4)

    def xavier_uniform(k, shape):                 # torch nn.init.xavier_uniform_
        fan_out, fan_in = shape
        a = float(np.sqrt(6.0 / (fan_in + fan_out)))
        return jax.random.uniform(k, shape, jnp.float32, -a, a)

    def default_hh(k, shape, hidden):             # torch LSTM default init
        a = 1.0 / float(np.sqrt(hidden))
        return jax.random.uniform(k, shape, jnp.float32, -a, a)

    return {
        "wih1": xavier_uniform(k1, (4 * H1, D1)),
        "whh1": default_hh(k2, (4 * H1, H1), H1),
        "b1": jnp.zeros((1, 4 * H1), jnp.float32),   # b_ih_l0 + b_hh_l0, zeroed
        "wih2": xavier_uniform(k3, (4 * H2, H1)),
        "whh2": default_hh(k4, (4 * H2, H2), H2),
        "b2": jnp.zeros((1, 4 * H2), jnp.float32),
    }


# ---------------- main -------------------------------------------------------
if __name__ == "__main__":
    key = jax.random.PRNGKey(0)
    kp, ki, kl = jax.random.split(key, 3)

    params = init_params(kp)
    input_images = jax.random.normal(
        ki, (BATCH, K_SHOT + 1, N_CLASSES, INPUT_SIZE), jnp.float32)
    label_idx = jax.random.randint(
        kl, (BATCH, K_SHOT + 1, N_CLASSES), 0, N_CLASSES)
    input_labels = jax.nn.one_hot(label_idx, N_CLASSES, dtype=jnp.float32)

    out = jax.block_until_ready(mann_forward(params, input_images, input_labels))
    assert out.shape == (BATCH, K_SHOT + 1, N_CLASSES, N_CLASSES), out.shape

    ref = jax.block_until_ready(ref_forward(params, input_images, input_labels))
    np.testing.assert_allclose(np.asarray(out), np.asarray(ref),
                               atol=2e-3, rtol=2e-3)

    print("KERNEL_OK")
</pallas_src>

<mosaic_0001>
module attributes {stable_mosaic.version = 11 : i64} {
  func.func @mann_kernel(%arg0: memref<16x128xf32, #tpu.memory_space<vmem>>, %arg1: memref<128x128xf32, #tpu.memory_space<vmem>>, %arg2: memref<32x128xf32, #tpu.memory_space<vmem>>, %arg3: memref<1x128xf32, #tpu.memory_space<vmem>>, %arg4: memref<36x16xf32, #tpu.memory_space<vmem>>, %arg5: memref<1x16xf32, #tpu.memory_space<vmem>>, %arg6: memref<16x4xf32, #tpu.memory_space<vmem>>) attributes {dimension_semantics = [], scalar_prefetch = 0 : i64, scratch_operands = 0 : i64, tpu.core_type = #tpu.core_type<tc>} {
    %c0 = arith.constant 0 : index
    %c0_0 = arith.constant 0 : index
    %0 = vector.load %arg2[%c0, %c0_0] : memref<32x128xf32, #tpu.memory_space<vmem>>, vector<32x128xf32>
    %c0_1 = arith.constant 0 : index
    %c0_2 = arith.constant 0 : index
    %1 = vector.load %arg4[%c0_1, %c0_2] : memref<36x16xf32, #tpu.memory_space<vmem>>, vector<36x16xf32>
    %c0_3 = arith.constant 0 : index
    %c0_4 = arith.constant 0 : index
    %2 = vector.load %arg5[%c0_3, %c0_4] : memref<1x16xf32, #tpu.memory_space<vmem>>, vector<1x16xf32>
    %c0_5 = arith.constant 0 : index
    %c0_6 = arith.constant 0 : index
    %3 = vector.load %arg0[%c0_5, %c0_6] : memref<16x128xf32, #tpu.memory_space<vmem>>, vector<16x128xf32>
    %c0_7 = arith.constant 0 : index
    %c0_8 = arith.constant 0 : index
    %4 = vector.load %arg1[%c0_7, %c0_8] : memref<128x128xf32, #tpu.memory_space<vmem>>, vector<128x128xf32>
    %cst = arith.constant dense<0.000000e+00> : vector<16x128xf32>
    %5 = tpu.matmul %3, %4, %cst {dimension_numbers = #tpu.dot_dimension_numbers<[1], [0], [0], [1], [0, 0, 1, 1], [], []>} : vector<16x128xf32>, vector<128x128xf32>, vector<16x128xf32> -> vector<16x128xf32>
    %c0_9 = arith.constant 0 : index
    %c0_10 = arith.constant 0 : index
    %6 = vector.load %arg3[%c0_9, %c0_10] : memref<1x128xf32, #tpu.memory_space<vmem>>, vector<1x128xf32>
    %7 = vector.broadcast %6 : vector<1x128xf32> to vector<16x128xf32>
    %8 = arith.addf %5, %7 : vector<16x128xf32>
    %cst_11 = arith.constant 0.000000e+00 : f32
    %9 = vector.broadcast %cst_11 : f32 to vector<1x32xf32>
    %cst_12 = arith.constant 0.000000e+00 : f32
    %10 = vector.broadcast %cst_12 : f32 to vector<1x32xf32>
    %cst_13 = arith.constant 0.000000e+00 : f32
    %11 = vector.broadcast %cst_13 : f32 to vector<1x4xf32>
    %cst_14 = arith.constant 0.000000e+00 : f32
    %12 = vector.broadcast %cst_14 : f32 to vector<1x4xf32>
    %13 = vector.extract_strided_slice %8 {offsets = [0, 0], sizes = [1, 128], strides = [1, 1]} : vector<16x128xf32> to vector<1x128xf32>
    %cst_15 = arith.constant dense<0.000000e+00> : vector<1x128xf32>
    %14 = tpu.matmul %9, %0, %cst_15 {dimension_numbers = #tpu.dot_dimension_numbers<[1], [0], [0], [1], [0, 0, 1, 1], [], []>} : vector<1x32xf32>, vector<32x128xf32>, vector<1x128xf32> -> vector<1x128xf32>
    %15 = arith.addf %13, %14 : vector<1x128xf32>
    %16 = arith.negf %15 : vector<1x128xf32>
    %17 = math.exp %16 : vector<1x128xf32>
    %cst_16 = arith.constant 1.000000e+00 : f32
    %18 = vector.broadcast %cst_16 : f32 to vector<1x128xf32>
    %19 = arith.addf %18, %17 : vector<1x128xf32>
    %20 = arith.divf %18, %19 : vector<1x128xf32>
    %21 = math.tanh %15 : vector<1x128xf32>
    %22 = vector.extract_strided_slice %20 {offsets = [0, 0], sizes = [1, 32], strides = [1, 1]} : vector<1x128xf32> to vector<1x32xf32>
    %23 = vector.extract_strided_slice %20 {offsets = [0, 32], sizes = [1, 32], strides = [1, 1]} : vector<1x128xf32> to vector<1x32xf32>
    %24 = vector.extract_strided_slice %21 {offsets = [0, 64], sizes = [1, 32], strides = [1, 1]} : vector<1x128xf32> to vector<1x32xf32>
    %25 = vector.extract_strided_slice %20 {offsets = [0, 96], sizes = [1, 32], strides = [1, 1]} : vector<1x128xf32> to vector<1x32xf32>
    %26 = arith.mulf %23, %10 : vector<1x32xf32>
    %27 = arith.mulf %22, %24 : vector<1x32xf32>
    %28 = arith.addf %26, %27 : vector<1x32xf32>
    %29 = math.tanh %28 : vector<1x32xf32>
    %30 = arith.mulf %25, %29 : vector<1x32xf32>
    %31 = tpu.concatenate %30, %11 in 1 : vector<1x32xf32>, vector<1x4xf32> -> vector<1x36xf32>
    %cst_17 = arith.constant dense<0.000000e+00> : vector<1x16xf32>
    %32 = tpu.matmul %31, %1, %cst_17 {dimension_numbers = #tpu.dot_dimension_numbers<[1], [0], [0], [1], [0, 0, 1, 1], [], []>} : vector<1x36xf32>, vector<36x16xf32>, vector<1x16xf32> -> vector<1x16xf32>
    %33 = arith.addf %32, %2 : vector<1x16xf32>
    %34 = arith.negf %33 : vector<1x16xf32>
    %35 = math.exp %34 : vector<1x16xf32>
    %cst_18 = arith.constant 1.000000e+00 : f32
    %36 = vector.broadcast %cst_18 : f32 to vector<1x16xf32>
    %37 = arith.addf %36, %35 : vector<1x16xf32>
    %38 = arith.divf %36, %37 : vector<1x16xf32>
    %39 = math.tanh %33 : vector<1x16xf32>
    %40 = vector.extract_strided_slice %38 {offsets = [0, 0], sizes = [1, 4], strides = [1, 1]} : vector<1x16xf32> to vector<1x4xf32>
    %41 = vector.extract_strided_slice %38 {offsets = [0, 4], sizes = [1, 4], strides = [1, 1]} : vector<1x16xf32> to vector<1x4xf32>
    %42 = vector.extract_strided_slice %39 {offsets = [0, 8], sizes = [1, 4], strides = [1, 1]} : vector<1x16xf32> to vector<1x4xf32>
    %43 = vector.extract_strided_slice %38 {offsets = [0, 12], sizes = [1, 4], strides = [1, 1]} : vector<1x16xf32> to vector<1x4xf32>
    %44 = arith.mulf %41, %12 : vector<1x4xf32>
    %45 = arith.mulf %40, %42 : vector<1x4xf32>
    %46 = arith.addf %44, %45 : vector<1x4xf32>
    %47 = math.tanh %46 : vector<1x4xf32>
    %48 = arith.mulf %43, %47 : vector<1x4xf32>
    %49 = vector.extract_strided_slice %8 {offsets = [1, 0], sizes = [1, 128], strides = [1, 1]} : vector<16x128xf32> to vector<1x128xf32>
    %cst_19 = arith.constant dense<0.000000e+00> : vector<1x128xf32>
    %50 = tpu.matmul %30, %0, %cst_19 {dimension_numbers = #tpu.dot_dimension_numbers<[1], [0], [0], [1], [0, 0, 1, 1], [], []>} : vector<1x32xf32>, vector<32x128xf32>, vector<1x128xf32> -> vector<1x128xf32>
    %51 = arith.addf %49, %50 : vector<1x128xf32>
    %52 = arith.negf %51 : vector<1x128xf32>
    %53 = math.exp %52 : vector<1x128xf32>
    %cst_20 = arith.constant 1.000000e+00 : f32
    %54 = vector.broadcast %cst_20 : f32 to vector<1x128xf32>
    %55 = arith.addf %54, %53 : vector<1x128xf32>
    %56 = arith.divf %54, %55 : vector<1x128xf32>
    %57 = math.tanh %51 : vector<1x128xf32>
    %58 = vector.extract_strided_slice %56 {offsets = [0, 0], sizes = [1, 32], strides = [1, 1]} : vector<1x128xf32> to vector<1x32xf32>
    %59 = vector.extract_strided_slice %56 {offsets = [0, 32], sizes = [1, 32], strides = [1, 1]} : vector<1x128xf32> to vector<1x32xf32>
    %60 = vector.extract_strided_slice %57 {offsets = [0, 64], sizes = [1, 32], strides = [1, 1]} : vector<1x128xf32> to vector<1x32xf32>
    %61 = vector.extract_strided_slice %56 {offsets = [0, 96], sizes = [1, 32], strides = [1, 1]} : vector<1x128xf32> to vector<1x32xf32>
    %62 = arith.mulf %59, %28 : vector<1x32xf32>
    %63 = arith.mulf %58, %60 : vector<1x32xf32>
    %64 = arith.addf %62, %63 : vector<1x32xf32>
    %65 = math.tanh %64 : vector<1x32xf32>
    %66 = arith.mulf %61, %65 : vector<1x32xf32>
    %67 = tpu.concatenate %66, %48 in 1 : vector<1x32xf32>, vector<1x4xf32> -> vector<1x36xf32>
    %cst_21 = arith.constant dense<0.000000e+00> : vector<1x16xf32>
    %68 = tpu.matmul %67, %1, %cst_21 {dimension_numbers = #tpu.dot_dimension_numbers<[1], [0], [0], [1], [0, 0, 1, 1], [], []>} : vector<1x36xf32>, vector<36x16xf32>, vector<1x16xf32> -> vector<1x16xf32>
    %69 = arith.addf %68, %2 : vector<1x16xf32>
    %70 = arith.negf %69 : vector<1x16xf32>
    %71 = math.exp %70 : vector<1x16xf32>
    %cst_22 = arith.constant 1.000000e+00 : f32
    %72 = vector.broadcast %cst_22 : f32 to vector<1x16xf32>
    %73 = arith.addf %72, %71 : vector<1x16xf32>
    %74 = arith.divf %72, %73 : vector<1x16xf32>
    %75 = math.tanh %69 : vector<1x16xf32>
    %76 = vector.extract_strided_slice %74 {offsets = [0, 0], sizes = [1, 4], strides = [1, 1]} : vector<1x16xf32> to vector<1x4xf32>
    %77 = vector.extract_strided_slice %74 {offsets = [0, 4], sizes = [1, 4], strides = [1, 1]} : vector<1x16xf32> to vector<1x4xf32>
    %78 = vector.extract_strided_slice %75 {offsets = [0, 8], sizes = [1, 4], strides = [1, 1]} : vector<1x16xf32> to vector<1x4xf32>
    %79 = vector.extract_strided_slice %74 {offsets = [0, 12], sizes = [1, 4], strides = [1, 1]} : vector<1x16xf32> to vector<1x4xf32>
    %80 = arith.mulf %77, %46 : vector<1x4xf32>
    %81 = arith.mulf %76, %78 : vector<1x4xf32>
    %82 = arith.addf %80, %81 : vector<1x4xf32>
    %83 = math.tanh %82 : vector<1x4xf32>
    %84 = arith.mulf %79, %83 : vector<1x4xf32>
    %85 = vector.extract_strided_slice %8 {offsets = [2, 0], sizes = [1, 128], strides = [1, 1]} : vector<16x128xf32> to vector<1x128xf32>
    %cst_23 = arith.constant dense<0.000000e+00> : vector<1x128xf32>
    %86 = tpu.matmul %66, %0, %cst_23 {dimension_numbers = #tpu.dot_dimension_numbers<[1], [0], [0], [1], [0, 0, 1, 1], [], []>} : vector<1x32xf32>, vector<32x128xf32>, vector<1x128xf32> -> vector<1x128xf32>
    %87 = arith.addf %85, %86 : vector<1x128xf32>
    %88 = arith.negf %87 : vector<1x128xf32>
    %89 = math.exp %88 : vector<1x128xf32>
    %cst_24 = arith.constant 1.000000e+00 : f32
    %90 = vector.broadcast %cst_24 : f32 to vector<1x128xf32>
    %91 = arith.addf %90, %89 : vector<1x128xf32>
    %92 = arith.divf %90, %91 : vector<1x128xf32>
    %93 = math.tanh %87 : vector<1x128xf32>
    %94 = vector.extract_strided_slice %92 {offsets = [0, 0], sizes = [1, 32], strides = [1, 1]} : vector<1x128xf32> to vector<1x32xf32>
    %95 = vector.extract_strided_slice %92 {offsets = [0, 32], sizes = [1, 32], strides = [1, 1]} : vector<1x128xf32> to vector<1x32xf32>
    %96 = vector.extract_strided_slice %93 {offsets = [0, 64], sizes = [1, 32], strides = [1, 1]} : vector<1x128xf32> to vector<1x32xf32>
    %97 = vector.extract_strided_slice %92 {offsets = [0, 96], sizes = [1, 32], strides = [1, 1]} : vector<1x128xf32> to vector<1x32xf32>
    %98 = arith.mulf %95, %64 : vector<1x32xf32>
    %99 = arith.mulf %94, %96 : vector<1x32xf32>
    %100 = arith.addf %98, %99 : vector<1x32xf32>
    %101 = math.tanh %100 : vector<1x32xf32>
    %102 = arith.mulf %97, %101 : vector<1x32xf32>
    %103 = tpu.concatenate %102, %84 in 1 : vector<1x32xf32>, vector<1x4xf32> -> vector<1x36xf32>
    %cst_25 = arith.constant dense<0.000000e+00> : vector<1x16xf32>
    %104 = tpu.matmul %103, %1, %cst_25 {dimension_numbers = #tpu.dot_dimension_numbers<[1], [0], [0], [1], [0, 0, 1, 1], [], []>} : vector<1x36xf32>, vector<36x16xf32>, vector<1x16xf32> -> vector<1x16xf32>
    %105 = arith.addf %104, %2 : vector<1x16xf32>
    %106 = arith.negf %105 : vector<1x16xf32>
    %107 = math.exp %106 : vector<1x16xf32>
    %cst_26 = arith.constant 1.000000e+00 : f32
    %108 = vector.broadcast %cst_26 : f32 to vector<1x16xf32>
    %109 = arith.addf %108, %107 : vector<1x16xf32>
    %110 = arith.divf %108, %109 : vector<1x16xf32>
    %111 = math.tanh %105 : vector<1x16xf32>
    %112 = vector.extract_strided_slice %110 {offsets = [0, 0], sizes = [1, 4], strides = [1, 1]} : vector<1x16xf32> to vector<1x4xf32>
    %113 = vector.extract_strided_slice %110 {offsets = [0, 4], sizes = [1, 4], strides = [1, 1]} : vector<1x16xf32> to vector<1x4xf32>
    %114 = vector.extract_strided_slice %111 {offsets = [0, 8], sizes = [1, 4], strides = [1, 1]} : vector<1x16xf32> to vector<1x4xf32>
    %115 = vector.extract_strided_slice %110 {offsets = [0, 12], sizes = [1, 4], strides = [1, 1]} : vector<1x16xf32> to vector<1x4xf32>
    %116 = arith.mulf %113, %82 : vector<1x4xf32>
    %117 = arith.mulf %112, %114 : vector<1x4xf32>
    %118 = arith.addf %116, %117 : vector<1x4xf32>
    %119 = math.tanh %118 : vector<1x4xf32>
    %120 = arith.mulf %115, %119 : vector<1x4xf32>
    %121 = vector.extract_strided_slice %8 {offsets = [3, 0], sizes = [1, 128], strides = [1, 1]} : vector<16x128xf32> to vector<1x128xf32>
    %cst_27 = arith.constant dense<0.000000e+00> : vector<1x128xf32>
    %122 = tpu.matmul %102, %0, %cst_27 {dimension_numbers = #tpu.dot_dimension_numbers<[1], [0], [0], [1], [0, 0, 1, 1], [], []>} : vector<1x32xf32>, vector<32x128xf32>, vector<1x128xf32> -> vector<1x128xf32>
    %123 = arith.addf %121, %122 : vector<1x128xf32>
    %124 = arith.negf %123 : vector<1x128xf32>
    %125 = math.exp %124 : vector<1x128xf32>
    %cst_28 = arith.constant 1.000000e+00 : f32
    %126 = vector.broadcast %cst_28 : f32 to vector<1x128xf32>
    %127 = arith.addf %126, %125 : vector<1x128xf32>
    %128 = arith.divf %126, %127 : vector<1x128xf32>
    %129 = math.tanh %123 : vector<1x128xf32>
    %130 = vector.extract_strided_slice %128 {offsets = [0, 0], sizes = [1, 32], strides = [1, 1]} : vector<1x128xf32> to vector<1x32xf32>
    %131 = vector.extract_strided_slice %128 {offsets = [0, 32], sizes = [1, 32], strides = [1, 1]} : vector<1x128xf32> to vector<1x32xf32>
    %132 = vector.extract_strided_slice %129 {offsets = [0, 64], sizes = [1, 32], strides = [1, 1]} : vector<1x128xf32> to vector<1x32xf32>
    %133 = vector.extract_strided_slice %128 {offsets = [0, 96], sizes = [1, 32], strides = [1, 1]} : vector<1x128xf32> to vector<1x32xf32>
    %134 = arith.mulf %131, %100 : vector<1x32xf32>
    %135 = arith.mulf %130, %132 : vector<1x32xf32>
    %136 = arith.addf %134, %135 : vector<1x32xf32>
    %137 = math.tanh %136 : vector<1x32xf32>
    %138 = arith.mulf %133, %137 : vector<1x32xf32>
    %139 = tpu.concatenate %138, %120 in 1 : vector<1x32xf32>, vector<1x4xf32> -> vector<1x36xf32>
    %cst_29 = arith.constant dense<0.000000e+00> : vector<1x16xf32>
    %140 = tpu.matmul %139, %1, %cst_29 {dimension_numbers = #tpu.dot_dimension_numbers<[1], [0], [0], [1], [0, 0, 1, 1], [], []>} : vector<1x36xf32>, vector<36x16xf32>, vector<1x16xf32> -> vector<1x16xf32>
    %141 = arith.addf %140, %2 : vector<1x16xf32>
    %142 = arith.negf %141 : vector<1x16xf32>
    %143 = math.exp %142 : vector<1x16xf32>
    %cst_30 = arith.constant 1.000000e+00 : f32
    %144 = vector.broadcast %cst_30 : f32 to vector<1x16xf32>
    %145 = arith.addf %144, %143 : vector<1x16xf32>
    %146 = arith.divf %144, %145 : vector<1x16xf32>
    %147 = math.tanh %141 : vector<1x16xf32>
    %148 = vector.extract_strided_slice %146 {offsets = [0, 0], sizes = [1, 4], strides = [1, 1]} : vector<1x16xf32> to vector<1x4xf32>
    %149 = vector.extract_strided_slice %146 {offsets = [0, 4], sizes = [1, 4], strides = [1, 1]} : vector<1x16xf32> to vector<1x4xf32>
    %150 = vector.extract_strided_slice %147 {offsets = [0, 8], sizes = [1, 4], strides = [1, 1]} : vector<1x16xf32> to vector<1x4xf32>
    %151 = vector.extract_strided_slice %146 {offsets = [0, 12], sizes = [1, 4], strides = [1, 1]} : vector<1x16xf32> to vector<1x4xf32>
    %152 = arith.mulf %149, %118 : vector<1x4xf32>
    %153 = arith.mulf %148, %150 : vector<1x4xf32>
    %154 = arith.addf %152, %153 : vector<1x4xf32>
    %155 = math.tanh %154 : vector<1x4xf32>
    %156 = arith.mulf %151, %155 : vector<1x4xf32>
    %157 = vector.extract_strided_slice %8 {offsets = [4, 0], sizes = [1, 128], strides = [1, 1]} : vector<16x128xf32> to vector<1x128xf32>
    %cst_31 = arith.constant dense<0.000000e+00> : vector<1x128xf32>
    %158 = tpu.matmul %138, %0, %cst_31 {dimension_numbers = #tpu.dot_dimension_numbers<[1], [0], [0], [1], [0, 0, 1, 1], [], []>} : vector<1x32xf32>, vector<32x128xf32>, vector<1x128xf32> -> vector<1x128xf32>
    %159 = arith.addf %157, %158 : vector<1x128xf32>
    %160 = arith.negf %159 : vector<1x128xf32>
    %161 = math.exp %160 : vector<1x128xf32>
    %cst_32 = arith.constant 1.000000e+00 : f32
    %162 = vector.broadcast %cst_32 : f32 to vector<1x128xf32>
    %163 = arith.addf %162, %161 : vector<1x128xf32>
    %164 = arith.divf %162, %163 : vector<1x128xf32>
    %165 = math.tanh %159 : vector<1x128xf32>
    %166 = vector.extract_strided_slice %164 {offsets = [0, 0], sizes = [1, 32], strides = [1, 1]} : vector<1x128xf32> to vector<1x32xf32>
    %167 = vector.extract_strided_slice %164 {offsets = [0, 32], sizes = [1, 32], strides = [1, 1]} : vector<1x128xf32> to vector<1x32xf32>
    %168 = vector.extract_strided_slice %165 {offsets = [0, 64], sizes = [1, 32], strides = [1, 1]} : vector<1x128xf32> to vector<1x32xf32>
    %169 = vector.extract_strided_slice %164 {offsets = [0, 96], sizes = [1, 32], strides = [1, 1]} : vector<1x128xf32> to vector<1x32xf32>
    %170 = arith.mulf %167, %136 : vector<1x32xf32>
    %171 = arith.mulf %166, %168 : vector<1x32xf32>
    %172 = arith.addf %170, %171 : vector<1x32xf32>
    %173 = math.tanh %172 : vector<1x32xf32>
    %174 = arith.mulf %169, %173 : vector<1x32xf32>
    %175 = tpu.concatenate %174, %156 in 1 : vector<1x32xf32>, vector<1x4xf32> -> vector<1x36xf32>
    %cst_33 = arith.constant dense<0.000000e+00> : vector<1x16xf32>
    %176 = tpu.matmul %175, %1, %cst_33 {dimension_numbers = #tpu.dot_dimension_numbers<[1], [0], [0], [1], [0, 0, 1, 1], [], []>} : vector<1x36xf32>, vector<36x16xf32>, vector<1x16xf32> -> vector<1x16xf32>
    %177 = arith.addf %176, %2 : vector<1x16xf32>
    %178 = arith.negf %177 : vector<1x16xf32>
    %179 = math.exp %178 : vector<1x16xf32>
    %cst_34 = arith.constant 1.000000e+00 : f32
    %180 = vector.broadcast %cst_34 : f32 to vector<1x16xf32>
    %181 = arith.addf %180, %179 : vector<1x16xf32>
    %182 = arith.divf %180, %181 : vector<1x16xf32>
    %183 = math.tanh %177 : vector<1x16xf32>
    %184 = vector.extract_strided_slice %182 {offsets = [0, 0], sizes = [1, 4], strides = [1, 1]} : vector<1x16xf32> to vector<1x4xf32>
    %185 = vector.extract_strided_slice %182 {offsets = [0, 4], sizes = [1, 4], strides = [1, 1]} : vector<1x16xf32> to vector<1x4xf32>
    %186 = vector.extract_strided_slice %183 {offsets = [0, 8], sizes = [1, 4], strides = [1, 1]} : vector<1x16xf32> to vector<1x4xf32>
    %187 = vector.extract_strided_slice %182 {offsets = [0, 12], sizes = [1, 4], strides = [1, 1]} : vector<1x16xf32> to vector<1x4xf32>
    %188 = arith.mulf %185, %154 : vector<1x4xf32>
    %189 = arith.mulf %184, %186 : vector<1x4xf32>
    %190 = arith.addf %188, %189 : vector<1x4xf32>
    %191 = math.tanh %190 : vector<1x4xf32>
    %192 = arith.mulf %187, %191 : vector<1x4xf32>
    %193 = vector.extract_strided_slice %8 {offsets = [5, 0], sizes = [1, 128], strides = [1, 1]} : vector<16x128xf32> to vector<1x128xf32>
    %cst_35 = arith.constant dense<0.000000e+00> : vector<1x128xf32>
    %194 = tpu.matmul %174, %0, %cst_35 {dimension_numbers = #tpu.dot_dimension_numbers<[1], [0], [0], [1], [0, 0, 1, 1], [], []>} : vector<1x32xf32>, vector<32x128xf32>, vector<1x128xf32> -> vector<1x128xf32>
    %195 = arith.addf %193, %194 : vector<1x128xf32>
    %196 = arith.negf %195 : vector<1x128xf32>
    %197 = math.exp %196 : vector<1x128xf32>
    %cst_36 = arith.constant 1.000000e+00 : f32
    %198 = vector.broadcast %cst_36 : f32 to vector<1x128xf32>
    %199 = arith.addf %198, %197 : vector<1x128xf32>
    %200 = arith.divf %198, %199 : vector<1x128xf32>
    %201 = math.tanh %195 : vector<1x128xf32>
    %202 = vector.extract_strided_slice %200 {offsets = [0, 0], sizes = [1, 32], strides = [1, 1]} : vector<1x128xf32> to vector<1x32xf32>
    %203 = vector.extract_strided_slice %200 {offsets = [0, 32], sizes = [1, 32], strides = [1, 1]} : vector<1x128xf32> to vector<1x32xf32>
    %204 = vector.extract_strided_slice %201 {offsets = [0, 64], sizes = [1, 32], strides = [1, 1]} : vector<1x128xf32> to vector<1x32xf32>
    %205 = vector.extract_strided_slice %200 {offsets = [0, 96], sizes = [1, 32], strides = [1, 1]} : vector<1x128xf32> to vector<1x32xf32>
    %206 = arith.mulf %203, %172 : vector<1x32xf32>
    %207 = arith.mulf %202, %204 : vector<1x32xf32>
    %208 = arith.addf %206, %207 : vector<1x32xf32>
    %209 = math.tanh %208 : vector<1x32xf32>
    %210 = arith.mulf %205, %209 : vector<1x32xf32>
    %211 = tpu.concatenate %210, %192 in 1 : vector<1x32xf32>, vector<1x4xf32> -> vector<1x36xf32>
    %cst_37 = arith.constant dense<0.000000e+00> : vector<1x16xf32>
    %212 = tpu.matmul %211, %1, %cst_37 {dimension_numbers = #tpu.dot_dimension_numbers<[1], [0], [0], [1], [0, 0, 1, 1], [], []>} : vector<1x36xf32>, vector<36x16xf32>, vector<1x16xf32> -> vector<1x16xf32>
    %213 = arith.addf %212, %2 : vector<1x16xf32>
    %214 = arith.negf %213 : vector<1x16xf32>
    %215 = math.exp %214 : vector<1x16xf32>
    %cst_38 = arith.constant 1.000000e+00 : f32
    %216 = vector.broadcast %cst_38 : f32 to vector<1x16xf32>
    %217 = arith.addf %216, %215 : vector<1x16xf32>
    %218 = arith.divf %216, %217 : vector<1x16xf32>
    %219 = math.tanh %213 : vector<1x16xf32>
    %220 = vector.extract_strided_slice %218 {offsets = [0, 0], sizes = [1, 4], strides = [1, 1]} : vector<1x16xf32> to vector<1x4xf32>
    %221 = vector.extract_strided_slice %218 {offsets = [0, 4], sizes = [1, 4], strides = [1, 1]} : vector<1x16xf32> to vector<1x4xf32>
    %222 = vector.extract_strided_slice %219 {offsets = [0, 8], sizes = [1, 4], strides = [1, 1]} : vector<1x16xf32> to vector<1x4xf32>
    %223 = vector.extract_strided_slice %218 {offsets = [0, 12], sizes = [1, 4], strides = [1, 1]} : vector<1x16xf32> to vector<1x4xf32>
    %224 = arith.mulf %221, %190 : vector<1x4xf32>
    %225 = arith.mulf %220, %222 : vector<1x4xf32>
    %226 = arith.addf %224, %225 : vector<1x4xf32>
    %227 = math.tanh %226 : vector<1x4xf32>
    %228 = arith.mulf %223, %227 : vector<1x4xf32>
    %229 = vector.extract_strided_slice %8 {offsets = [6, 0], sizes = [1, 128], strides = [1, 1]} : vector<16x128xf32> to vector<1x128xf32>
    %cst_39 = arith.constant dense<0.000000e+00> : vector<1x128xf32>
    %230 = tpu.matmul %210, %0, %cst_39 {dimension_numbers = #tpu.dot_dimension_numbers<[1], [0], [0], [1], [0, 0, 1, 1], [], []>} : vector<1x32xf32>, vector<32x128xf32>, vector<1x128xf32> -> vector<1x128xf32>
    %231 = arith.addf %229, %230 : vector<1x128xf32>
    %232 = arith.negf %231 : vector<1x128xf32>
    %233 = math.exp %232 : vector<1x128xf32>
    %cst_40 = arith.constant 1.000000e+00 : f32
    %234 = vector.broadcast %cst_40 : f32 to vector<1x128xf32>
    %235 = arith.addf %234, %233 : vector<1x128xf32>
    %236 = arith.divf %234, %235 : vector<1x128xf32>
    %237 = math.tanh %231 : vector<1x128xf32>
    %238 = vector.extract_strided_slice %236 {offsets = [0, 0], sizes = [1, 32], strides = [1, 1]} : vector<1x128xf32> to vector<1x32xf32>
    %239 = vector.extract_strided_slice %236 {offsets = [0, 32], sizes = [1, 32], strides = [1, 1]} : vector<1x128xf32> to vector<1x32xf32>
    %240 = vector.extract_strided_slice %237 {offsets = [0, 64], sizes = [1, 32], strides = [1, 1]} : vector<1x128xf32> to vector<1x32xf32>
    %241 = vector.extract_strided_slice %236 {offsets = [0, 96], sizes = [1, 32], strides = [1, 1]} : vector<1x128xf32> to vector<1x32xf32>
    %242 = arith.mulf %239, %208 : vector<1x32xf32>
    %243 = arith.mulf %238, %240 : vector<1x32xf32>
    %244 = arith.addf %242, %243 : vector<1x32xf32>
    %245 = math.tanh %244 : vector<1x32xf32>
    %246 = arith.mulf %241, %245 : vector<1x32xf32>
    %247 = tpu.concatenate %246, %228 in 1 : vector<1x32xf32>, vector<1x4xf32> -> vector<1x36xf32>
    %cst_41 = arith.constant dense<0.000000e+00> : vector<1x16xf32>
    %248 = tpu.matmul %247, %1, %cst_41 {dimension_numbers = #tpu.dot_dimension_numbers<[1], [0], [0], [1], [0, 0, 1, 1], [], []>} : vector<1x36xf32>, vector<36x16xf32>, vector<1x16xf32> -> vector<1x16xf32>
    %249 = arith.addf %248, %2 : vector<1x16xf32>
    %250 = arith.negf %249 : vector<1x16xf32>
    %251 = math.exp %250 : vector<1x16xf32>
    %cst_42 = arith.constant 1.000000e+00 : f32
    %252 = vector.broadcast %cst_42 : f32 to vector<1x16xf32>
    %253 = arith.addf %252, %251 : vector<1x16xf32>
    %254 = arith.divf %252, %253 : vector<1x16xf32>
    %255 = math.tanh %249 : vector<1x16xf32>
    %256 = vector.extract_strided_slice %254 {offsets = [0, 0], sizes = [1, 4], strides = [1, 1]} : vector<1x16xf32> to vector<1x4xf32>
    %257 = vector.extract_strided_slice %254 {offsets = [0, 4], sizes = [1, 4], strides = [1, 1]} : vector<1x16xf32> to vector<1x4xf32>
    %258 = vector.extract_strided_slice %255 {offsets = [0, 8], sizes = [1, 4], strides = [1, 1]} : vector<1x16xf32> to vector<1x4xf32>
    %259 = vector.extract_strided_slice %254 {offsets = [0, 12], sizes = [1, 4], strides = [1, 1]} : vector<1x16xf32> to vector<1x4xf32>
    %260 = arith.mulf %257, %226 : vector<1x4xf32>
    %261 = arith.mulf %256, %258 : vector<1x4xf32>
    %262 = arith.addf %260, %261 : vector<1x4xf32>
    %263 = math.tanh %262 : vector<1x4xf32>
    %264 = arith.mulf %259, %263 : vector<1x4xf32>
    %265 = vector.extract_strided_slice %8 {offsets = [7, 0], sizes = [1, 128], strides = [1, 1]} : vector<16x128xf32> to vector<1x128xf32>
    %cst_43 = arith.constant dense<0.000000e+00> : vector<1x128xf32>
    %266 = tpu.matmul %246, %0, %cst_43 {dimension_numbers = #tpu.dot_dimension_numbers<[1], [0], [0], [1], [0, 0, 1, 1], [], []>} : vector<1x32xf32>, vector<32x128xf32>, vector<1x128xf32> -> vector<1x128xf32>
    %267 = arith.addf %265, %266 : vector<1x128xf32>
    %268 = arith.negf %267 : vector<1x128xf32>
    %269 = math.exp %268 : vector<1x128xf32>
    %cst_44 = arith.constant 1.000000e+00 : f32
    %270 = vector.broadcast %cst_44 : f32 to vector<1x128xf32>
    %271 = arith.addf %270, %269 : vector<1x128xf32>
    %272 = arith.divf %270, %271 : vector<1x128xf32>
    %273 = math.tanh %267 : vector<1x128xf32>
    %274 = vector.extract_strided_slice %272 {offsets = [0, 0], sizes = [1, 32], strides = [1, 1]} : vector<1x128xf32> to vector<1x32xf32>
    %275 = vector.extract_strided_slice %272 {offsets = [0, 32], sizes = [1, 32], strides = [1, 1]} : vector<1x128xf32> to vector<1x32xf32>
    %276 = vector.extract_strided_slice %273 {offsets = [0, 64], sizes = [1, 32], strides = [1, 1]} : vector<1x128xf32> to vector<1x32xf32>
    %277 = vector.extract_strided_slice %272 {offsets = [0, 96], sizes = [1, 32], strides = [1, 1]} : vector<1x128xf32> to vector<1x32xf32>
    %278 = arith.mulf %275, %244 : vector<1x32xf32>
    %279 = arith.mulf %274, %276 : vector<1x32xf32>
    %280 = arith.addf %278, %279 : vector<1x32xf32>
    %281 = math.tanh %280 : vector<1x32xf32>
    %282 = arith.mulf %277, %281 : vector<1x32xf32>
    %283 = tpu.concatenate %282, %264 in 1 : vector<1x32xf32>, vector<1x4xf32> -> vector<1x36xf32>
    %cst_45 = arith.constant dense<0.000000e+00> : vector<1x16xf32>
    %284 = tpu.matmul %283, %1, %cst_45 {dimension_numbers = #tpu.dot_dimension_numbers<[1], [0], [0], [1], [0, 0, 1, 1], [], []>} : vector<1x36xf32>, vector<36x16xf32>, vector<1x16xf32> -> vector<1x16xf32>
    %285 = arith.addf %284, %2 : vector<1x16xf32>
    %286 = arith.negf %285 : vector<1x16xf32>
    %287 = math.exp %286 : vector<1x16xf32>
    %cst_46 = arith.constant 1.000000e+00 : f32
    %288 = vector.broadcast %cst_46 : f32 to vector<1x16xf32>
    %289 = arith.addf %288, %287 : vector<1x16xf32>
    %290 = arith.divf %288, %289 : vector<1x16xf32>
    %291 = math.tanh %285 : vector<1x16xf32>
    %292 = vector.extract_strided_slice %290 {offsets = [0, 0], sizes = [1, 4], strides = [1, 1]} : vector<1x16xf32> to vector<1x4xf32>
    %293 = vector.extract_strided_slice %290 {offsets = [0, 4], sizes = [1, 4], strides = [1, 1]} : vector<1x16xf32> to vector<1x4xf32>
    %294 = vector.extract_strided_slice %291 {offsets = [0, 8], sizes = [1, 4], strides = [1, 1]} : vector<1x16xf32> to vector<1x4xf32>
    %295 = vector.extract_strided_slice %290 {offsets = [0, 12], sizes = [1, 4], strides = [1, 1]} : vector<1x16xf32> to vector<1x4xf32>
    %296 = arith.mulf %293, %262 : vector<1x4xf32>
    %297 = arith.mulf %292, %294 : vector<1x4xf32>
    %298 = arith.addf %296, %297 : vector<1x4xf32>
    %299 = math.tanh %298 : vector<1x4xf32>
    %300 = arith.mulf %295, %299 : vector<1x4xf32>
    %301 = vector.extract_strided_slice %8 {offsets = [8, 0], sizes = [1, 128], strides = [1, 1]} : vector<16x128xf32> to vector<1x128xf32>
    %cst_47 = arith.constant dense<0.000000e+00> : vector<1x128xf32>
    %302 = tpu.matmul %282, %0, %cst_47 {dimension_numbers = #tpu.dot_dimension_numbers<[1], [0], [0], [1], [0, 0, 1, 1], [], []>} : vector<1x32xf32>, vector<32x128xf32>, vector<1x128xf32> -> vector<1x128xf32>
    %303 = arith.addf %301, %302 : vector<1x128xf32>
    %304 = arith.negf %303 : vector<1x128xf32>
    %305 = math.exp %304 : vector<1x128xf32>
    %cst_48 = arith.constant 1.000000e+00 : f32
    %306 = vector.broadcast %cst_48 : f32 to vector<1x128xf32>
    %307 = arith.addf %306, %305 : vector<1x128xf32>
    %308 = arith.divf %306, %307 : vector<1x128xf32>
    %309 = math.tanh %303 : vector<1x128xf32>
    %310 = vector.extract_strided_slice %308 {offsets = [0, 0], sizes = [1, 32], strides = [1, 1]} : vector<1x128xf32> to vector<1x32xf32>
    %311 = vector.extract_strided_slice %308 {offsets = [0, 32], sizes = [1, 32], strides = [1, 1]} : vector<1x128xf32> to vector<1x32xf32>
    %312 = vector.extract_strided_slice %309 {offsets = [0, 64], sizes = [1, 32], strides = [1, 1]} : vector<1x128xf32> to vector<1x32xf32>
    %313 = vector.extract_strided_slice %308 {offsets = [0, 96], sizes = [1, 32], strides = [1, 1]} : vector<1x128xf32> to vector<1x32xf32>
    %314 = arith.mulf %311, %280 : vector<1x32xf32>
    %315 = arith.mulf %310, %312 : vector<1x32xf32>
    %316 = arith.addf %314, %315 : vector<1x32xf32>
    %317 = math.tanh %316 : vector<1x32xf32>
    %318 = arith.mulf %313, %317 : vector<1x32xf32>
    %319 = tpu.concatenate %318, %300 in 1 : vector<1x32xf32>, vector<1x4xf32> -> vector<1x36xf32>
    %cst_49 = arith.constant dense<0.000000e+00> : vector<1x16xf32>
    %320 = tpu.matmul %319, %1, %cst_49 {dimension_numbers = #tpu.dot_dimension_numbers<[1], [0], [0], [1], [0, 0, 1, 1], [], []>} : vector<1x36xf32>, vector<36x16xf32>, vector<1x16xf32> -> vector<1x16xf32>
    %321 = arith.addf %320, %2 : vector<1x16xf32>
    %322 = arith.negf %321 : vector<1x16xf32>
    %323 = math.exp %322 : vector<1x16xf32>
    %cst_50 = arith.constant 1.000000e+00 : f32
    %324 = vector.broadcast %cst_50 : f32 to vector<1x16xf32>
    %325 = arith.addf %324, %323 : vector<1x16xf32>
    %326 = arith.divf %324, %325 : vector<1x16xf32>
    %327 = math.tanh %321 : vector<1x16xf32>
    %328 = vector.extract_strided_slice %326 {offsets = [0, 0], sizes = [1, 4], strides = [1, 1]} : vector<1x16xf32> to vector<1x4xf32>
    %329 = vector.extract_strided_slice %326 {offsets = [0, 4], sizes = [1, 4], strides = [1, 1]} : vector<1x16xf32> to vector<1x4xf32>
    %330 = vector.extract_strided_slice %327 {offsets = [0, 8], sizes = [1, 4], strides = [1, 1]} : vector<1x16xf32> to vector<1x4xf32>
    %331 = vector.extract_strided_slice %326 {offsets = [0, 12], sizes = [1, 4], strides = [1, 1]} : vector<1x16xf32> to vector<1x4xf32>
    %332 = arith.mulf %329, %298 : vector<1x4xf32>
    %333 = arith.mulf %328, %330 : vector<1x4xf32>
    %334 = arith.addf %332, %333 : vector<1x4xf32>
    %335 = math.tanh %334 : vector<1x4xf32>
    %336 = arith.mulf %331, %335 : vector<1x4xf32>
    %337 = vector.extract_strided_slice %8 {offsets = [9, 0], sizes = [1, 128], strides = [1, 1]} : vector<16x128xf32> to vector<1x128xf32>
    %cst_51 = arith.constant dense<0.000000e+00> : vector<1x128xf32>
    %338 = tpu.matmul %318, %0, %cst_51 {dimension_numbers = #tpu.dot_dimension_numbers<[1], [0], [0], [1], [0, 0, 1, 1], [], []>} : vector<1x32xf32>, vector<32x128xf32>, vector<1x128xf32> -> vector<1x128xf32>
    %339 = arith.addf %337, %338 : vector<1x128xf32>
    %340 = arith.negf %339 : vector<1x128xf32>
    %341 = math.exp %340 : vector<1x128xf32>
    %cst_52 = arith.constant 1.000000e+00 : f32
    %342 = vector.broadcast %cst_52 : f32 to vector<1x128xf32>
    %343 = arith.addf %342, %341 : vector<1x128xf32>
    %344 = arith.divf %342, %343 : vector<1x128xf32>
    %345 = math.tanh %339 : vector<1x128xf32>
    %346 = vector.extract_strided_slice %344 {offsets = [0, 0], sizes = [1, 32], strides = [1, 1]} : vector<1x128xf32> to vector<1x32xf32>
    %347 = vector.extract_strided_slice %344 {offsets = [0, 32], sizes = [1, 32], strides = [1, 1]} : vector<1x128xf32> to vector<1x32xf32>
    %348 = vector.extract_strided_slice %345 {offsets = [0, 64], sizes = [1, 32], strides = [1, 1]} : vector<1x128xf32> to vector<1x32xf32>
    %349 = vector.extract_strided_slice %344 {offsets = [0, 96], sizes = [1, 32], strides = [1, 1]} : vector<1x128xf32> to vector<1x32xf32>
    %350 = arith.mulf %347, %316 : vector<1x32xf32>
    %351 = arith.mulf %346, %348 : vector<1x32xf32>
    %352 = arith.addf %350, %351 : vector<1x32xf32>
    %353 = math.tanh %352 : vector<1x32xf32>
    %354 = arith.mulf %349, %353 : vector<1x32xf32>
    %355 = tpu.concatenate %354, %336 in 1 : vector<1x32xf32>, vector<1x4xf32> -> vector<1x36xf32>
    %cst_53 = arith.constant dense<0.000000e+00> : vector<1x16xf32>
    %356 = tpu.matmul %355, %1, %cst_53 {dimension_numbers = #tpu.dot_dimension_numbers<[1], [0], [0], [1], [0, 0, 1, 1], [], []>} : vector<1x36xf32>, vector<36x16xf32>, vector<1x16xf32> -> vector<1x16xf32>
    %357 = arith.addf %356, %2 : vector<1x16xf32>
    %358 = arith.negf %357 : vector<1x16xf32>
    %359 = math.exp %358 : vector<1x16xf32>
    %cst_54 = arith.constant 1.000000e+00 : f32
    %360 = vector.broadcast %cst_54 : f32 to vector<1x16xf32>
    %361 = arith.addf %360, %359 : vector<1x16xf32>
    %362 = arith.divf %360, %361 : vector<1x16xf32>
    %363 = math.tanh %357 : vector<1x16xf32>
    %364 = vector.extract_strided_slice %362 {offsets = [0, 0], sizes = [1, 4], strides = [1, 1]} : vector<1x16xf32> to vector<1x4xf32>
    %365 = vector.extract_strided_slice %362 {offsets = [0, 4], sizes = [1, 4], strides = [1, 1]} : vector<1x16xf32> to vector<1x4xf32>
    %366 = vector.extract_strided_slice %363 {offsets = [0, 8], sizes = [1, 4], strides = [1, 1]} : vector<1x16xf32> to vector<1x4xf32>
    %367 = vector.extract_strided_slice %362 {offsets = [0, 12], sizes = [1, 4], strides = [1, 1]} : vector<1x16xf32> to vector<1x4xf32>
    %368 = arith.mulf %365, %334 : vector<1x4xf32>
    %369 = arith.mulf %364, %366 : vector<1x4xf32>
    %370 = arith.addf %368, %369 : vector<1x4xf32>
    %371 = math.tanh %370 : vector<1x4xf32>
    %372 = arith.mulf %367, %371 : vector<1x4xf32>
    %373 = vector.extract_strided_slice %8 {offsets = [10, 0], sizes = [1, 128], strides = [1, 1]} : vector<16x128xf32> to vector<1x128xf32>
    %cst_55 = arith.constant dense<0.000000e+00> : vector<1x128xf32>
    %374 = tpu.matmul %354, %0, %cst_55 {dimension_numbers = #tpu.dot_dimension_numbers<[1], [0], [0], [1], [0, 0, 1, 1], [], []>} : vector<1x32xf32>, vector<32x128xf32>, vector<1x128xf32> -> vector<1x128xf32>
    %375 = arith.addf %373, %374 : vector<1x128xf32>
    %376 = arith.negf %375 : vector<1x128xf32>
    %377 = math.exp %376 : vector<1x128xf32>
    %cst_56 = arith.constant 1.000000e+00 : f32
    %378 = vector.broadcast %cst_56 : f32 to vector<1x128xf32>
    %379 = arith.addf %378, %377 : vector<1x128xf32>
    %380 = arith.divf %378, %379 : vector<1x128xf32>
    %381 = math.tanh %375 : vector<1x128xf32>
    %382 = vector.extract_strided_slice %380 {offsets = [0, 0], sizes = [1, 32], strides = [1, 1]} : vector<1x128xf32> to vector<1x32xf32>
    %383 = vector.extract_strided_slice %380 {offsets = [0, 32], sizes = [1, 32], strides = [1, 1]} : vector<1x128xf32> to vector<1x32xf32>
    %384 = vector.extract_strided_slice %381 {offsets = [0, 64], sizes = [1, 32], strides = [1, 1]} : vector<1x128xf32> to vector<1x32xf32>
    %385 = vector.extract_strided_slice %380 {offsets = [0, 96], sizes = [1, 32], strides = [1, 1]} : vector<1x128xf32> to vector<1x32xf32>
    %386 = arith.mulf %383, %352 : vector<1x32xf32>
    %387 = arith.mulf %382, %384 : vector<1x32xf32>
    %388 = arith.addf %386, %387 : vector<1x32xf32>
    %389 = math.tanh %388 : vector<1x32xf32>
    %390 = arith.mulf %385, %389 : vector<1x32xf32>
    %391 = tpu.concatenate %390, %372 in 1 : vector<1x32xf32>, vector<1x4xf32> -> vector<1x36xf32>
    %cst_57 = arith.constant dense<0.000000e+00> : vector<1x16xf32>
    %392 = tpu.matmul %391, %1, %cst_57 {dimension_numbers = #tpu.dot_dimension_numbers<[1], [0], [0], [1], [0, 0, 1, 1], [], []>} : vector<1x36xf32>, vector<36x16xf32>, vector<1x16xf32> -> vector<1x16xf32>
    %393 = arith.addf %392, %2 : vector<1x16xf32>
    %394 = arith.negf %393 : vector<1x16xf32>
    %395 = math.exp %394 : vector<1x16xf32>
    %cst_58 = arith.constant 1.000000e+00 : f32
    %396 = vector.broadcast %cst_58 : f32 to vector<1x16xf32>
    %397 = arith.addf %396, %395 : vector<1x16xf32>
    %398 = arith.divf %396, %397 : vector<1x16xf32>
    %399 = math.tanh %393 : vector<1x16xf32>
    %400 = vector.extract_strided_slice %398 {offsets = [0, 0], sizes = [1, 4], strides = [1, 1]} : vector<1x16xf32> to vector<1x4xf32>
    %401 = vector.extract_strided_slice %398 {offsets = [0, 4], sizes = [1, 4], strides = [1, 1]} : vector<1x16xf32> to vector<1x4xf32>
    %402 = vector.extract_strided_slice %399 {offsets = [0, 8], sizes = [1, 4], strides = [1, 1]} : vector<1x16xf32> to vector<1x4xf32>
    %403 = vector.extract_strided_slice %398 {offsets = [0, 12], sizes = [1, 4], strides = [1, 1]} : vector<1x16xf32> to vector<1x4xf32>
    %404 = arith.mulf %401, %370 : vector<1x4xf32>
    %405 = arith.mulf %400, %402 : vector<1x4xf32>
    %406 = arith.addf %404, %405 : vector<1x4xf32>
    %407 = math.tanh %406 : vector<1x4xf32>
    %408 = arith.mulf %403, %407 : vector<1x4xf32>
    %409 = vector.extract_strided_slice %8 {offsets = [11, 0], sizes = [1, 128], strides = [1, 1]} : vector<16x128xf32> to vector<1x128xf32>
    %cst_59 = arith.constant dense<0.000000e+00> : vector<1x128xf32>
    %410 = tpu.matmul %390, %0, %cst_59 {dimension_numbers = #tpu.dot_dimension_numbers<[1], [0], [0], [1], [0, 0, 1, 1], [], []>} : vector<1x32xf32>, vector<32x128xf32>, vector<1x128xf32> -> vector<1x128xf32>
    %411 = arith.addf %409, %410 : vector<1x128xf32>
    %412 = arith.negf %411 : vector<1x128xf32>
    %413 = math.exp %412 : vector<1x128xf32>
    %cst_60 = arith.constant 1.000000e+00 : f32
    %414 = vector.broadcast %cst_60 : f32 to vector<1x128xf32>
    %415 = arith.addf %414, %413 : vector<1x128xf32>
    %416 = arith.divf %414, %415 : vector<1x128xf32>
    %417 = math.tanh %411 : vector<1x128xf32>
    %418 = vector.extract_strided_slice %416 {offsets = [0, 0], sizes = [1, 32], strides = [1, 1]} : vector<1x128xf32> to vector<1x32xf32>
    %419 = vector.extract_strided_slice %416 {offsets = [0, 32], sizes = [1, 32], strides = [1, 1]} : vector<1x128xf32> to vector<1x32xf32>
    %420 = vector.extract_strided_slice %417 {offsets = [0, 64], sizes = [1, 32], strides = [1, 1]} : vector<1x128xf32> to vector<1x32xf32>
    %421 = vector.extract_strided_slice %416 {offsets = [0, 96], sizes = [1, 32], strides = [1, 1]} : vector<1x128xf32> to vector<1x32xf32>
    %422 = arith.mulf %419, %388 : vector<1x32xf32>
    %423 = arith.mulf %418, %420 : vector<1x32xf32>
    %424 = arith.addf %422, %423 : vector<1x32xf32>
    %425 = math.tanh %424 : vector<1x32xf32>
    %426 = arith.mulf %421, %425 : vector<1x32xf32>
    %427 = tpu.concatenate %426, %408 in 1 : vector<1x32xf32>, vector<1x4xf32> -> vector<1x36xf32>
    %cst_61 = arith.constant dense<0.000000e+00> : vector<1x16xf32>
    %428 = tpu.matmul %427, %1, %cst_61 {dimension_numbers = #tpu.dot_dimension_numbers<[1], [0], [0], [1], [0, 0, 1, 1], [], []>} : vector<1x36xf32>, vector<36x16xf32>, vector<1x16xf32> -> vector<1x16xf32>
    %429 = arith.addf %428, %2 : vector<1x16xf32>
    %430 = arith.negf %429 : vector<1x16xf32>
    %431 = math.exp %430 : vector<1x16xf32>
    %cst_62 = arith.constant 1.000000e+00 : f32
    %432 = vector.broadcast %cst_62 : f32 to vector<1x16xf32>
    %433 = arith.addf %432, %431 : vector<1x16xf32>
    %434 = arith.divf %432, %433 : vector<1x16xf32>
    %435 = math.tanh %429 : vector<1x16xf32>
    %436 = vector.extract_strided_slice %434 {offsets = [0, 0], sizes = [1, 4], strides = [1, 1]} : vector<1x16xf32> to vector<1x4xf32>
    %437 = vector.extract_strided_slice %434 {offsets = [0, 4], sizes = [1, 4], strides = [1, 1]} : vector<1x16xf32> to vector<1x4xf32>
    %438 = vector.extract_strided_slice %435 {offsets = [0, 8], sizes = [1, 4], strides = [1, 1]} : vector<1x16xf32> to vector<1x4xf32>
    %439 = vector.extract_strided_slice %434 {offsets = [0, 12], sizes = [1, 4], strides = [1, 1]} : vector<1x16xf32> to vector<1x4xf32>
    %440 = arith.mulf %437, %406 : vector<1x4xf32>
    %441 = arith.mulf %436, %438 : vector<1x4xf32>
    %442 = arith.addf %440, %441 : vector<1x4xf32>
    %443 = math.tanh %442 : vector<1x4xf32>
    %444 = arith.mulf %439, %443 : vector<1x4xf32>
    %445 = vector.extract_strided_slice %8 {offsets = [12, 0], sizes = [1, 128], strides = [1, 1]} : vector<16x128xf32> to vector<1x128xf32>
    %cst_63 = arith.constant dense<0.000000e+00> : vector<1x128xf32>
    %446 = tpu.matmul %426, %0, %cst_63 {dimension_numbers = #tpu.dot_dimension_numbers<[1], [0], [0], [1], [0, 0, 1, 1], [], []>} : vector<1x32xf32>, vector<32x128xf32>, vector<1x128xf32> -> vector<1x128xf32>
    %447 = arith.addf %445, %446 : vector<1x128xf32>
    %448 = arith.negf %447 : vector<1x128xf32>
    %449 = math.exp %448 : vector<1x128xf32>
    %cst_64 = arith.constant 1.000000e+00 : f32
    %450 = vector.broadcast %cst_64 : f32 to vector<1x128xf32>
    %451 = arith.addf %450, %449 : vector<1x128xf32>
    %452 = arith.divf %450, %451 : vector<1x128xf32>
    %453 = math.tanh %447 : vector<1x128xf32>
    %454 = vector.extract_strided_slice %452 {offsets = [0, 0], sizes = [1, 32], strides = [1, 1]} : vector<1x128xf32> to vector<1x32xf32>
    %455 = vector.extract_strided_slice %452 {offsets = [0, 32], sizes = [1, 32], strides = [1, 1]} : vector<1x128xf32> to vector<1x32xf32>
    %456 = vector.extract_strided_slice %453 {offsets = [0, 64], sizes = [1, 32], strides = [1, 1]} : vector<1x128xf32> to vector<1x32xf32>
    %457 = vector.extract_strided_slice %452 {offsets = [0, 96], sizes = [1, 32], strides = [1, 1]} : vector<1x128xf32> to vector<1x32xf32>
    %458 = arith.mulf %455, %424 : vector<1x32xf32>
    %459 = arith.mulf %454, %456 : vector<1x32xf32>
    %460 = arith.addf %458, %459 : vector<1x32xf32>
    %461 = math.tanh %460 : vector<1x32xf32>
    %462 = arith.mulf %457, %461 : vector<1x32xf32>
    %463 = tpu.concatenate %462, %444 in 1 : vector<1x32xf32>, vector<1x4xf32> -> vector<1x36xf32>
    %cst_65 = arith.constant dense<0.000000e+00> : vector<1x16xf32>
    %464 = tpu.matmul %463, %1, %cst_65 {dimension_numbers = #tpu.dot_dimension_numbers<[1], [0], [0], [1], [0, 0, 1, 1], [], []>} : vector<1x36xf32>, vector<36x16xf32>, vector<1x16xf32> -> vector<1x16xf32>
    %465 = arith.addf %464, %2 : vector<1x16xf32>
    %466 = arith.negf %465 : vector<1x16xf32>
    %467 = math.exp %466 : vector<1x16xf32>
    %cst_66 = arith.constant 1.000000e+00 : f32
    %468 = vector.broadcast %cst_66 : f32 to vector<1x16xf32>
    %469 = arith.addf %468, %467 : vector<1x16xf32>
    %470 = arith.divf %468, %469 : vector<1x16xf32>
    %471 = math.tanh %465 : vector<1x16xf32>
    %472 = vector.extract_strided_slice %470 {offsets = [0, 0], sizes = [1, 4], strides = [1, 1]} : vector<1x16xf32> to vector<1x4xf32>
    %473 = vector.extract_strided_slice %470 {offsets = [0, 4], sizes = [1, 4], strides = [1, 1]} : vector<1x16xf32> to vector<1x4xf32>
    %474 = vector.extract_strided_slice %471 {offsets = [0, 8], sizes = [1, 4], strides = [1, 1]} : vector<1x16xf32> to vector<1x4xf32>
    %475 = vector.extract_strided_slice %470 {offsets = [0, 12], sizes = [1, 4], strides = [1, 1]} : vector<1x16xf32> to vector<1x4xf32>
    %476 = arith.mulf %473, %442 : vector<1x4xf32>
    %477 = arith.mulf %472, %474 : vector<1x4xf32>
    %478 = arith.addf %476, %477 : vector<1x4xf32>
    %479 = math.tanh %478 : vector<1x4xf32>
    %480 = arith.mulf %475, %479 : vector<1x4xf32>
    %481 = vector.extract_strided_slice %8 {offsets = [13, 0], sizes = [1, 128], strides = [1, 1]} : vector<16x128xf32> to vector<1x128xf32>
    %cst_67 = arith.constant dense<0.000000e+00> : vector<1x128xf32>
    %482 = tpu.matmul %462, %0, %cst_67 {dimension_numbers = #tpu.dot_dimension_numbers<[1], [0], [0], [1], [0, 0, 1, 1], [], []>} : vector<1x32xf32>, vector<32x128xf32>, vector<1x128xf32> -> vector<1x128xf32>
    %483 = arith.addf %481, %482 : vector<1x128xf32>
    %484 = arith.negf %483 : vector<1x128xf32>
    %485 = math.exp %484 : vector<1x128xf32>
    %cst_68 = arith.constant 1.000000e+00 : f32
    %486 = vector.broadcast %cst_68 : f32 to vector<1x128xf32>
    %487 = arith.addf %486, %485 : vector<1x128xf32>
    %488 = arith.divf %486, %487 : vector<1x128xf32>
    %489 = math.tanh %483 : vector<1x128xf32>
    %490 = vector.extract_strided_slice %488 {offsets = [0, 0], sizes = [1, 32], strides = [1, 1]} : vector<1x128xf32> to vector<1x32xf32>
    %491 = vector.extract_strided_slice %488 {offsets = [0, 32], sizes = [1, 32], strides = [1, 1]} : vector<1x128xf32> to vector<1x32xf32>
    %492 = vector.extract_strided_slice %489 {offsets = [0, 64], sizes = [1, 32], strides = [1, 1]} : vector<1x128xf32> to vector<1x32xf32>
    %493 = vector.extract_strided_slice %488 {offsets = [0, 96], sizes = [1, 32], strides = [1, 1]} : vector<1x128xf32> to vector<1x32xf32>
    %494 = arith.mulf %491, %460 : vector<1x32xf32>
    %495 = arith.mulf %490, %492 : vector<1x32xf32>
    %496 = arith.addf %494, %495 : vector<1x32xf32>
    %497 = math.tanh %496 : vector<1x32xf32>
    %498 = arith.mulf %493, %497 : vector<1x32xf32>
    %499 = tpu.concatenate %498, %480 in 1 : vector<1x32xf32>, vector<1x4xf32> -> vector<1x36xf32>
    %cst_69 = arith.constant dense<0.000000e+00> : vector<1x16xf32>
    %500 = tpu.matmul %499, %1, %cst_69 {dimension_numbers = #tpu.dot_dimension_numbers<[1], [0], [0], [1], [0, 0, 1, 1], [], []>} : vector<1x36xf32>, vector<36x16xf32>, vector<1x16xf32> -> vector<1x16xf32>
    %501 = arith.addf %500, %2 : vector<1x16xf32>
    %502 = arith.negf %501 : vector<1x16xf32>
    %503 = math.exp %502 : vector<1x16xf32>
    %cst_70 = arith.constant 1.000000e+00 : f32
    %504 = vector.broadcast %cst_70 : f32 to vector<1x16xf32>
    %505 = arith.addf %504, %503 : vector<1x16xf32>
    %506 = arith.divf %504, %505 : vector<1x16xf32>
    %507 = math.tanh %501 : vector<1x16xf32>
    %508 = vector.extract_strided_slice %506 {offsets = [0, 0], sizes = [1, 4], strides = [1, 1]} : vector<1x16xf32> to vector<1x4xf32>
    %509 = vector.extract_strided_slice %506 {offsets = [0, 4], sizes = [1, 4], strides = [1, 1]} : vector<1x16xf32> to vector<1x4xf32>
    %510 = vector.extract_strided_slice %507 {offsets = [0, 8], sizes = [1, 4], strides = [1, 1]} : vector<1x16xf32> to vector<1x4xf32>
    %511 = vector.extract_strided_slice %506 {offsets = [0, 12], sizes = [1, 4], strides = [1, 1]} : vector<1x16xf32> to vector<1x4xf32>
    %512 = arith.mulf %509, %478 : vector<1x4xf32>
    %513 = arith.mulf %508, %510 : vector<1x4xf32>
    %514 = arith.addf %512, %513 : vector<1x4xf32>
    %515 = math.tanh %514 : vector<1x4xf32>
    %516 = arith.mulf %511, %515 : vector<1x4xf32>
    %517 = vector.extract_strided_slice %8 {offsets = [14, 0], sizes = [1, 128], strides = [1, 1]} : vector<16x128xf32> to vector<1x128xf32>
    %cst_71 = arith.constant dense<0.000000e+00> : vector<1x128xf32>
    %518 = tpu.matmul %498, %0, %cst_71 {dimension_numbers = #tpu.dot_dimension_numbers<[1], [0], [0], [1], [0, 0, 1, 1], [], []>} : vector<1x32xf32>, vector<32x128xf32>, vector<1x128xf32> -> vector<1x128xf32>
    %519 = arith.addf %517, %518 : vector<1x128xf32>
    %520 = arith.negf %519 : vector<1x128xf32>
    %521 = math.exp %520 : vector<1x128xf32>
    %cst_72 = arith.constant 1.000000e+00 : f32
    %522 = vector.broadcast %cst_72 : f32 to vector<1x128xf32>
    %523 = arith.addf %522, %521 : vector<1x128xf32>
    %524 = arith.divf %522, %523 : vector<1x128xf32>
    %525 = math.tanh %519 : vector<1x128xf32>
    %526 = vector.extract_strided_slice %524 {offsets = [0, 0], sizes = [1, 32], strides = [1, 1]} : vector<1x128xf32> to vector<1x32xf32>
    %527 = vector.extract_strided_slice %524 {offsets = [0, 32], sizes = [1, 32], strides = [1, 1]} : vector<1x128xf32> to vector<1x32xf32>
    %528 = vector.extract_strided_slice %525 {offsets = [0, 64], sizes = [1, 32], strides = [1, 1]} : vector<1x128xf32> to vector<1x32xf32>
    %529 = vector.extract_strided_slice %524 {offsets = [0, 96], sizes = [1, 32], strides = [1, 1]} : vector<1x128xf32> to vector<1x32xf32>
    %530 = arith.mulf %527, %496 : vector<1x32xf32>
    %531 = arith.mulf %526, %528 : vector<1x32xf32>
    %532 = arith.addf %530, %531 : vector<1x32xf32>
    %533 = math.tanh %532 : vector<1x32xf32>
    %534 = arith.mulf %529, %533 : vector<1x32xf32>
    %535 = tpu.concatenate %534, %516 in 1 : vector<1x32xf32>, vector<1x4xf32> -> vector<1x36xf32>
    %cst_73 = arith.constant dense<0.000000e+00> : vector<1x16xf32>
    %536 = tpu.matmul %535, %1, %cst_73 {dimension_numbers = #tpu.dot_dimension_numbers<[1], [0], [0], [1], [0, 0, 1, 1], [], []>} : vector<1x36xf32>, vector<36x16xf32>, vector<1x16xf32> -> vector<1x16xf32>
    %537 = arith.addf %536, %2 : vector<1x16xf32>
    %538 = arith.negf %537 : vector<1x16xf32>
    %539 = math.exp %538 : vector<1x16xf32>
    %cst_74 = arith.constant 1.000000e+00 : f32
    %540 = vector.broadcast %cst_74 : f32 to vector<1x16xf32>
    %541 = arith.addf %540, %539 : vector<1x16xf32>
    %542 = arith.divf %540, %541 : vector<1x16xf32>
    %543 = math.tanh %537 : vector<1x16xf32>
    %544 = vector.extract_strided_slice %542 {offsets = [0, 0], sizes = [1, 4], strides = [1, 1]} : vector<1x16xf32> to vector<1x4xf32>
    %545 = vector.extract_strided_slice %542 {offsets = [0, 4], sizes = [1, 4], strides = [1, 1]} : vector<1x16xf32> to vector<1x4xf32>
    %546 = vector.extract_strided_slice %543 {offsets = [0, 8], sizes = [1, 4], strides = [1, 1]} : vector<1x16xf32> to vector<1x4xf32>
    %547 = vector.extract_strided_slice %542 {offsets = [0, 12], sizes = [1, 4], strides = [1, 1]} : vector<1x16xf32> to vector<1x4xf32>
    %548 = arith.mulf %545, %514 : vector<1x4xf32>
    %549 = arith.mulf %544, %546 : vector<1x4xf32>
    %550 = arith.addf %548, %549 : vector<1x4xf32>
    %551 = math.tanh %550 : vector<1x4xf32>
    %552 = arith.mulf %547, %551 : vector<1x4xf32>
    %553 = vector.extract_strided_slice %8 {offsets = [15, 0], sizes = [1, 128], strides = [1, 1]} : vector<16x128xf32> to vector<1x128xf32>
    %cst_75 = arith.constant dense<0.000000e+00> : vector<1x128xf32>
    %554 = tpu.matmul %534, %0, %cst_75 {dimension_numbers = #tpu.dot_dimension_numbers<[1], [0], [0], [1], [0, 0, 1, 1], [], []>} : vector<1x32xf32>, vector<32x128xf32>, vector<1x128xf32> -> vector<1x128xf32>
    %555 = arith.addf %553, %554 : vector<1x128xf32>
    %556 = arith.negf %555 : vector<1x128xf32>
    %557 = math.exp %556 : vector<1x128xf32>
    %cst_76 = arith.constant 1.000000e+00 : f32
    %558 = vector.broadcast %cst_76 : f32 to vector<1x128xf32>
    %559 = arith.addf %558, %557 : vector<1x128xf32>
    %560 = arith.divf %558, %559 : vector<1x128xf32>
    %561 = math.tanh %555 : vector<1x128xf32>
    %562 = vector.extract_strided_slice %560 {offsets = [0, 0], sizes = [1, 32], strides = [1, 1]} : vector<1x128xf32> to vector<1x32xf32>
    %563 = vector.extract_strided_slice %560 {offsets = [0, 32], sizes = [1, 32], strides = [1, 1]} : vector<1x128xf32> to vector<1x32xf32>
    %564 = vector.extract_strided_slice %561 {offsets = [0, 64], sizes = [1, 32], strides = [1, 1]} : vector<1x128xf32> to vector<1x32xf32>
    %565 = vector.extract_strided_slice %560 {offsets = [0, 96], sizes = [1, 32], strides = [1, 1]} : vector<1x128xf32> to vector<1x32xf32>
    %566 = arith.mulf %563, %532 : vector<1x32xf32>
    %567 = arith.mulf %562, %564 : vector<1x32xf32>
    %568 = arith.addf %566, %567 : vector<1x32xf32>
    %569 = math.tanh %568 : vector<1x32xf32>
    %570 = arith.mulf %565, %569 : vector<1x32xf32>
    %571 = tpu.concatenate %570, %552 in 1 : vector<1x32xf32>, vector<1x4xf32> -> vector<1x36xf32>
    %cst_77 = arith.constant dense<0.000000e+00> : vector<1x16xf32>
    %572 = tpu.matmul %571, %1, %cst_77 {dimension_numbers = #tpu.dot_dimension_numbers<[1], [0], [0], [1], [0, 0, 1, 1], [], []>} : vector<1x36xf32>, vector<36x16xf32>, vector<1x16xf32> -> vector<1x16xf32>
    %573 = arith.addf %572, %2 : vector<1x16xf32>
    %574 = arith.negf %573 : vector<1x16xf32>
    %575 = math.exp %574 : vector<1x16xf32>
    %cst_78 = arith.constant 1.000000e+00 : f32
    %576 = vector.broadcast %cst_78 : f32 to vector<1x16xf32>
    %577 = arith.addf %576, %575 : vector<1x16xf32>
    %578 = arith.divf %576, %577 : vector<1x16xf32>
    %579 = math.tanh %573 : vector<1x16xf32>
    %580 = vector.extract_strided_slice %578 {offsets = [0, 0], sizes = [1, 4], strides = [1, 1]} : vector<1x16xf32> to vector<1x4xf32>
    %581 = vector.extract_strided_slice %578 {offsets = [0, 4], sizes = [1, 4], strides = [1, 1]} : vector<1x16xf32> to vector<1x4xf32>
    %582 = vector.extract_strided_slice %579 {offsets = [0, 8], sizes = [1, 4], strides = [1, 1]} : vector<1x16xf32> to vector<1x4xf32>
    %583 = vector.extract_strided_slice %578 {offsets = [0, 12], sizes = [1, 4], strides = [1, 1]} : vector<1x16xf32> to vector<1x4xf32>
    %584 = arith.mulf %581, %550 : vector<1x4xf32>
    %585 = arith.mulf %580, %582 : vector<1x4xf32>
    %586 = arith.addf %584, %585 : vector<1x4xf32>
    %587 = math.tanh %586 : vector<1x4xf32>
    %588 = arith.mulf %583, %587 : vector<1x4xf32>
    %589 = tpu.concatenate %48, %84, %120, %156, %192, %228, %264, %300, %336, %372, %408, %444, %480, %516, %552, %588 in 0 : vector<1x4xf32>, vector<1x4xf32>, vector<1x4xf32>, vector<1x4xf32>, vector<1x4xf32>, vector<1x4xf32>, vector<1x4xf32>, vector<1x4xf32>, vector<1x4xf32>, vector<1x4xf32>, vector<1x4xf32>, vector<1x4xf32>, vector<1x4xf32>, vector<1x4xf32>, vector<1x4xf32>, vector<1x4xf32> -> vector<16x4xf32>
    %c0_79 = arith.constant 0 : index
    %c0_80 = arith.constant 0 : index
    %590 = vector.load %arg6[%c0_79, %c0_80] : memref<16x4xf32, #tpu.memory_space<vmem>>, vector<16x4xf32>
    tpu.vector_store %arg6[%c0_79, %c0_80], %589 {strides = array<i32>} : memref<16x4xf32, #tpu.memory_space<vmem>>, vector<16x4xf32>,
    return
  }
}

</mosaic_0001>

<bundles_post_ra>
// kernel: tpu_custom_call.1
= control target key start
LH: loop header
LB: loop body
LE: loop exit
PB: predicated region body
PF: predicated region fallthrough
CT: control target
= control target key end

     0   :  { %11 = vsyncpa [#allocation3], 0  ;;  %s2768_s24 = smov [#allocation2]   ;;  %s2769_s26 = smov 128   ;;  %s3518_s0 = inlined_call_operand.vmem [shape: f32[16,128], index: 0, kind: input, shape index: {}]   ;;  %s3519_s1 = inlined_call_operand.hbm [shape: f32[128,128], index: 1, kind: input, shape index: {}]   ;;  %s3520_s2 = inlined_call_operand.vmem [shape: f32[32,128], index: 2, kind: input, shape index: {}]   ;;  %s3521_s3 = inlined_call_operand.vmem [shape: f32[1,128], index: 3, kind: input, shape index: {}]   ;;  %s3522_s4 = inlined_call_operand.vmem [shape: f32[36,16], index: 4, kind: input, shape index: {}]   ;;  %s3523_s5 = inlined_call_operand.vmem [shape: f32[1,16], index: 5, kind: input, shape index: {}]   ;;  %s3524_s6 = inlined_call_operand.vmem [shape: f32[16,4], index: 6, kind: output, shape index: {}]  }
   0x1   :  { %s18_s23 = sshll.u32 %s3519_s1, 4  ;;  %s20_s25 = sshll.u32 %s2768_s24, 4  ;;  %s19_s23 = int_to_ptr.hbm [resolvable:$true] %s18_s23  ;;  %s21_s25 = int_to_ptr.vmem [resolvable:$true] %s20_s25 }
   0x2   :  { %s2770_s27 = smov 8  }
   0x3   :  { %26 = dma.hbm_to_vmem [thread:$0]  %s19_s23, 2048, %s21_s25, [#allocation3], %s2769_s26, %s2769_s26, %s2770_s27  }
   0x4   :  { %2766 = dma.done.wait [#allocation3], 2048  }
   0x5   :  { %2767 = vsyncadd [#allocation3], 4294965248  ;;  %v66_v0 = vld [vmem:[#allocation2 + $0x78] sm:$0xff]  ;;  %v65_v1 = vld [vmem:[#allocation2 + $0x70] sm:$0xff]  ;;  %v2771_v12 = vmov 0.0   ;;  %s2772_s15 = smov 64  }
   0x6   :  { %71 = vmatpush.msra.mxu0 %v66_v0  ;;  %v64_v2 = vld [vmem:[#allocation2 + $0x68] sm:$0xff]  ;;  %v63_v3 = vld [vmem:[#allocation2 + $0x60] sm:$0xff]  ;;  %v2820_v4 = vld [vmem:[%s3520_s2 + $0x18] sm:$0xff]  ;;  %s2773_s16 = smov 32   ;;  %vm165_vm4 = vcmask 1043456   ;;  %vm94_vm5 = vcmask 261120  }
   0x7   :  { %110 = vmatpush.msra.mxu1 %v2820_v4  ;;  %v2826_v5 = vld [vmem:[%s3520_s2 + $0x10] sm:$0xff]  ;;  %v62_v6 = vld [vmem:[#allocation2 + $0x58] sm:$0xff]  ;;  %v2831_v7 = vld [vmem:[%s3520_s2 + $0x8] sm:$0xff]  ;;  %240 = vmatpush.msra.mxu3 %v2820_v4  ;;  %vm161_vm6 = vcmask 293888   ;;  %s2774_s1 = smov 120   ;;  %s2775_s30 = smov 4  }
   0x8   :  { %72 = vmatpush.msra.mxu0 %v65_v1  ;;  %v61_v8 = vld [vmem:[#allocation2 + $0x50] sm:$0xff]  ;;  %v2838_v9 = vld [vmem:[%s3520_s2] sm:$0xff]  ;;  %v60_v10 = vld [vmem:[#allocation2 + $0x48] sm:$0xff]  ;;  %s2776_s7 = smov 20  }
   0x9   :  { %111 = vmatpush.msra.mxu1 %v2826_v5  ;;  %241 = vmatpush.msra.mxu3 %v2826_v5  ;;  %v59_v11 = vld [vmem:[#allocation2 + $0x40] sm:$0xff]  ;;  %v58_v13 = vld [vmem:[#allocation2 + $0x38] sm:$0xff]  ;;  %v57_v14 = vld [vmem:[#allocation2 + $0x30] sm:$0xff] }
   0xa   :  { %73 = vmatpush.msra.mxu0 %v64_v2  ;;  %v56_v15 = vld [vmem:[#allocation2 + $0x28] sm:$0xff]  ;;  %v55_v16 = vld [vmem:[#allocation2 + $0x20] sm:$0xff]  ;;  %v54_v17 = vld [vmem:[#allocation2 + $0x18] sm:$0xff] }
   0xb   :  { %112 = vmatpush.msra.mxu1 %v2831_v7  ;;  %242 = vmatpush.msra.mxu3 %v2831_v7  ;;  %v53_v18 = vld [vmem:[#allocation2 + $0x10] sm:$0xff]  ;;  %v52_v19 = vld [vmem:[#allocation2 + $0x8] sm:$0xff]  ;;  %v51_v20 = vld [vmem:[#allocation2] sm:$0xff] }
   0xc   :  { %74 = vmatpush.msra.mxu0 %v63_v3  ;;  %v49_v21 = vld [vmem:[%s3518_s0] sm:$0xff]  ;;  %v2872_v48 = vld [vmem:[%s3522_s4 + $0x18] sm:$0xff]  ;;  %v2881_v49 = vld [vmem:[%s3522_s4 + $0x10] sm:$0xff] }
   0xd   :  { %113 = vmatpush.msra.mxu1 %v2838_v9  ;;  %243 = vmatpush.msra.mxu3 %v2838_v9  ;;  %v2469_v22 = vld [vmem:[%s3521_s3] ss:$0 sm:$0xff]  ;;  %v2890_v50 = vld [vmem:[%s3522_s4 + $0x8] sm:$0xff] }
   0xe   :  { %75 = vmatpush.msra.mxu0 %v62_v6  ;;  %114 = vmatmul.f32.vlgmr.msra.gmra.mxu1 %v2771_v12  ;;  %v2867_v47 = vld [vmem:[%s3522_s4 + $0x20] sm:$0xf] }
   0xf   :  { %380 = vmatpush.msrb.mxu3 %v2820_v4  ;;  %2381 = vmatpush.msk.msra.mxu2 %vm165_vm4, %v2867_v47  ;;  %v2903_v53 = vld [vmem:[%s3522_s4] sm:$0xff] }
  0x10   :  { %76 = vmatpush.msra.mxu0 %v61_v8  ;;  %2386 = vmatpush.msk.msrb.mxu1 %vm165_vm4, %v2867_v47  ;;  %v2941_v59 = vld [vmem:[%s3523_s5] sm:$0x1] }
  0x11   :  { %381 = vmatpush.msrb.mxu3 %v2826_v5  ;;  %181 = vmatpush.msra.mxu2 %v2872_v48 }
  0x12   :  { %77 = vmatpush.msra.mxu0 %v60_v10  ;;  %318 = vmatpush.msrb.mxu1 %v2872_v48 }
  0x13   :  { %382 = vmatpush.msrb.mxu3 %v2831_v7  ;;  %182 = vmatpush.msra.mxu2 %v2881_v49 }
  0x14   :  { %78 = vmatpush.msra.mxu0 %v59_v11  ;;  %319 = vmatpush.msrb.mxu1 %v2881_v49 }
  0x15   :  { %383 = vmatpush.msrb.mxu3 %v2838_v9  ;;  %183 = vmatpush.msra.mxu2 %v2890_v50 }
  0x16   :  { %79 = vmatpush.msra.mxu0 %v58_v13  ;;  %320 = vmatpush.msrb.mxu1 %v2890_v50 }
  0x17   :  { %184 = vmatpush.msra.mxu2 %v2903_v53 }
  0x18   :  { %80 = vmatpush.msra.mxu0 %v57_v14  ;;  %321 = vmatpush.msrb.mxu1 %v2903_v53 }
  0x19   :  { %2391 = vmatpush.msk.msrb.mxu2 %vm165_vm4, %v2867_v47 }
  0x1a   :  { %81 = vmatpush.msra.mxu0 %v56_v15  ;;  %2396 = vmatpush.msk.msra.mxu1 %vm165_vm4, %v2867_v47 }
  0x1b   :  { %458 = vmatpush.msrb.mxu2 %v2872_v48 }
  0x1c   :  { %82 = vmatpush.msra.mxu0 %v55_v16  ;;  %598 = vmatpush.msra.mxu1 %v2872_v48 }
  0x1d   :  { %459 = vmatpush.msrb.mxu2 %v2881_v49 }
  0x1e   :  { %83 = vmatpush.msra.mxu0 %v54_v17  ;;  %599 = vmatpush.msra.mxu1 %v2881_v49 }
  0x1f   :  { %460 = vmatpush.msrb.mxu2 %v2890_v50 }
  0x20   :  { %84 = vmatpush.msra.mxu0 %v53_v18  ;;  %600 = vmatpush.msra.mxu1 %v2890_v50 }
  0x21   :  { %461 = vmatpush.msrb.mxu2 %v2903_v53 }
  0x22   :  { %85 = vmatpush.msra.mxu0 %v52_v19  ;;  %601 = vmatpush.msra.mxu1 %v2903_v53 }
  0x24   :  { %86 = vmatpush.msra.mxu0 %v51_v20 }
  0x25   :  { %87 = vmatmul.f32.vlgmr.msra.gmra.mxu0 %v49_v21 }
  0x26   :  { %2416 = vmatpush.msk.msrb.mxu0 %vm165_vm4, %v2867_v47 }
  0x28   :  { %1158 = vmatpush.msrb.mxu0 %v2872_v48 }
  0x2a   :  { %1159 = vmatpush.msrb.mxu0 %v2881_v49 }
  0x2c   :  { %1160 = vmatpush.msrb.mxu0 %v2890_v50 }
  0x2e   :  { %1161 = vmatpush.msrb.mxu0 %v2903_v53 }
  0x30   :  { %2426 = vmatpush.msk.msra.mxu0 %vm165_vm4, %v2867_v47 }
  0x32   :  { %1430 = vmatpush.msra.mxu0 %v2872_v48 }
  0x34   :  { %1431 = vmatpush.msra.mxu0 %v2881_v49 }
  0x36   :  { %1432 = vmatpush.msra.mxu0 %v2890_v50 }
  0x38   :  { %1433 = vmatpush.msra.mxu0 %v2903_v53 }
  0x8b   :  { %v115_v24 = vpop.f32.mrf.mxu1 }
  0xa2   :  { %v88_v23 = vpop.f32.mrf.mxu0 }
  0xa3   :  { %v2855_v25 = vadd.f32 %v2469_v22, %v88_v23 }
  0xa5   :  { %v118_v26 = vadd.f32 %v115_v24, %v2855_v25 }
  0xa7   :  { %2470 = vtanh.f32 %v118_v26  ;;  %v2380_v28 = vmul.f32 -1.442695, %v118_v26 }
  0xa9   :  { %2472 = vpow2.f32 %v2380_v28 }
  0xad   :  { %v2471_v27 = vpop.eup %2470 }
  0xae   :  { %141 = vrot.lane.b32.xlu0 %v2471_v27, %s2772_s15 }
  0xaf   :  { %v2473_v29 = vpop.eup %2472 }
  0xb0   :  { %v122_v30 = vadd.f32 1.0, %v2473_v29 }
  0xb2   :  { %2474 = vrcp.f32 %v122_v30  ;;  %v134_v36 = vand.u32 2147483648, %v122_v30  ;;  %vm128_vm1 = vweird.f32 %v122_v30  ;;  %v132_v37 = vand.u32 2147483647, %v122_v30 }
  0xb4   :  { %v135_v39 = vor.u32 1.1754944e-38, %v134_v36  ;;  %vm133_vm3 = vcmp.eq.f32.partialorder %v132_v37, 8.507059e+37 }
  0xb8   :  { %v2475_v31 = vpop.eup %2474 }
  0xb9   :  { %v124_v32 = vmul.f32 %v2475_v31, %v122_v30  ;;  %vm129_vm0 = vweird.f32 %v2475_v31 }
  0xba   :  { %vm130_vm2 = vmor %vm128_vm1, %vm129_vm0 }
  0xbb   :  { %v125_v33 = vsub.f32 1.0, %v124_v32 }
  0xbd   :  { %v126_v34 = vmul.f32 %v2475_v31, %v125_v33 }
  0xbf   :  { %v127_v35 = vadd.f32 %v2475_v31, %v126_v34 }
  0xc1   :  { %v131_v38 = vsel %vm130_vm2, %v2475_v31, %v127_v35 }
  0xc2   :  { %v136_v41 = vsel %vm133_vm3, %v135_v39, %v131_v38 }
  0xc3   :  { %v139_v43 = vmul.f32 0.0, %v136_v41 }
 0x120   :  { %v142_v40 = vpop.permute.xlu0 %141 }
 0x121   :  { %v144_v42 = vmul.f32 %v142_v40, %v136_v41 }
 0x123   :  { %146 = vrot.lane.b32.xlu0 %v144_v42, %s2773_s16 }
 0x195   :  { %v147_v44 = vpop.permute.xlu0 %146 }
 0x196   :  { %v2860_v45 = vadd.f32 %v147_v44, %v139_v43 }
 0x198   :  { %2476 = vtanh.f32 %v2860_v45  ;;  %v273_v35 = vrot.slane %v2860_v45, 7 }
 0x19e   :  { %v2477_v46 = vpop.eup %2476 }
 0x19f   :  { %152 = vrot.lane.b32.xlu1 %v2477_v46, %s2772_s15 }
 0x211   :  { %v153_v51 = vpop.permute.xlu1 %152 }
 0x212   :  { %v155_v52 = vmul.f32 %v153_v51, %v136_v41 }
 0x214   :  { %157 = vrot.lane.b32.xlu1 %v155_v52, %s2773_s16 }
 0x286   :  { %v158_v54 = vpop.permute.xlu1 %157 }
 0x287   :  { %2384 = vmatmul.msk.f32.vlgmr.msra.gmra.mxu3 %vm94_vm5, %v158_v54  ;;  %v160_v55 = vsel %vm94_vm5, %v158_v54, 0.0 }
 0x288   :  { %2382 = vmatmul.msk.f32.vlgmr.msra.gmra.mxu2 %vm161_vm6, %v160_v55  ;;  %520 = vmatpush.msra.mxu3 %v2820_v4 }
 0x289   :  { %660 = vmatpush.msra.mxu2 %v2820_v4 }
 0x28a   :  { %521 = vmatpush.msra.mxu3 %v2826_v5 }
 0x28b   :  { %661 = vmatpush.msra.mxu2 %v2826_v5 }
 0x28c   :  { %522 = vmatpush.msra.mxu3 %v2831_v7 }
 0x28d   :  { %662 = vmatpush.msra.mxu2 %v2831_v7 }
 0x28e   :  { %523 = vmatpush.msra.mxu3 %v2838_v9 }
 0x28f   :  { %663 = vmatpush.msra.mxu2 %v2838_v9 }
 0x30a   :  { %v245_v56 = vpop.f32.mrf.mxu3 }
 0x30b   :  { %v249_v57 = vrot.slane %v245_v56, 7  ;;  %v186_v60 = vpop.f32.mrf.mxu2 }
 0x30c   :  { %v187_v61 = vadd.f32 %v186_v60, %v2941_v59 }
 0x30d   :  { %v251_v58 = vadd.f32 %v249_v57, %v2855_v25 }
 0x30e   :  { %v2383_v1 = vmul.f32 -1.442695, %v187_v61 }
 0x30f   :  { %2478 = vtanh.f32 %v251_v58  ;;  %v2385_v0 = vmul.f32 -1.442695, %v251_v58 }
 0x310   :  { %2480 = vtanh.f32 %v187_v61 }
 0x311   :  { %2482 = vpow2.f32 %v2385_v0 }
 0x312   :  { %2484 = vpow2.f32 %v2383_v1 }
 0x315   :  { %v2479_v62 = vpop.eup %2478 }
 0x316   :  { %277 = vrot.lane.b32.xlu2 %v2479_v62, %s2772_s15  ;;  %v2481_v63 = vpop.eup %2480 }
 0x317   :  { %v2483_v2 = vpop.eup %2482 }
 0x318   :  { %v255_v3 = vadd.f32 1.0, %v2483_v2  ;;  %v2485_v6 = vpop.eup %2484 }
 0x319   :  { %v192_v8 = vadd.f32 1.0, %v2485_v6 }
 0x31a   :  { %2486 = vrcp.f32 %v255_v3  ;;  %v267_v18 = vand.u32 2147483648, %v255_v3  ;;  %vm261_vm8 = vweird.f32 %v255_v3  ;;  %v265_v19 = vand.u32 2147483647, %v255_v3 }
 0x31b   :  { %2488 = vrcp.f32 %v192_v8  ;;  %v204_v28 = vand.u32 2147483648, %v192_v8  ;;  %vm198_vm12 = vweird.f32 %v192_v8  ;;  %v202_v29 = vand.u32 2147483647, %v192_v8 }
 0x31c   :  { %v268_v22 = vor.u32 1.1754944e-38, %v267_v18  ;;  %vm266_vm10 = vcmp.eq.f32.partialorder %v265_v19, 8.507059e+37 }
 0x31d   :  { %v205_v31 = vor.u32 1.1754944e-38, %v204_v28  ;;  %vm203_vm14 = vcmp.eq.f32.partialorder %v202_v29, 8.507059e+37 }
 0x31e   :  { %211 = vrot.lane.b32.xlu2 %v2481_v63, %s2774_s1 }
 0x320   :  { %v2487_v10 = vpop.eup %2486 }
 0x321   :  { %v257_v11 = vmul.f32 %v2487_v10, %v255_v3  ;;  %v2489_v13 = vpop.eup %2488  ;;  %vm262_vm7 = vweird.f32 %v2487_v10 }
 0x322   :  { %v194_v15 = vmul.f32 %v2489_v13, %v192_v8  ;;  %vm263_vm9 = vmor %vm261_vm8, %vm262_vm7  ;;  %vm199_vm11 = vweird.f32 %v2489_v13 }
 0x323   :  { %v258_v12 = vsub.f32 1.0, %v257_v11  ;;  %vm200_vm13 = vmor %vm198_vm12, %vm199_vm11 }
 0x324   :  { %v195_v17 = vsub.f32 1.0, %v194_v15 }
 0x325   :  { %v259_v14 = vmul.f32 %v2487_v10, %v258_v12 }
 0x326   :  { %v196_v21 = vmul.f32 %v2489_v13, %v195_v17 }
 0x327   :  { %v260_v16 = vadd.f32 %v2487_v10, %v259_v14 }
 0x328   :  { %v197_v27 = vadd.f32 %v2489_v13, %v196_v21 }
 0x329   :  { %v264_v20 = vsel %vm263_vm9, %v2487_v10, %v260_v16 }
 0x32a   :  { %v269_v24 = vsel %vm266_vm10, %v268_v22, %v264_v20  ;;  %v201_v30 = vsel %vm200_vm13, %v2489_v13, %v197_v27 }
 0x32b   :  { %v206_v33 = vsel %vm203_vm14, %v205_v31, %v201_v30  ;;  %v275_v36 = vmul.f32 %v273_v35, %v269_v24 }
 0x32c   :  { %v209_v39 = vmul.f32 0.0, %v206_v33 }
 0x370   :  { %v278_v23 = vpop.permute.xlu2 %277 }
 0x371   :  { %v280_v26 = vmul.f32 %v278_v23, %v269_v24 }
 0x373   :  { %282 = vrot.lane.b32.xlu0 %v280_v26, %s2773_s16 }
 0x378   :  { %v212_v32 = vpop.permute.xlu2 %211 }
 0x379   :  { %v214_v34 = vmul.f32 %v212_v32, %v206_v33 }
 0x37b   :  { %216 = vrot.lane.b32.xlu1 %v214_v34, %s2775_s30 }
 0x3e5   :  { %v283_v37 = vpop.permute.xlu0 %282 }
 0x3e6   :  { %v2949_v38 = vadd.f32 %v283_v37, %v275_v36 }
 0x3e8   :  { %2490 = vtanh.f32 %v2949_v38 }
 0x3ed   :  { %v217_v40 = vpop.permute.xlu1 %216 }
 0x3ee   :  { %v2491_v41 = vpop.eup %2490  ;;  %v2952_v42 = vadd.f32 %v217_v40, %v209_v39  ;;  %v413_v40 = vrot.slane %v2949_v38, 7 }
 0x3ef   :  { %288 = vrot.lane.b32.xlu2 %v2491_v41, %s2772_s15 }
 0x3f0   :  { %2492 = vtanh.f32 %v2952_v42 }
 0x3f6   :  { %v2493_v43 = vpop.eup %2492 }
 0x3f7   :  { %222 = vrot.lane.b32.xlu0 %v2493_v43, %s2770_s27 }
 0x449   :  { %v289_v44 = vpop.permute.xlu2 %288 }
 0x44a   :  { %v291_v45 = vmul.f32 %v289_v44, %v269_v24 }
 0x44c   :  { %v363_v46 = vrot.slane %v291_v45, 1  ;;  %293 = vrot.lane.b32.xlu2 %v291_v45, %s2773_s16 }
 0x44e   :  { %364 = vrot.lane.b32.xlu1 %v363_v46, %s2773_s16 }
 0x469   :  { %v223_v51 = vpop.permute.xlu0 %222 }
 0x46a   :  { %v2959_v52 = vmul.f32 %v223_v51, %v206_v33 }
 0x46c   :  { %v297_v54 = vrot.slane %v2959_v52, 7 }
 0x46e   :  { %298 = vrot.lane.b32.xlu0 %v297_v54, %s2776_s7 }
 0x4a6   :  { %v294_v56 = vpop.permute.xlu2 %293 }
 0x4c0   :  { %v365_v55 = vpop.permute.xlu1 %364 }
 0x4c1   :  { %2389 = vmatmul.msk.f32.vlgmr.msrb.gmra.mxu3 %vm94_vm5, %v365_v55 }
 0x4c2   :  { %2401 = vmatpush.msk.msrb.mxu3 %vm165_vm4, %v2867_v47 }
 0x4c4   :  { %738 = vmatpush.msrb.mxu3 %v2872_v48 }
 0x4c6   :  { %739 = vmatpush.msrb.mxu3 %v2881_v49 }
 0x4c8   :  { %740 = vmatpush.msrb.mxu3 %v2890_v50 }
 0x4ca   :  { %741 = vmatpush.msrb.mxu3 %v2903_v53 }
 0x4e0   :  { %v299_v57 = vpop.permute.xlu0 %298 }
 0x4e1   :  { %v301_v58 = vsel %vm94_vm5, %v294_v56, %v299_v57 }
 0x4e2   :  { %v303_v60 = vrot.slane %v301_v58, 1 }
 0x4e4   :  { %2387 = vmatmul.msk.f32.vlgmr.msrb.gmra.mxu1 %vm161_vm6, %v303_v60 }
 0x4e5   :  { %800 = vmatpush.msrb.mxu1 %v2820_v4 }
 0x4e7   :  { %801 = vmatpush.msrb.mxu1 %v2826_v5 }
 0x4e9   :  { %802 = vmatpush.msrb.mxu1 %v2831_v7 }
 0x4eb   :  { %803 = vmatpush.msrb.mxu1 %v2838_v9 }
 0x544   :  { %v385_v61 = vpop.f32.mrf.mxu3 }
 0x545   :  { %v389_v62 = vrot.slane %v385_v61, 6 }
 0x547   :  { %v391_v63 = vadd.f32 %v389_v62, %v2855_v25 }
 0x549   :  { %2494 = vtanh.f32 %v391_v63  ;;  %v2390_v6 = vmul.f32 -1.442695, %v391_v63 }
 0x54f   :  { %v2495_v0 = vpop.eup %2494 }
 0x550   :  { %417 = vrot.lane.b32.xlu1 %v2495_v0, %s2772_s15 }
 0x561   :  { %v323_v1 = vpop.f32.mrf.mxu1 }
 0x562   :  { %v324_v2 = vadd.f32 %v323_v1, %v2941_v59 }
 0x564   :  { %2496 = vtanh.f32 %v324_v2  ;;  %v2388_v8 = vmul.f32 -1.442695, %v324_v2 }
 0x565   :  { %2498 = vpow2.f32 %v2390_v6 }
 0x566   :  { %2500 = vpow2.f32 %v2388_v8 }
 0x56a   :  { %v2497_v3 = vpop.eup %2496 }
 0x56b   :  { %348 = vrot.lane.b32.xlu2 %v2497_v3, %s2774_s1  ;;  %v2499_v10 = vpop.eup %2498 }
 0x56c   :  { %v2501_v11 = vpop.eup %2500  ;;  %v395_v12 = vadd.f32 1.0, %v2499_v10 }
 0x56d   :  { %v329_v13 = vadd.f32 1.0, %v2501_v11 }
 0x56e   :  { %2502 = vrcp.f32 %v395_v12  ;;  %v407_v23 = vand.u32 2147483648, %v395_v12  ;;  %vm401_vm0 = vweird.f32 %v395_v12  ;;  %v405_v24 = vand.u32 2147483647, %v395_v12 }
 0x56f   :  { %2504 = vrcp.f32 %v329_v13  ;;  %v341_v28 = vand.u32 2147483648, %v329_v13  ;;  %vm335_vm3 = vweird.f32 %v329_v13  ;;  %v339_v30 = vand.u32 2147483647, %v329_v13 }
 0x570   :  { %v408_v29 = vor.u32 1.1754944e-38, %v407_v23  ;;  %vm406_vm7 = vcmp.eq.f32.partialorder %v405_v24, 8.507059e+37 }
 0x571   :  { %v342_v35 = vor.u32 1.1754944e-38, %v341_v28  ;;  %vm340_vm9 = vcmp.eq.f32.partialorder %v339_v30, 8.507059e+37 }
 0x574   :  { %v2503_v14 = vpop.eup %2502 }
 0x575   :  { %v2505_v15 = vpop.eup %2504  ;;  %v397_v16 = vmul.f32 %v2503_v14, %v395_v12  ;;  %vm402_vm15 = vweird.f32 %v2503_v14 }
 0x576   :  { %v331_v17 = vmul.f32 %v2505_v15, %v329_v13  ;;  %vm403_vm1 = vmor %vm401_vm0, %vm402_vm15  ;;  %vm336_vm2 = vweird.f32 %v2505_v15 }
 0x577   :  { %v398_v18 = vsub.f32 1.0, %v397_v16  ;;  %vm337_vm8 = vmor %vm335_vm3, %vm336_vm2  ;;  %vm2344_vm2 = vcmask 1040384   ;;  %vm2346_vm3 = vcmask 1041408  }
 0x578   :  { %v332_v19 = vsub.f32 1.0, %v331_v17 }
 0x579   :  { %v399_v20 = vmul.f32 %v2503_v14, %v398_v18 }
 0x57a   :  { %v333_v21 = vmul.f32 %v2505_v15, %v332_v19 }
 0x57b   :  { %v400_v22 = vadd.f32 %v2503_v14, %v399_v20 }
 0x57c   :  { %v334_v26 = vadd.f32 %v2505_v15, %v333_v21 }
 0x57d   :  { %v404_v27 = vsel %vm403_vm1, %v2503_v14, %v400_v22 }
 0x57e   :  { %v409_v32 = vsel %vm406_vm7, %v408_v29, %v404_v27  ;;  %v338_v33 = vsel %vm337_vm8, %v2505_v15, %v334_v26 }
 0x57f   :  { %v343_v37 = vsel %vm340_vm9, %v342_v35, %v338_v33  ;;  %v415_v41 = vmul.f32 %v413_v40, %v409_v32 }
 0x580   :  { %v346_v45 = vmul.f32 %v343_v37, %v2952_v42 }
 0x5c2   :  { %v418_v31 = vpop.permute.xlu1 %417 }
 0x5c3   :  { %v420_v34 = vmul.f32 %v418_v31, %v409_v32 }
 0x5c5   :  { %422 = vrot.lane.b32.xlu0 %v420_v34, %s2773_s16  ;;  %v349_v36 = vpop.permute.xlu2 %348 }
 0x5c6   :  { %v351_v39 = vmul.f32 %v349_v36, %v343_v37 }
 0x5c8   :  { %353 = vrot.lane.b32.xlu1 %v351_v39, %s2775_s30 }
 0x637   :  { %v423_v43 = vpop.permute.xlu0 %422 }
 0x638   :  { %v2983_v44 = vadd.f32 %v423_v43, %v415_v41 }
 0x63a   :  { %2506 = vtanh.f32 %v2983_v44  ;;  %v354_v46 = vpop.permute.xlu1 %353 }
 0x63b   :  { %v2987_v51 = vadd.f32 %v354_v46, %v346_v45 }
 0x63d   :  { %2508 = vtanh.f32 %v2987_v51 }
 0x640   :  { %v2507_v54 = vpop.eup %2506 }
 0x641   :  { %428 = vrot.lane.b32.xlu2 %v2507_v54, %s2772_s15  ;;  %v553_v54 = vrot.slane %v2983_v44, 7 }
 0x643   :  { %v2509_v55 = vpop.eup %2508 }
 0x644   :  { %359 = vrot.lane.b32.xlu0 %v2509_v55, %s2770_s27 }
 0x69b   :  { %v429_v38 = vpop.permute.xlu2 %428 }
 0x69c   :  { %v431_v56 = vmul.f32 %v429_v38, %v409_v32 }
 0x69e   :  { %v503_v57 = vrot.slane %v431_v56, 2  ;;  %433 = vrot.lane.b32.xlu2 %v431_v56, %s2773_s16 }
 0x6a0   :  { %504 = vrot.lane.b32.xlu1 %v503_v57, %s2773_s16 }
 0x6b6   :  { %v360_v42 = vpop.permute.xlu0 %359 }
 0x6b7   :  { %v2994_v58 = vmul.f32 %v360_v42, %v343_v37 }
 0x6b9   :  { %v437_v60 = vrot.slane %v2994_v58, 6 }
 0x6bb   :  { %438 = vrot.lane.b32.xlu0 %v437_v60, %s2776_s7 }
 0x6f8   :  { %v434_v62 = vpop.permute.xlu2 %433 }
 0x712   :  { %v505_v61 = vpop.permute.xlu1 %504 }
 0x713   :  { %2394 = vmatmul.msk.f32.vlgmr.msra.gmra.mxu3 %vm94_vm5, %v505_v61 }
 0x714   :  { %940 = vmatpush.msra.mxu3 %v2820_v4 }
 0x716   :  { %941 = vmatpush.msra.mxu3 %v2826_v5 }
 0x718   :  { %942 = vmatpush.msra.mxu3 %v2831_v7 }
 0x71a   :  { %943 = vmatpush.msra.mxu3 %v2838_v9 }
 0x72d   :  { %v439_v63 = vpop.permute.xlu0 %438 }
 0x72e   :  { %v441_v0 = vsel %vm94_vm5, %v434_v62, %v439_v63 }
 0x72f   :  { %v443_v1 = vrot.slane %v441_v0, 2 }
 0x731   :  { %2392 = vmatmul.msk.f32.vlgmr.msrb.gmra.mxu2 %vm161_vm6, %v443_v1 }
 0x732   :  { %2406 = vmatpush.msk.msrb.mxu2 %vm165_vm4, %v2867_v47 }
 0x734   :  { %878 = vmatpush.msrb.mxu2 %v2872_v48 }
 0x736   :  { %879 = vmatpush.msrb.mxu2 %v2881_v49 }
 0x738   :  { %880 = vmatpush.msrb.mxu2 %v2890_v50 }
 0x73a   :  { %881 = vmatpush.msrb.mxu2 %v2903_v53 }
 0x796   :  { %v525_v2 = vpop.f32.mrf.mxu3 }
 0x797   :  { %v529_v3 = vrot.slane %v525_v2, 5 }
 0x799   :  { %v531_v6 = vadd.f32 %v529_v3, %v2855_v25 }
 0x79b   :  { %2510 = vtanh.f32 %v531_v6  ;;  %v2395_v13 = vmul.f32 -1.442695, %v531_v6 }
 0x7a1   :  { %v2511_v8 = vpop.eup %2510 }
 0x7a2   :  { %557 = vrot.lane.b32.xlu1 %v2511_v8, %s2772_s15 }
 0x7b4   :  { %v463_v10 = vpop.f32.mrf.mxu2 }
 0x7b5   :  { %v464_v11 = vadd.f32 %v463_v10, %v2941_v59 }
 0x7b7   :  { %2512 = vtanh.f32 %v464_v11  ;;  %v2393_v14 = vmul.f32 -1.442695, %v464_v11 }
 0x7b8   :  { %2514 = vpow2.f32 %v2395_v13 }
 0x7b9   :  { %2516 = vpow2.f32 %v2393_v14 }
 0x7bd   :  { %v2513_v12 = vpop.eup %2512 }
 0x7be   :  { %488 = vrot.lane.b32.xlu2 %v2513_v12, %s2774_s1  ;;  %v2515_v15 = vpop.eup %2514 }
 0x7bf   :  { %v535_v16 = vadd.f32 1.0, %v2515_v15  ;;  %v2517_v17 = vpop.eup %2516 }
 0x7c0   :  { %v469_v18 = vadd.f32 1.0, %v2517_v17 }
 0x7c1   :  { %2518 = vrcp.f32 %v535_v16  ;;  %v547_v29 = vand.u32 2147483648, %v535_v16  ;;  %vm541_vm11 = vweird.f32 %v535_v16  ;;  %v545_v30 = vand.u32 2147483647, %v535_v16 }
 0x7c2   :  { %2520 = vrcp.f32 %v469_v18  ;;  %v481_v34 = vand.u32 2147483648, %v469_v18  ;;  %vm475_vm15 = vweird.f32 %v469_v18  ;;  %v479_v35 = vand.u32 2147483647, %v469_v18 }
 0x7c3   :  { %v548_v33 = vor.u32 1.1754944e-38, %v547_v29  ;;  %vm546_vm14 = vcmp.eq.f32.partialorder %v545_v30, 8.507059e+37 }
 0x7c4   :  { %v482_v41 = vor.u32 1.1754944e-38, %v481_v34  ;;  %vm480_vm1 = vcmp.eq.f32.partialorder %v479_v35, 8.507059e+37 }
 0x7c7   :  { %v2519_v19 = vpop.eup %2518 }
 0x7c8   :  { %v537_v20 = vmul.f32 %v2519_v19, %v535_v16  ;;  %v2521_v21 = vpop.eup %2520  ;;  %vm542_vm10 = vweird.f32 %v2519_v19 }
 0x7c9   :  { %v471_v23 = vmul.f32 %v2521_v21, %v469_v18  ;;  %vm543_vm12 = vmor %vm541_vm11, %vm542_vm10  ;;  %vm476_vm13 = vweird.f32 %v2521_v21 }
 0x7ca   :  { %v538_v22 = vsub.f32 1.0, %v537_v20  ;;  %vm477_vm0 = vmor %vm475_vm15, %vm476_vm13  ;;  %vm2348_vm15 = vcmask 1042432  }
 0x7cb   :  { %v472_v26 = vsub.f32 1.0, %v471_v23 }
 0x7cc   :  { %v539_v24 = vmul.f32 %v2519_v19, %v538_v22 }
 0x7cd   :  { %v473_v28 = vmul.f32 %v2521_v21, %v472_v26 }
 0x7ce   :  { %v540_v27 = vadd.f32 %v2519_v19, %v539_v24 }
 0x7cf   :  { %v474_v32 = vadd.f32 %v2521_v21, %v473_v28 }
 0x7d0   :  { %v544_v31 = vsel %vm543_vm12, %v2519_v19, %v540_v27 }
 0x7d1   :  { %v549_v37 = vsel %vm546_vm14, %v548_v33, %v544_v31  ;;  %v478_v40 = vsel %vm477_vm0, %v2521_v21, %v474_v32 }
 0x7d2   :  { %v483_v45 = vsel %vm480_vm1, %v482_v41, %v478_v40  ;;  %v555_v55 = vmul.f32 %v553_v54, %v549_v37 }
 0x7d3   :  { %v486_v57 = vmul.f32 %v483_v45, %v2987_v51  ;;  %v2315_v51 = vrot.slane %v2994_v58, 7 }
 0x7d5   :  { %v2345_v8 = vsel %vm2344_vm2, %v2959_v52, %v2315_v51 }
 0x814   :  { %v558_v36 = vpop.permute.xlu1 %557 }
 0x815   :  { %v560_v39 = vmul.f32 %v558_v36, %v549_v37 }
 0x817   :  { %562 = vrot.lane.b32.xlu0 %v560_v39, %s2773_s16 }
 0x818   :  { %v489_v43 = vpop.permute.xlu2 %488 }
 0x819   :  { %v491_v46 = vmul.f32 %v489_v43, %v483_v45 }
 0x81b   :  { %493 = vrot.lane.b32.xlu1 %v491_v46, %s2775_s30 }
 0x889   :  { %v563_v38 = vpop.permute.xlu0 %562 }
 0x88a   :  { %v3018_v56 = vadd.f32 %v563_v38, %v555_v55 }
 0x88c   :  { %2522 = vtanh.f32 %v3018_v56 }
 0x88d   :  { %v494_v42 = vpop.permute.xlu1 %493 }
 0x88e   :  { %v3022_v60 = vadd.f32 %v494_v42, %v486_v57 }
 0x890   :  { %2524 = vtanh.f32 %v3022_v60 }
 0x892   :  { %v2523_v61 = vpop.eup %2522 }
 0x893   :  { %568 = vrot.lane.b32.xlu2 %v2523_v61, %s2772_s15  ;;  %v693_v61 = vrot.slane %v3018_v56, 7 }
 0x896   :  { %v2525_v62 = vpop.eup %2524 }
 0x897   :  { %499 = vrot.lane.b32.xlu0 %v2525_v62, %s2770_s27 }
 0x8ed   :  { %v569_v44 = vpop.permute.xlu2 %568 }
 0x8ee   :  { %v571_v63 = vmul.f32 %v569_v44, %v549_v37 }
 0x8f0   :  { %v643_v0 = vrot.slane %v571_v63, 3  ;;  %573 = vrot.lane.b32.xlu2 %v571_v63, %s2773_s16 }
 0x8f2   :  { %644 = vrot.lane.b32.xlu1 %v643_v0, %s2773_s16 }
 0x909   :  { %v500_v1 = vpop.permute.xlu0 %499 }
 0x90a   :  { %v502_v2 = vmul.f32 %v500_v1, %v483_v45 }
 0x90c   :  { %v577_v3 = vrot.slane %v502_v2, 5  ;;  %v2317_v6 = vrot.slane %v502_v2, 6 }
 0x90e   :  { %v3033_v10 = vsel %vm2346_vm3, %v2345_v8, %v2317_v6  ;;  %578 = vrot.lane.b32.xlu0 %v577_v3, %s2776_s7 }
 0x94a   :  { %v574_v58 = vpop.permute.xlu2 %573 }
 0x964   :  { %v645_v11 = vpop.permute.xlu1 %644 }
 0x965   :  { %2399 = vmatmul.msk.f32.vlgmr.msra.gmra.mxu2 %vm94_vm5, %v645_v11 }
 0x966   :  { %1080 = vmatpush.msra.mxu2 %v2820_v4 }
 0x968   :  { %1081 = vmatpush.msra.mxu2 %v2826_v5 }
 0x96a   :  { %1082 = vmatpush.msra.mxu2 %v2831_v7 }
 0x96c   :  { %1083 = vmatpush.msra.mxu2 %v2838_v9 }
 0x980   :  { %v579_v12 = vpop.permute.xlu0 %578 }
 0x981   :  { %v581_v52 = vsel %vm94_vm5, %v574_v58, %v579_v12 }
 0x982   :  { %v583_v13 = vrot.slane %v581_v52, 3 }
 0x984   :  { %2397 = vmatmul.msk.f32.vlgmr.msra.gmra.mxu1 %vm161_vm6, %v583_v13 }
 0x985   :  { %2411 = vmatpush.msk.msra.mxu1 %vm165_vm4, %v2867_v47 }
 0x987   :  { %1018 = vmatpush.msra.mxu1 %v2872_v48 }
 0x989   :  { %1019 = vmatpush.msra.mxu1 %v2881_v49 }
 0x98b   :  { %1020 = vmatpush.msra.mxu1 %v2890_v50 }
 0x98d   :  { %1021 = vmatpush.msra.mxu1 %v2903_v53 }
 0x9e8   :  { %v665_v4 = vpop.f32.mrf.mxu2 }
 0x9e9   :  { %v669_v5 = vrot.slane %v665_v4, 4 }
 0x9eb   :  { %v671_v7 = vadd.f32 %v669_v5, %v2855_v25 }
 0x9ed   :  { %2526 = vtanh.f32 %v671_v7  ;;  %v2400_v19 = vmul.f32 -1.442695, %v671_v7 }
 0x9f3   :  { %v2527_v14 = vpop.eup %2526 }
 0x9f4   :  { %697 = vrot.lane.b32.xlu1 %v2527_v14, %s2772_s15  ;;  %v3084_v14 = vld [vmem:[%s3520_s2 + $0x18] sm:$0xff] }
 0xa01   :  { %v603_v15 = vpop.f32.mrf.mxu1 }
 0xa02   :  { %v604_v16 = vadd.f32 %v603_v15, %v2941_v59 }
 0xa04   :  { %2528 = vtanh.f32 %v604_v16  ;;  %v2398_v18 = vmul.f32 -1.442695, %v604_v16 }
 0xa06   :  { %2530 = vpow2.f32 %v2398_v18 }
 0xa07   :  { %2532 = vpow2.f32 %v2400_v19 }
 0xa0a   :  { %v2529_v17 = vpop.eup %2528 }
 0xa0b   :  { %628 = vrot.lane.b32.xlu2 %v2529_v17, %s2774_s1 }
 0xa0c   :  { %v2531_v20 = vpop.eup %2530 }
 0xa0d   :  { %v2533_v21 = vpop.eup %2532  ;;  %v609_v22 = vadd.f32 1.0, %v2531_v20 }
 0xa0e   :  { %v675_v23 = vadd.f32 1.0, %v2533_v21 }
 0xa0f   :  { %2534 = vrcp.f32 %v609_v22  ;;  %v621_v34 = vand.u32 2147483648, %v609_v22  ;;  %vm615_vm9 = vweird.f32 %v609_v22  ;;  %v619_v36 = vand.u32 2147483647, %v609_v22 }
 0xa10   :  { %2536 = vrcp.f32 %v675_v23  ;;  %v687_v37 = vand.u32 2147483648, %v675_v23  ;;  %vm681_vm11 = vweird.f32 %v675_v23  ;;  %v685_v39 = vand.u32 2147483647, %v675_v23 }
 0xa11   :  { %v622_v41 = vor.u32 1.1754944e-38, %v621_v34  ;;  %vm620_vm13 = vcmp.eq.f32.partialorder %v619_v36, 8.507059e+37 }
 0xa12   :  { %v688_v45 = vor.u32 1.1754944e-38, %v687_v37  ;;  %vm686_vm14 = vcmp.eq.f32.partialorder %v685_v39, 8.507059e+37 }
 0xa15   :  { %v2535_v24 = vpop.eup %2534 }
 0xa16   :  { %v2537_v26 = vpop.eup %2536  ;;  %v611_v27 = vmul.f32 %v2535_v24, %v609_v22  ;;  %vm616_vm7 = vweird.f32 %v2535_v24 }
 0xa17   :  { %v677_v28 = vmul.f32 %v2537_v26, %v675_v23  ;;  %vm682_vm8 = vweird.f32 %v2537_v26  ;;  %vm617_vm10 = vmor %vm615_vm9, %vm616_vm7 }
 0xa18   :  { %v612_v29 = vsub.f32 1.0, %v611_v27  ;;  %vm683_vm12 = vmor %vm681_vm11, %vm682_vm8 }
 0xa19   :  { %v678_v30 = vsub.f32 1.0, %v677_v28 }
 0xa1a   :  { %v613_v31 = vmul.f32 %v2535_v24, %v612_v29 }
 0xa1b   :  { %v679_v32 = vmul.f32 %v2537_v26, %v678_v30 }
 0xa1c   :  { %v614_v33 = vadd.f32 %v2535_v24, %v613_v31 }
 0xa1d   :  { %v680_v35 = vadd.f32 %v2537_v26, %v679_v32 }
 0xa1e   :  { %v618_v40 = vsel %vm617_vm10, %v2535_v24, %v614_v33 }
 0xa1f   :  { %v684_v43 = vsel %vm683_vm12, %v2537_v26, %v680_v35  ;;  %v623_v54 = vsel %vm620_vm13, %v622_v41, %v618_v40 }
 0xa20   :  { %v689_v57 = vsel %vm686_vm14, %v688_v45, %v684_v43  ;;  %v626_v62 = vmul.f32 %v623_v54, %v3022_v60 }
 0xa21   :  { %v695_v63 = vmul.f32 %v693_v61, %v689_v57 }
 0xa65   :  { %v629_v46 = vpop.permute.xlu2 %628 }
 0xa66   :  { %v631_v55 = vmul.f32 %v629_v46, %v623_v54  ;;  %v698_v38 = vpop.permute.xlu1 %697 }
 0xa67   :  { %v700_v42 = vmul.f32 %v698_v38, %v689_v57 }
 0xa68   :  { %633 = vrot.lane.b32.xlu1 %v631_v55, %s2775_s30 }
 0xa69   :  { %702 = vrot.lane.b32.xlu0 %v700_v42, %s2773_s16 }
 0xada   :  { %v634_v44 = vpop.permute.xlu1 %633 }
 0xadb   :  { %v3057_v0 = vadd.f32 %v634_v44, %v626_v62  ;;  %v703_v51 = vpop.permute.xlu0 %702 }
 0xadc   :  { %v3059_v1 = vadd.f32 %v703_v51, %v695_v63 }
 0xadd   :  { %2538 = vtanh.f32 %v3057_v0 }
 0xade   :  { %2540 = vtanh.f32 %v3059_v1  ;;  %v833_v61 = vrot.slane %v3059_v1, 7 }
 0xae3   :  { %v2539_v2 = vpop.eup %2538 }
 0xae4   :  { %v2541_v3 = vpop.eup %2540  ;;  %639 = vrot.lane.b32.xlu0 %v2539_v2, %s2770_s27 }
 0xae5   :  { %708 = vrot.lane.b32.xlu2 %v2541_v3, %s2772_s15 }
 0xb3f   :  { %v709_v56 = vpop.permute.xlu2 %708 }
 0xb40   :  { %v711_v6 = vmul.f32 %v709_v56, %v689_v57 }
 0xb42   :  { %v783_v60 = vrot.slane %v711_v6, 4  ;;  %713 = vrot.lane.b32.xlu2 %v711_v6, %s2773_s16 }
 0xb44   :  { %784 = vrot.lane.b32.xlu1 %v783_v60, %s2773_s16 }
 0xb56   :  { %v640_v8 = vpop.permute.xlu0 %639 }
 0xb57   :  { %v642_v11 = vmul.f32 %v640_v8, %v623_v54 }
 0xb59   :  { %v717_v58 = vrot.slane %v642_v11, 4  ;;  %v2319_v12 = vrot.slane %v642_v11, 5 }
 0xb5b   :  { %v3069_v52 = vsel %vm2348_vm15, %v3033_v10, %v2319_v12  ;;  %718 = vrot.lane.b32.xlu0 %v717_v58, %s2776_s7 }
 0xb9c   :  { %v714_v4 = vpop.permute.xlu2 %713 }
 0xbb6   :  { %v785_v13 = vpop.permute.xlu1 %784 }
 0xbb7   :  { %2404 = vmatmul.msk.f32.vlgmr.msrb.gmra.mxu1 %vm94_vm5, %v785_v13 }
 0xbb8   :  { %2421 = vmatpush.msk.msrb.mxu1 %vm165_vm4, %v2867_v47  ;;  %v3090_v47 = vld [vmem:[%s3520_s2 + $0x10] sm:$0xff] }
 0xbba   :  { %1293 = vmatpush.msrb.mxu1 %v2872_v48  ;;  %v3096_v48 = vld [vmem:[%s3520_s2 + $0x8] sm:$0xff] }
 0xbbc   :  { %1294 = vmatpush.msrb.mxu1 %v2881_v49 }
 0xbbe   :  { %1295 = vmatpush.msrb.mxu1 %v2890_v50 }
 0xbc0   :  { %1296 = vmatpush.msrb.mxu1 %v2903_v53 }
 0xbcd   :  { %v719_v5 = vpop.permute.xlu0 %718 }
 0xbce   :  { %v721_v10 = vsel %vm94_vm5, %v714_v4, %v719_v5  ;;  %v3130_v5 = vld [vmem:[%s3520_s2] sm:$0xff] }
 0xbcf   :  { %v723_v7 = vrot.slane %v721_v10, 4 }
 0xbd1   :  { %2402 = vmatmul.msk.f32.vlgmr.msrb.gmra.mxu3 %vm161_vm6, %v723_v7 }
 0xbd2   :  { %1220 = vmatpush.msrb.mxu3 %v3084_v14 }
 0xbd4   :  { %1221 = vmatpush.msrb.mxu3 %v3090_v47 }
 0xbd6   :  { %1222 = vmatpush.msrb.mxu3 %v3096_v48 }
 0xbd8   :  { %1223 = vmatpush.msrb.mxu3 %v2838_v9 }
 0xc34   :  { %v805_v49 = vpop.f32.mrf.mxu1 }
 0xc35   :  { %v809_v50 = vrot.slane %v805_v49, 3 }
 0xc37   :  { %v811_v53 = vadd.f32 %v809_v50, %v2855_v25 }
 0xc39   :  { %2542 = vtanh.f32 %v811_v53  ;;  %v2405_v19 = vmul.f32 -1.442695, %v811_v53 }
 0xc3f   :  { %v2543_v15 = vpop.eup %2542 }
 0xc40   :  { %837 = vrot.lane.b32.xlu1 %v2543_v15, %s2772_s15 }
 0xc54   :  { %v743_v16 = vpop.f32.mrf.mxu3 }
 0xc55   :  { %v744_v17 = vadd.f32 %v743_v16, %v2941_v59 }
 0xc57   :  { %2544 = vtanh.f32 %v744_v17  ;;  %v2403_v20 = vmul.f32 -1.442695, %v744_v17 }
 0xc58   :  { %2546 = vpow2.f32 %v2405_v19 }
 0xc59   :  { %2548 = vpow2.f32 %v2403_v20 }
 0xc5d   :  { %v2545_v18 = vpop.eup %2544 }
 0xc5e   :  { %768 = vrot.lane.b32.xlu2 %v2545_v18, %s2774_s1  ;;  %v2547_v21 = vpop.eup %2546 }
 0xc5f   :  { %v815_v9 = vadd.f32 1.0, %v2547_v21  ;;  %v2549_v22 = vpop.eup %2548 }
 0xc60   :  { %v749_v23 = vadd.f32 1.0, %v2549_v22 }
 0xc61   :  { %2550 = vrcp.f32 %v815_v9  ;;  %v827_v33 = vand.u32 2147483648, %v815_v9  ;;  %vm821_vm1 = vweird.f32 %v815_v9  ;;  %v825_v34 = vand.u32 2147483647, %v815_v9 }
 0xc62   :  { %2552 = vrcp.f32 %v749_v23  ;;  %v761_v43 = vand.u32 2147483648, %v749_v23  ;;  %vm755_vm10 = vweird.f32 %v749_v23  ;;  %v759_v46 = vand.u32 2147483647, %v749_v23 }
 0xc63   :  { %v828_v37 = vor.u32 1.1754944e-38, %v827_v33  ;;  %vm826_vm8 = vcmp.eq.f32.partialorder %v825_v34, 8.507059e+37 }
 0xc64   :  { %v762_v55 = vor.u32 1.1754944e-38, %v761_v43  ;;  %vm760_vm12 = vcmp.eq.f32.partialorder %v759_v46, 8.507059e+37 }
 0xc67   :  { %v2551_v24 = vpop.eup %2550 }
 0xc68   :  { %v817_v26 = vmul.f32 %v2551_v24, %v815_v9  ;;  %v2553_v27 = vpop.eup %2552  ;;  %vm822_vm0 = vweird.f32 %v2551_v24 }
 0xc69   :  { %v751_v29 = vmul.f32 %v2553_v27, %v749_v23  ;;  %vm823_vm7 = vmor %vm821_vm1, %vm822_vm0  ;;  %vm756_vm9 = vweird.f32 %v2553_v27 }
 0xc6a   :  { %v818_v28 = vsub.f32 1.0, %v817_v26  ;;  %vm757_vm11 = vmor %vm755_vm10, %vm756_vm9 }
 0xc6b   :  { %v752_v31 = vsub.f32 1.0, %v751_v29 }
 0xc6c   :  { %v819_v30 = vmul.f32 %v2551_v24, %v818_v28 }
 0xc6d   :  { %v753_v35 = vmul.f32 %v2553_v27, %v752_v31 }
 0xc6e   :  { %v820_v32 = vadd.f32 %v2551_v24, %v819_v30 }
 0xc6f   :  { %v754_v39 = vadd.f32 %v2553_v27, %v753_v35 }
 0xc70   :  { %v824_v36 = vsel %vm823_vm7, %v2551_v24, %v820_v32 }
 0xc71   :  { %v829_v41 = vsel %vm826_vm8, %v828_v37, %v824_v36  ;;  %v758_v54 = vsel %vm757_vm11, %v2553_v27, %v754_v39  ;;  %vm2351_vm11 = vcmask 1044480  }
 0xc72   :  { %v763_v57 = vsel %vm760_vm12, %v762_v55, %v758_v54  ;;  %v835_v62 = vmul.f32 %v833_v61, %v829_v41 }
 0xc73   :  { %v766_v51 = vmul.f32 %v763_v57, %v3057_v0 }
 0xcb2   :  { %v838_v40 = vpop.permute.xlu1 %837 }
 0xcb3   :  { %v840_v45 = vmul.f32 %v838_v40, %v829_v41 }
 0xcb5   :  { %842 = vrot.lane.b32.xlu0 %v840_v45, %s2773_s16 }
 0xcb8   :  { %v769_v38 = vpop.permute.xlu2 %768 }
 0xcb9   :  { %v771_v42 = vmul.f32 %v769_v38, %v763_v57 }
 0xcbb   :  { %773 = vrot.lane.b32.xlu1 %v771_v42, %s2775_s30 }
 0xd27   :  { %v843_v44 = vpop.permute.xlu0 %842 }
 0xd28   :  { %v3107_v63 = vadd.f32 %v843_v44, %v835_v62 }
 0xd2a   :  { %2554 = vtanh.f32 %v3107_v63  ;;  %v973_v61 = vrot.slane %v3107_v63, 7 }
 0xd2d   :  { %v774_v2 = vpop.permute.xlu1 %773 }
 0xd2e   :  { %v3111_v3 = vadd.f32 %v774_v2, %v766_v51 }
 0xd30   :  { %v2555_v56 = vpop.eup %2554  ;;  %2556 = vtanh.f32 %v3111_v3 }
 0xd31   :  { %848 = vrot.lane.b32.xlu2 %v2555_v56, %s2772_s15 }
 0xd36   :  { %v2557_v6 = vpop.eup %2556 }
 0xd37   :  { %779 = vrot.lane.b32.xlu0 %v2557_v6, %s2770_s27 }
 0xd8b   :  { %v849_v1 = vpop.permute.xlu2 %848 }
 0xd8c   :  { %v851_v60 = vmul.f32 %v849_v1, %v829_v41 }
 0xd8e   :  { %v923_v8 = vrot.slane %v851_v60, 5  ;;  %853 = vrot.lane.b32.xlu2 %v851_v60, %s2773_s16 }
 0xd90   :  { %924 = vrot.lane.b32.xlu1 %v923_v8, %s2773_s16 }
 0xda9   :  { %v780_v11 = vpop.permute.xlu0 %779 }
 0xdaa   :  { %v782_v0 = vmul.f32 %v780_v11, %v763_v57 }
 0xdac   :  { %v857_v58 = vrot.slane %v782_v0, 3  ;;  %v2321_v12 = vrot.slane %v782_v0, 4 }
 0xdae   :  { %v3120_v13 = vsel %vm165_vm4, %v3069_v52, %v2321_v12  ;;  %858 = vrot.lane.b32.xlu0 %v857_v58, %s2776_s7 }
 0xde8   :  { %v854_v52 = vpop.permute.xlu2 %853 }
 0xe02   :  { %v925_v4 = vpop.permute.xlu1 %924 }
 0xe03   :  { %2409 = vmatmul.msk.f32.vlgmr.msra.gmra.mxu3 %vm94_vm5, %v925_v4 }
 0xe04   :  { %1492 = vmatpush.msra.mxu3 %v3084_v14 }
 0xe06   :  { %1493 = vmatpush.msra.mxu3 %v3090_v47 }
 0xe08   :  { %1494 = vmatpush.msra.mxu3 %v3096_v48 }
 0xe0a   :  { %1495 = vmatpush.msra.mxu3 %v3130_v5 }
 0xe20   :  { %v859_v10 = vpop.permute.xlu0 %858 }
 0xe21   :  { %v861_v7 = vsel %vm94_vm5, %v854_v52, %v859_v10  ;;  %v3166_v10 = vld [vmem:[%s3522_s4 + $0x20] sm:$0xf] }
 0xe22   :  { %v863_v49 = vrot.slane %v861_v7, 5  ;;  %v3173_v7 = vld [vmem:[%s3522_s4 + $0x18] sm:$0xff] }
 0xe24   :  { %2407 = vmatmul.msk.f32.vlgmr.msrb.gmra.mxu2 %vm161_vm6, %v863_v49  ;;  %v3185_v49 = vld [vmem:[%s3522_s4 + $0x8] sm:$0xff] }
 0xe25   :  { %1352 = vmatpush.msrb.mxu2 %v3084_v14 }
 0xe27   :  { %1353 = vmatpush.msrb.mxu2 %v3090_v47 }
 0xe29   :  { %1354 = vmatpush.msrb.mxu2 %v3096_v48 }
 0xe2b   :  { %1355 = vmatpush.msrb.mxu2 %v3130_v5 }
 0xe86   :  { %v945_v50 = vpop.f32.mrf.mxu3 }
 0xe87   :  { %v949_v53 = vrot.slane %v945_v50, 2  ;;  %v3191_v50 = vld [vmem:[%s3522_s4] sm:$0xff] }
 0xe89   :  { %v951_v15 = vadd.f32 %v949_v53, %v2855_v25 }
 0xe8b   :  { %2558 = vtanh.f32 %v951_v15  ;;  %v2410_v20 = vmul.f32 -1.442695, %v951_v15 }
 0xe91   :  { %v2559_v16 = vpop.eup %2558 }
 0xe92   :  { %977 = vrot.lane.b32.xlu1 %v2559_v16, %s2772_s15 }
 0xea7   :  { %v883_v17 = vpop.f32.mrf.mxu2 }
 0xea8   :  { %v884_v18 = vadd.f32 %v883_v17, %v2941_v59 }
 0xeaa   :  { %2560 = vtanh.f32 %v884_v18  ;;  %v2408_v21 = vmul.f32 -1.442695, %v884_v18 }
 0xeab   :  { %2562 = vpow2.f32 %v2410_v20 }
 0xeac   :  { %2564 = vpow2.f32 %v2408_v21 }
 0xeb0   :  { %v2561_v19 = vpop.eup %2560 }
 0xeb1   :  { %908 = vrot.lane.b32.xlu2 %v2561_v19, %s2774_s1  ;;  %v2563_v9 = vpop.eup %2562 }
 0xeb2   :  { %v955_v22 = vadd.f32 1.0, %v2563_v9  ;;  %v2565_v23 = vpop.eup %2564 }
 0xeb3   :  { %v889_v24 = vadd.f32 1.0, %v2565_v23 }
 0xeb4   :  { %2566 = vrcp.f32 %v955_v22  ;;  %v967_v33 = vand.u32 2147483648, %v955_v22  ;;  %vm961_vm14 = vweird.f32 %v955_v22  ;;  %v965_v34 = vand.u32 2147483647, %v955_v22 }
 0xeb5   :  { %2568 = vrcp.f32 %v889_v24  ;;  %v901_v45 = vand.u32 2147483648, %v889_v24  ;;  %vm895_vm8 = vweird.f32 %v889_v24  ;;  %v899_v46 = vand.u32 2147483647, %v889_v24 }
 0xeb6   :  { %v968_v37 = vor.u32 1.1754944e-38, %v967_v33  ;;  %vm966_vm1 = vcmp.eq.f32.partialorder %v965_v34, 8.507059e+37 }
 0xeb7   :  { %v902_v55 = vor.u32 1.1754944e-38, %v901_v45  ;;  %vm900_vm10 = vcmp.eq.f32.partialorder %v899_v46, 8.507059e+37 }
 0xeba   :  { %v2567_v26 = vpop.eup %2566 }
 0xebb   :  { %v957_v27 = vmul.f32 %v2567_v26, %v955_v22  ;;  %v2569_v28 = vpop.eup %2568  ;;  %vm962_vm13 = vweird.f32 %v2567_v26  ;;  %v3205_v22 = vld [vmem:[%s3523_s5] sm:$0x1] }
 0xebc   :  { %v891_v30 = vmul.f32 %v2569_v28, %v889_v24  ;;  %vm963_vm0 = vmor %vm961_vm14, %vm962_vm13  ;;  %vm896_vm7 = vweird.f32 %v2569_v28 }
 0xebd   :  { %v958_v29 = vsub.f32 1.0, %v957_v27  ;;  %vm897_vm9 = vmor %vm895_vm8, %vm896_vm7 }
 0xebe   :  { %v892_v31 = vsub.f32 1.0, %v891_v30 }
 0xebf   :  { %v959_v59 = vmul.f32 %v2567_v26, %v958_v29 }
 0xec0   :  { %v893_v35 = vmul.f32 %v2569_v28, %v892_v31 }
 0xec1   :  { %v960_v32 = vadd.f32 %v2567_v26, %v959_v59 }
 0xec2   :  { %v894_v41 = vadd.f32 %v2569_v28, %v893_v35 }
 0xec3   :  { %v964_v36 = vsel %vm963_vm0, %v2567_v26, %v960_v32 }
 0xec4   :  { %v969_v40 = vsel %vm966_vm1, %v968_v37, %v964_v36  ;;  %v898_v54 = vsel %vm897_vm9, %v2569_v28, %v894_v41 }
 0xec5   :  { %v903_v57 = vsel %vm900_vm10, %v902_v55, %v898_v54  ;;  %v975_v62 = vmul.f32 %v973_v61, %v969_v40  ;;  %vm2353_vm10 = vcmask 1045504  }
 0xec6   :  { %v906_v2 = vmul.f32 %v903_v57, %v3111_v3 }
 0xf04   :  { %v978_v39 = vpop.permute.xlu1 %977 }
 0xf05   :  { %v980_v43 = vmul.f32 %v978_v39, %v969_v40 }
 0xf07   :  { %982 = vrot.lane.b32.xlu0 %v980_v43, %s2773_s16 }
 0xf0b   :  { %v909_v38 = vpop.permute.xlu2 %908 }
 0xf0c   :  { %v911_v42 = vmul.f32 %v909_v38, %v903_v57 }
 0xf0e   :  { %913 = vrot.lane.b32.xlu1 %v911_v42, %s2775_s30 }
 0xf79   :  { %v983_v44 = vpop.permute.xlu0 %982 }
 0xf7a   :  { %v3146_v51 = vadd.f32 %v983_v44, %v975_v62 }
 0xf7c   :  { %2570 = vtanh.f32 %v3146_v51 }
 0xf80   :  { %v914_v56 = vpop.permute.xlu1 %913 }
 0xf81   :  { %v3150_v6 = vadd.f32 %v914_v56, %v906_v2 }
 0xf82   :  { %v2571_v1 = vpop.eup %2570 }
 0xf83   :  { %2572 = vtanh.f32 %v3150_v6  ;;  %988 = vrot.lane.b32.xlu2 %v2571_v1, %s2772_s15  ;;  %v1113_v1 = vrot.slane %v3146_v51, 7 }
 0xf89   :  { %v2573_v60 = vpop.eup %2572 }
 0xf8a   :  { %919 = vrot.lane.b32.xlu0 %v2573_v60, %s2770_s27 }
 0xfdd   :  { %v989_v63 = vpop.permute.xlu2 %988 }
 0xfde   :  { %v991_v8 = vmul.f32 %v989_v63, %v969_v40 }
 0xfe0   :  { %v1063_v11 = vrot.slane %v991_v8, 6  ;;  %993 = vrot.lane.b32.xlu2 %v991_v8, %s2773_s16 }
 0xfe2   :  { %1064 = vrot.lane.b32.xlu1 %v1063_v11, %s2773_s16 }
 0xffc   :  { %v920_v0 = vpop.permute.xlu0 %919 }
 0xffd   :  { %v922_v3 = vmul.f32 %v920_v0, %v903_v57 }
 0xfff   :  { %v997_v58 = vrot.slane %v922_v3, 2  ;;  %v2323_v12 = vrot.slane %v922_v3, 3 }
0x1001   :  { %998 = vrot.lane.b32.xlu0 %v997_v58, %s2776_s7  ;;  %v3160_v4 = vsel %vm2351_vm11, %v3120_v13, %v2323_v12  ;;  %v3179_v13 = vld [vmem:[%s3522_s4 + $0x10] sm:$0xff] }
0x103a   :  { %v994_v53 = vpop.permute.xlu2 %993 }
0x1054   :  { %v1065_v52 = vpop.permute.xlu1 %1064 }
0x1055   :  { %2414 = vmatmul.msk.f32.vlgmr.msra.gmra.mxu2 %vm94_vm5, %v1065_v52 }
0x1056   :  { %2431 = vmatpush.msk.msra.mxu2 %vm165_vm4, %v3166_v10 }
0x1058   :  { %1570 = vmatpush.msra.mxu2 %v3173_v7 }
0x105a   :  { %1571 = vmatpush.msra.mxu2 %v3179_v13 }
0x105c   :  { %1572 = vmatpush.msra.mxu2 %v3185_v49 }
0x105e   :  { %1573 = vmatpush.msra.mxu2 %v3191_v50 }
0x1073   :  { %v999_v15 = vpop.permute.xlu0 %998 }
0x1074   :  { %v1001_v16 = vsel %vm94_vm5, %v994_v53, %v999_v15 }
0x1075   :  { %v1003_v17 = vrot.slane %v1001_v16, 6 }
0x1077   :  { %2412 = vmatmul.msk.f32.vlgmr.msra.gmra.mxu1 %vm161_vm6, %v1003_v17 }
0x1078   :  { %1632 = vmatpush.msra.mxu1 %v3084_v14 }
0x107a   :  { %1633 = vmatpush.msra.mxu1 %v3090_v47 }
0x107c   :  { %1634 = vmatpush.msra.mxu1 %v3096_v48 }
0x107e   :  { %1635 = vmatpush.msra.mxu1 %v3130_v5 }
0x10d8   :  { %v1085_v18 = vpop.f32.mrf.mxu2 }
0x10d9   :  { %v1089_v19 = vrot.slane %v1085_v18, 1 }
0x10db   :  { %v1091_v20 = vadd.f32 %v1089_v19, %v2855_v25  ;;  %v50_v19 = vld [vmem:[%s3518_s0 + $0x8] sm:$0xff] }
0x10dc   :  { %90 = vmatmul.f32.gmra.mxu0 %v50_v19 }
0x10dd   :  { %2574 = vtanh.f32 %v1091_v20  ;;  %v2415_v26 = vmul.f32 -1.442695, %v1091_v20 }
0x10e3   :  { %v2575_v21 = vpop.eup %2574 }
0x10e4   :  { %1117 = vrot.lane.b32.xlu1 %v2575_v21, %s2772_s15 }
0x10f4   :  { %v1023_v9 = vpop.f32.mrf.mxu1 }
0x10f5   :  { %v1024_v23 = vadd.f32 %v3205_v22, %v1023_v9 }
0x10f7   :  { %2576 = vtanh.f32 %v1024_v23  ;;  %v2413_v27 = vmul.f32 -1.442695, %v1024_v23 }
0x10f8   :  { %2578 = vpow2.f32 %v2415_v26  ;;  %v2736_v26 = vld [vmem:[%s3521_s3] ss:$0 sm:$0xff] }
0x10f9   :  { %2580 = vpow2.f32 %v2413_v27 }
0x10fd   :  { %v2577_v24 = vpop.eup %2576 }
0x10fe   :  { %1048 = vrot.lane.b32.xlu2 %v2577_v24, %s2774_s1  ;;  %v2579_v25 = vpop.eup %2578 }
0x10ff   :  { %v2581_v28 = vpop.eup %2580  ;;  %v1095_v29 = vadd.f32 1.0, %v2579_v25 }
0x1100   :  { %v1029_v30 = vadd.f32 1.0, %v2581_v28 }
0x1101   :  { %2582 = vrcp.f32 %v1095_v29  ;;  %v1107_v40 = vand.u32 2147483648, %v1095_v29  ;;  %vm1101_vm13 = vweird.f32 %v1095_v29  ;;  %v1105_v41 = vand.u32 2147483647, %v1095_v29 }
0x1102   :  { %2584 = vrcp.f32 %v1029_v30  ;;  %v1041_v45 = vand.u32 2147483648, %v1029_v30  ;;  %vm1035_vm1 = vweird.f32 %v1029_v30  ;;  %v1039_v54 = vand.u32 2147483647, %v1029_v30 }
0x1103   :  { %v1108_v55 = vor.u32 1.1754944e-38, %v1107_v40  ;;  %vm1106_vm8 = vcmp.eq.f32.partialorder %v1105_v41, 8.507059e+37 }
0x1104   :  { %v1042_v61 = vor.u32 1.1754944e-38, %v1041_v45  ;;  %vm1040_vm9 = vcmp.eq.f32.partialorder %v1039_v54, 8.507059e+37 }
0x1107   :  { %v2583_v59 = vpop.eup %2582 }
0x1108   :  { %v2585_v31 = vpop.eup %2584  ;;  %v1097_v32 = vmul.f32 %v2583_v59, %v1095_v29  ;;  %vm1102_vm12 = vweird.f32 %v2583_v59 }
0x1109   :  { %v1031_v33 = vmul.f32 %v2585_v31, %v1029_v30  ;;  %vm1036_vm14 = vweird.f32 %v2585_v31  ;;  %vm1103_vm0 = vmor %vm1101_vm13, %vm1102_vm12 }
0x110a   :  { %v1098_v34 = vsub.f32 1.0, %v1097_v32  ;;  %vm1037_vm7 = vmor %vm1035_vm1, %vm1036_vm14 }
0x110b   :  { %v1032_v35 = vsub.f32 1.0, %v1031_v33 }
0x110c   :  { %v1099_v36 = vmul.f32 %v2583_v59, %v1098_v34 }
0x110d   :  { %v1033_v37 = vmul.f32 %v2585_v31, %v1032_v35 }
0x110e   :  { %v1100_v39 = vadd.f32 %v2583_v59, %v1099_v36 }
0x110f   :  { %v1034_v43 = vadd.f32 %v2585_v31, %v1033_v37 }
0x1110   :  { %v1104_v46 = vsel %vm1103_vm0, %v2583_v59, %v1100_v39 }
0x1111   :  { %v1038_v38 = vsel %vm1037_vm7, %v2585_v31, %v1034_v43  ;;  %v1109_v42 = vsel %vm1106_vm8, %v1108_v55, %v1104_v46 }
0x1112   :  { %v1043_v2 = vsel %vm1040_vm9, %v1042_v61, %v1038_v38  ;;  %v1115_v60 = vmul.f32 %v1113_v1, %v1109_v42 }
0x1113   :  { %v1046_v11 = vmul.f32 %v1043_v2, %v3150_v6 }
0x1156   :  { %v1118_v57 = vpop.permute.xlu1 %1117 }
0x1157   :  { %v1120_v62 = vmul.f32 %v1118_v57, %v1109_v42 }
0x1158   :  { %v1049_v44 = vpop.permute.xlu2 %1048 }
0x1159   :  { %v1051_v56 = vmul.f32 %v1049_v44, %v1043_v2  ;;  %1122 = vrot.lane.b32.xlu0 %v1120_v62, %s2773_s16  ;;  %v91_v24 = vpop.f32.mrf.mxu0 }
0x115a   :  { %v3247_v27 = vadd.f32 %v2736_v26, %v91_v24 }
0x115b   :  { %1053 = vrot.lane.b32.xlu1 %v1051_v56, %s2775_s30 }
0x11cb   :  { %v1123_v63 = vpop.permute.xlu0 %1122 }
0x11cc   :  { %v3212_v8 = vadd.f32 %v1123_v63, %v1115_v60 }
0x11cd   :  { %v1054_v0 = vpop.permute.xlu1 %1053 }
0x11ce   :  { %2586 = vtanh.f32 %v3212_v8  ;;  %v3216_v3 = vadd.f32 %v1054_v0, %v1046_v11 }
0x11d0   :  { %2588 = vtanh.f32 %v3216_v3 }
0x11d4   :  { %v2587_v58 = vpop.eup %2586 }
0x11d5   :  { %1128 = vrot.lane.b32.xlu2 %v2587_v58, %s2772_s15 }
0x11d6   :  { %v2589_v12 = vpop.eup %2588 }
0x11d7   :  { %1059 = vrot.lane.b32.xlu0 %v2589_v12, %s2770_s27 }
0x122f   :  { %v1129_v51 = vpop.permute.xlu2 %1128 }
0x1230   :  { %v1131_v52 = vmul.f32 %v1129_v51, %v1109_v42 }
0x1232   :  { %v1203_v53 = vrot.slane %v1131_v52, 7  ;;  %1133 = vrot.lane.b32.xlu2 %v1131_v52, %s2773_s16  ;;  %v1250_v52 = vrot.slane %v3212_v8, 7 }
0x1234   :  { %1204 = vrot.lane.b32.xlu1 %v1203_v53, %s2773_s16 }
0x1249   :  { %v1060_v6 = vpop.permute.xlu0 %1059 }
0x124a   :  { %v1062_v15 = vmul.f32 %v1060_v6, %v1043_v2 }
0x124c   :  { %v1137_v16 = vrot.slane %v1062_v15, 1  ;;  %v2325_v17 = vrot.slane %v1062_v15, 2 }
0x124e   :  { %1138 = vrot.lane.b32.xlu0 %v1137_v16, %s2776_s7  ;;  %v3226_v18 = vsel %vm2353_vm10, %v3160_v4, %v2325_v17 }
0x128c   :  { %v1134_v21 = vpop.permute.xlu2 %1133 }
0x12a6   :  { %v1205_v20 = vpop.permute.xlu1 %1204 }
0x12a7   :  { %2419 = vmatmul.msk.f32.vlgmr.msrb.gmra.mxu3 %vm94_vm5, %v1205_v20 }
0x12a8   :  { %1772 = vmatpush.msrb.mxu3 %v3084_v14 }
0x12aa   :  { %1773 = vmatpush.msrb.mxu3 %v3090_v47 }
0x12ac   :  { %1774 = vmatpush.msrb.mxu3 %v3096_v48 }
0x12ae   :  { %1775 = vmatpush.msrb.mxu3 %v3130_v5 }
0x12c0   :  { %v1139_v9 = vpop.permute.xlu0 %1138 }
0x12c1   :  { %v1141_v4 = vsel %vm94_vm5, %v1134_v21, %v1139_v9 }
0x12c2   :  { %v1143_v23 = vrot.slane %v1141_v4, 7 }
0x12c4   :  { %2417 = vmatmul.msk.f32.vlgmr.msrb.gmra.mxu0 %vm161_vm6, %v1143_v23 }
0x12c5   :  { %2436 = vmatpush.msk.msrb.mxu0 %vm165_vm4, %v3166_v10 }
0x12c7   :  { %1710 = vmatpush.msrb.mxu0 %v3173_v7 }
0x12c9   :  { %1711 = vmatpush.msrb.mxu0 %v3179_v13 }
0x12cb   :  { %1712 = vmatpush.msrb.mxu0 %v3185_v49 }
0x12cd   :  { %1713 = vmatpush.msrb.mxu0 %v3191_v50 }
0x132a   :  { %v1225_v25 = vpop.f32.mrf.mxu3 }
0x132b   :  { %v1228_v28 = vadd.f32 %v1225_v25, %v3247_v27 }
0x132d   :  { %2590 = vtanh.f32 %v1228_v28  ;;  %v2420_v33 = vmul.f32 -1.442695, %v1228_v28 }
0x1333   :  { %v2591_v29 = vpop.eup %2590 }
0x1334   :  { %1254 = vrot.lane.b32.xlu1 %v2591_v29, %s2772_s15 }
0x1341   :  { %v1163_v30 = vpop.f32.mrf.mxu0 }
0x1342   :  { %v1164_v59 = vadd.f32 %v3205_v22, %v1163_v30 }
0x1344   :  { %2592 = vtanh.f32 %v1164_v59  ;;  %v2418_v32 = vmul.f32 -1.442695, %v1164_v59 }
0x1346   :  { %2594 = vpow2.f32 %v2418_v32 }
0x1347   :  { %2596 = vpow2.f32 %v2420_v33 }
0x134a   :  { %v2593_v31 = vpop.eup %2592 }
0x134b   :  { %1188 = vrot.lane.b32.xlu2 %v2593_v31, %s2774_s1 }
0x134c   :  { %v2595_v34 = vpop.eup %2594 }
0x134d   :  { %v2597_v35 = vpop.eup %2596  ;;  %v1169_v36 = vadd.f32 1.0, %v2595_v34 }
0x134e   :  { %v1232_v37 = vadd.f32 1.0, %v2597_v35 }
0x134f   :  { %2598 = vrcp.f32 %v1169_v36  ;;  %v1181_v57 = vand.u32 2147483648, %v1169_v36  ;;  %vm1175_vm14 = vweird.f32 %v1169_v36  ;;  %v1179_v61 = vand.u32 2147483647, %v1169_v36 }
0x1350   :  { %2600 = vrcp.f32 %v1232_v37  ;;  %v1244_v62 = vand.u32 2147483648, %v1232_v37  ;;  %vm1238_vm1 = vweird.f32 %v1232_v37  ;;  %v1242_v44 = vand.u32 2147483647, %v1232_v37 }
0x1351   :  { %v1182_v56 = vor.u32 1.1754944e-38, %v1181_v57  ;;  %vm1180_vm8 = vcmp.eq.f32.partialorder %v1179_v61, 8.507059e+37 }
0x1352   :  { %v1245_v60 = vor.u32 1.1754944e-38, %v1244_v62  ;;  %vm1243_vm9 = vcmp.eq.f32.partialorder %v1242_v44, 8.507059e+37 }
0x1355   :  { %v2599_v39 = vpop.eup %2598 }
0x1356   :  { %v2601_v40 = vpop.eup %2600  ;;  %v1171_v41 = vmul.f32 %v2599_v39, %v1169_v36  ;;  %vm1176_vm12 = vweird.f32 %v2599_v39 }
0x1357   :  { %v1234_v43 = vmul.f32 %v2601_v40, %v1232_v37  ;;  %vm1239_vm13 = vweird.f32 %v2601_v40  ;;  %vm1177_vm0 = vmor %vm1175_vm14, %vm1176_vm12  ;;  %vm3525_vm12 = vcmask 1046528  }
0x1358   :  { %v1172_v45 = vsub.f32 1.0, %v1171_v41  ;;  %vm1240_vm7 = vmor %vm1238_vm1, %vm1239_vm13 }
0x1359   :  { %v1235_v46 = vsub.f32 1.0, %v1234_v43 }
0x135a   :  { %v1173_v54 = vmul.f32 %v2599_v39, %v1172_v45 }
0x135b   :  { %v1236_v55 = vmul.f32 %v2601_v40, %v1235_v46 }
0x135c   :  { %v1174_v38 = vadd.f32 %v2599_v39, %v1173_v54 }
0x135d   :  { %v1237_v42 = vadd.f32 %v2601_v40, %v1236_v55 }
0x135e   :  { %v1178_v2 = vsel %vm1177_vm0, %v2599_v39, %v1174_v38 }
0x135f   :  { %v1241_v1 = vsel %vm1240_vm7, %v2601_v40, %v1237_v42  ;;  %v1183_v11 = vsel %vm1180_vm8, %v1182_v56, %v1178_v2 }
0x1360   :  { %v1246_v12 = vsel %vm1243_vm9, %v1245_v60, %v1241_v1  ;;  %v1186_v53 = vmul.f32 %v1183_v11, %v3216_v3 }
0x1361   :  { %v1252_v15 = vmul.f32 %v1250_v52, %v1246_v12 }
0x13a5   :  { %v1189_v63 = vpop.permute.xlu2 %1188 }
0x13a6   :  { %v1191_v0 = vmul.f32 %v1189_v63, %v1183_v11  ;;  %v1255_v58 = vpop.permute.xlu1 %1254 }
0x13a7   :  { %v1257_v51 = vmul.f32 %v1255_v58, %v1246_v12 }
0x13a8   :  { %1193 = vrot.lane.b32.xlu1 %v1191_v0, %s2775_s30 }
0x13a9   :  { %1259 = vrot.lane.b32.xlu0 %v1257_v51, %s2773_s16 }
0x141a   :  { %v1194_v6 = vpop.permute.xlu1 %1193 }
0x141b   :  { %v3257_v16 = vadd.f32 %v1194_v6, %v1186_v53  ;;  %v1260_v17 = vpop.permute.xlu0 %1259 }
0x141c   :  { %v3259_v19 = vadd.f32 %v1260_v17, %v1252_v15 }
0x141d   :  { %2602 = vtanh.f32 %v3257_v16 }
0x141e   :  { %2604 = vtanh.f32 %v3259_v19  ;;  %v1385_v51 = vrot.slane %v3259_v19, 7 }
0x1423   :  { %v2603_v20 = vpop.eup %2602 }
0x1424   :  { %v2605_v21 = vpop.eup %2604  ;;  %1199 = vrot.lane.b32.xlu0 %v2603_v20, %s2770_s27 }
0x1425   :  { %1265 = vrot.lane.b32.xlu2 %v2605_v21, %s2772_s15 }
0x147f   :  { %v1266_v8 = vpop.permute.xlu2 %1265 }
0x1480   :  { %v1268_v9 = vmul.f32 %v1266_v8, %v1246_v12 }
0x1482   :  { %1270 = vrot.lane.b32.xlu1 %v1268_v9, %s2773_s16 }
0x1496   :  { %v1200_v3 = vpop.permute.xlu0 %1199 }
0x1497   :  { %v1202_v4 = vmul.f32 %v1200_v3, %v1183_v11 }
0x1499   :  { %v2327_v23 = vrot.slane %v1202_v4, 1  ;;  %1274 = vrot.lane.b32.xlu2 %v1202_v4, %s2776_s7 }
0x149b   :  { %v3269_v24 = vsel %vm3525_vm12, %v3226_v18, %v2327_v23 }
0x14f3   :  { %v1275_v26 = vpop.permute.xlu2 %1274 }
0x14f4   :  { %v1271_v25 = vpop.permute.xlu1 %1270 }
0x14f5   :  { %v1277_v28 = vsel %vm94_vm5, %v1271_v25, %v1275_v26  ;;  %2424 = vmatmul.msk.f32.vlgmr.msrb.gmra.mxu2 %vm94_vm5, %v1271_v25 }
0x14f6   :  { %2422 = vmatmul.msk.f32.vlgmr.msrb.gmra.mxu1 %vm161_vm6, %v1277_v28  ;;  %1912 = vmatpush.msrb.mxu2 %v3084_v14 }
0x14f7   :  { %2441 = vmatpush.msk.msrb.mxu1 %vm165_vm4, %v3166_v10 }
0x14f8   :  { %1913 = vmatpush.msrb.mxu2 %v3090_v47 }
0x14f9   :  { %1850 = vmatpush.msrb.mxu1 %v3173_v7 }
0x14fa   :  { %1914 = vmatpush.msrb.mxu2 %v3096_v48 }
0x14fb   :  { %1851 = vmatpush.msrb.mxu1 %v3179_v13 }
0x14fc   :  { %1915 = vmatpush.msrb.mxu2 %v3130_v5 }
0x14fd   :  { %1852 = vmatpush.msrb.mxu1 %v3185_v49 }
0x14ff   :  { %1853 = vmatpush.msrb.mxu1 %v3191_v50 }
0x1573   :  { %v1298_v18 = vpop.f32.mrf.mxu1 }
0x1574   :  { %v1299_v14 = vadd.f32 %v3205_v22, %v1298_v18 }
0x1576   :  { %2606 = vtanh.f32 %v1299_v14  ;;  %v2423_v31 = vmul.f32 -1.442695, %v1299_v14 }
0x1578   :  { %v1357_v29 = vpop.f32.mrf.mxu2 }
0x1579   :  { %v1361_v30 = vrot.slane %v1357_v29, 7 }
0x157b   :  { %v1363_v47 = vadd.f32 %v1361_v30, %v3247_v27 }
0x157c   :  { %v2607_v59 = vpop.eup %2606 }
0x157d   :  { %2608 = vtanh.f32 %v1363_v47  ;;  %1323 = vrot.lane.b32.xlu1 %v2607_v59, %s2774_s1  ;;  %v2425_v32 = vmul.f32 -1.442695, %v1363_v47 }
0x157e   :  { %2610 = vpow2.f32 %v2423_v31 }
0x157f   :  { %2612 = vpow2.f32 %v2425_v32 }
0x1583   :  { %v2609_v48 = vpop.eup %2608 }
0x1584   :  { %1389 = vrot.lane.b32.xlu0 %v2609_v48, %s2772_s15  ;;  %v2611_v33 = vpop.eup %2610 }
0x1585   :  { %v1304_v34 = vadd.f32 1.0, %v2611_v33  ;;  %v2613_v35 = vpop.eup %2612 }
0x1586   :  { %v1367_v36 = vadd.f32 1.0, %v2613_v35 }
0x1587   :  { %2614 = vrcp.f32 %v1304_v34  ;;  %v1316_v55 = vand.u32 2147483648, %v1304_v34  ;;  %vm1310_vm14 = vweird.f32 %v1304_v34  ;;  %v1314_v38 = vand.u32 2147483647, %v1304_v34 }
0x1588   :  { %2616 = vrcp.f32 %v1367_v36  ;;  %v1379_v1 = vand.u32 2147483648, %v1367_v36  ;;  %vm1373_vm8 = vweird.f32 %v1367_v36  ;;  %v1377_v60 = vand.u32 2147483647, %v1367_v36 }
0x1589   :  { %v1317_v61 = vor.u32 1.1754944e-38, %v1316_v55  ;;  %vm1315_vm1 = vcmp.eq.f32.partialorder %v1314_v38, 8.507059e+37 }
0x158a   :  { %v1380_v11 = vor.u32 1.1754944e-38, %v1379_v1  ;;  %vm1378_vm12 = vcmp.eq.f32.partialorder %v1377_v60, 8.507059e+37 }
0x158d   :  { %v2615_v37 = vpop.eup %2614 }
0x158e   :  { %v1306_v39 = vmul.f32 %v2615_v37, %v1304_v34  ;;  %v2617_v40 = vpop.eup %2616  ;;  %vm1311_vm13 = vweird.f32 %v2615_v37 }
0x158f   :  { %v1369_v43 = vmul.f32 %v2617_v40, %v1367_v36  ;;  %vm1312_vm0 = vmor %vm1310_vm14, %vm1311_vm13  ;;  %vm1374_vm7 = vweird.f32 %v2617_v40 }
0x1590   :  { %v1307_v41 = vsub.f32 1.0, %v1306_v39  ;;  %vm1375_vm9 = vmor %vm1373_vm8, %vm1374_vm7 }
0x1591   :  { %v1370_v46 = vsub.f32 1.0, %v1369_v43 }
0x1592   :  { %v1308_v45 = vmul.f32 %v2615_v37, %v1307_v41 }
0x1593   :  { %v1371_v57 = vmul.f32 %v2617_v40, %v1370_v46 }
0x1594   :  { %v1309_v54 = vadd.f32 %v2615_v37, %v1308_v45 }
0x1595   :  { %v1372_v2 = vadd.f32 %v2617_v40, %v1371_v57 }
0x1596   :  { %v1313_v42 = vsel %vm1312_vm0, %v2615_v37, %v1309_v54 }
0x1597   :  { %v1318_v44 = vsel %vm1315_vm1, %v1317_v61, %v1313_v42  ;;  %v1376_v63 = vsel %vm1375_vm9, %v2617_v40, %v1372_v2 }
0x1598   :  { %v1381_v0 = vsel %vm1378_vm12, %v1380_v11, %v1376_v63  ;;  %v1321_v17 = vmul.f32 %v1318_v44, %v3257_v16 }
0x1599   :  { %v1387_v52 = vmul.f32 %v1385_v51, %v1381_v0 }
0x15ef   :  { %v1324_v62 = vpop.permute.xlu1 %1323 }
0x15f0   :  { %v1326_v56 = vmul.f32 %v1324_v62, %v1318_v44 }
0x15f2   :  { %1328 = vrot.lane.b32.xlu0 %v1326_v56, %s2775_s30 }
0x15f6   :  { %v1390_v58 = vpop.permute.xlu0 %1389 }
0x15f7   :  { %v1392_v12 = vmul.f32 %v1390_v58, %v1381_v0 }
0x15f9   :  { %1394 = vrot.lane.b32.xlu2 %v1392_v12, %s2773_s16 }
0x1653   :  { %v1395_v53 = vpop.permute.xlu2 %1394 }
0x1654   :  { %v3291_v6 = vadd.f32 %v1395_v53, %v1387_v52 }
0x1656   :  { %2618 = vtanh.f32 %v3291_v6  ;;  %v1525_v53 = vrot.slane %v3291_v6, 7 }
0x165c   :  { %v2619_v15 = vpop.eup %2618 }
0x165d   :  { %1400 = vrot.lane.b32.xlu1 %v2619_v15, %s2772_s15 }
0x1664   :  { %v1329_v20 = vpop.permute.xlu0 %1328 }
0x1665   :  { %v3296_v21 = vadd.f32 %v1329_v20, %v1321_v17 }
0x1667   :  { %2620 = vtanh.f32 %v3296_v21 }
0x166d   :  { %v2621_v8 = vpop.eup %2620 }
0x166e   :  { %1334 = vrot.lane.b32.xlu2 %v2621_v8, %s2770_s27 }
0x16c8   :  { %v1335_v19 = vpop.permute.xlu2 %1334 }
0x16c9   :  { %v3300_v9 = vmul.f32 %v1335_v19, %v1318_v44 }
0x16cb   :  { %v1409_v3 = vrot.slane %v3300_v9, 7 }
0x16cd   :  { %1410 = vrot.lane.b32.xlu2 %v1409_v3, %s2776_s7 }
0x16cf   :  { %v1401_v4 = vpop.permute.xlu1 %1400 }
0x16d0   :  { %v1403_v23 = vmul.f32 %v1401_v4, %v1381_v0 }
0x16d2   :  { %v1475_v26 = vrot.slane %v1403_v23, 1  ;;  %1405 = vrot.lane.b32.xlu1 %v1403_v23, %s2773_s16 }
0x16d4   :  { %1476 = vrot.lane.b32.xlu0 %v1475_v26, %s2773_s16 }
0x1727   :  { %v1411_v16 = vpop.permute.xlu2 %1410 }
0x1744   :  { %v1406_v25 = vpop.permute.xlu1 %1405 }
0x1745   :  { %v1413_v28 = vsel %vm94_vm5, %v1406_v25, %v1411_v16 }
0x1746   :  { %v1415_v18 = vrot.slane %v1413_v28, 1  ;;  %v1477_v14 = vpop.permute.xlu0 %1476 }
0x1747   :  { %2429 = vmatmul.msk.f32.vlgmr.msra.gmra.mxu3 %vm94_vm5, %v1477_v14 }
0x1748   :  { %2427 = vmatmul.msk.f32.vlgmr.msra.gmra.mxu0 %vm161_vm6, %v1415_v18  ;;  %2446 = vmatpush.msk.msra.mxu3 %vm165_vm4, %v3166_v10 }
0x1749   :  { %2456 = vmatpush.msk.msra.mxu0 %vm165_vm4, %v3166_v10 }
0x174a   :  { %1990 = vmatpush.msra.mxu3 %v3173_v7 }
0x174b   :  { %2270 = vmatpush.msra.mxu0 %v3173_v7 }
0x174c   :  { %1991 = vmatpush.msra.mxu3 %v3179_v13 }
0x174d   :  { %2271 = vmatpush.msra.mxu0 %v3179_v13 }
0x174e   :  { %1992 = vmatpush.msra.mxu3 %v3185_v49 }
0x174f   :  { %2272 = vmatpush.msra.mxu0 %v3185_v49 }
0x1750   :  { %1993 = vmatpush.msra.mxu3 %v3191_v50 }
0x1751   :  { %2273 = vmatpush.msra.mxu0 %v3191_v50 }
0x17c5   :  { %v1435_v29 = vpop.f32.mrf.mxu0 }
0x17c6   :  { %v1436_v30 = vadd.f32 %v3205_v22, %v1435_v29 }
0x17c8   :  { %2622 = vtanh.f32 %v1436_v30  ;;  %v2428_v33 = vmul.f32 -1.442695, %v1436_v30 }
0x17ca   :  { %v1497_v47 = vpop.f32.mrf.mxu3 }
0x17cb   :  { %v1501_v59 = vrot.slane %v1497_v47, 6 }
0x17cd   :  { %v1503_v48 = vadd.f32 %v1501_v59, %v3247_v27  ;;  %v3349_v59 = vld [vmem:[%s3520_s2 + $0x18] sm:$0xff] }
0x17ce   :  { %v2623_v31 = vpop.eup %2622 }
0x17cf   :  { %2624 = vtanh.f32 %v1503_v48  ;;  %1460 = vrot.lane.b32.xlu1 %v2623_v31, %s2774_s1  ;;  %v2430_v34 = vmul.f32 -1.442695, %v1503_v48  ;;  %v3357_v48 = vld [vmem:[%s3520_s2 + $0x10] sm:$0xff]  ;;  %v3364_v31 = vld [vmem:[%s3520_s2 + $0x8] sm:$0xff] }
0x17d0   :  { %2626 = vpow2.f32 %v2428_v33 }
0x17d1   :  { %2628 = vpow2.f32 %v2430_v34 }
0x17d5   :  { %v2625_v32 = vpop.eup %2624 }
0x17d6   :  { %1529 = vrot.lane.b32.xlu0 %v2625_v32, %s2772_s15  ;;  %v2627_v35 = vpop.eup %2626 }
0x17d7   :  { %v1441_v36 = vadd.f32 1.0, %v2627_v35  ;;  %v2629_v37 = vpop.eup %2628 }
0x17d8   :  { %v1507_v39 = vadd.f32 1.0, %v2629_v37 }
0x17d9   :  { %2630 = vrcp.f32 %v1441_v36  ;;  %v1453_v57 = vand.u32 2147483648, %v1441_v36  ;;  %vm1447_vm13 = vweird.f32 %v1441_v36  ;;  %v1451_v42 = vand.u32 2147483647, %v1441_v36 }
0x17da   :  { %2632 = vrcp.f32 %v1507_v39  ;;  %v1519_v63 = vand.u32 2147483648, %v1507_v39  ;;  %vm1513_vm7 = vweird.f32 %v1507_v39  ;;  %v1517_v11 = vand.u32 2147483647, %v1507_v39 }
0x17db   :  { %v1454_v44 = vor.u32 1.1754944e-38, %v1453_v57  ;;  %vm1452_vm0 = vcmp.eq.f32.partialorder %v1451_v42, 8.507059e+37 }
0x17dc   :  { %v1520_v58 = vor.u32 1.1754944e-38, %v1519_v63  ;;  %vm1518_vm9 = vcmp.eq.f32.partialorder %v1517_v11, 8.507059e+37 }
0x17df   :  { %v2631_v40 = vpop.eup %2630 }
0x17e0   :  { %v1443_v41 = vmul.f32 %v2631_v40, %v1441_v36  ;;  %v2633_v43 = vpop.eup %2632  ;;  %vm1448_vm12 = vweird.f32 %v2631_v40 }
0x17e1   :  { %v1509_v46 = vmul.f32 %v2633_v43, %v1507_v39  ;;  %vm1449_vm14 = vmor %vm1447_vm13, %vm1448_vm12  ;;  %vm1514_vm1 = vweird.f32 %v2633_v43 }
0x17e2   :  { %v1444_v45 = vsub.f32 1.0, %v1443_v41  ;;  %vm1515_vm8 = vmor %vm1513_vm7, %vm1514_vm1 }
0x17e3   :  { %v1510_v55 = vsub.f32 1.0, %v1509_v46 }
0x17e4   :  { %v1445_v54 = vmul.f32 %v2631_v40, %v1444_v45 }
0x17e5   :  { %v1511_v61 = vmul.f32 %v2633_v43, %v1510_v55 }
0x17e6   :  { %v1446_v38 = vadd.f32 %v2631_v40, %v1445_v54 }
0x17e7   :  { %v1512_v1 = vadd.f32 %v2633_v43, %v1511_v61 }
0x17e8   :  { %v1450_v62 = vsel %vm1449_vm14, %v2631_v40, %v1446_v38 }
0x17e9   :  { %v1455_v56 = vsel %vm1452_vm0, %v1454_v44, %v1450_v62  ;;  %v1516_v0 = vsel %vm1515_vm8, %v2633_v43, %v1512_v1 }
0x17ea   :  { %v1521_v51 = vsel %vm1518_vm9, %v1520_v58, %v1516_v0  ;;  %v1458_v19 = vmul.f32 %v1455_v56, %v3296_v21 }
0x17eb   :  { %v1527_v15 = vmul.f32 %v1525_v53, %v1521_v51 }
0x1841   :  { %v1461_v2 = vpop.permute.xlu1 %1460 }
0x1842   :  { %v1463_v60 = vmul.f32 %v1461_v2, %v1455_v56 }
0x1844   :  { %1465 = vrot.lane.b32.xlu0 %v1463_v60, %s2775_s30 }
0x1848   :  { %v1530_v12 = vpop.permute.xlu0 %1529 }
0x1849   :  { %v1532_v52 = vmul.f32 %v1530_v12, %v1521_v51 }
0x184b   :  { %1534 = vrot.lane.b32.xlu2 %v1532_v52, %s2773_s16 }
0x18a5   :  { %v1535_v17 = vpop.permute.xlu2 %1534 }
0x18a6   :  { %v3328_v20 = vadd.f32 %v1535_v17, %v1527_v15 }
0x18a8   :  { %2634 = vtanh.f32 %v3328_v20  ;;  %v1665_v53 = vrot.slane %v3328_v20, 7 }
0x18ae   :  { %v2635_v8 = vpop.eup %2634 }
0x18af   :  { %1540 = vrot.lane.b32.xlu1 %v2635_v8, %s2772_s15 }
0x18b6   :  { %v1466_v3 = vpop.permute.xlu0 %1465 }
0x18b7   :  { %v3333_v4 = vadd.f32 %v1466_v3, %v1458_v19 }
0x18b9   :  { %2636 = vtanh.f32 %v3333_v4 }
0x18bf   :  { %v2637_v23 = vpop.eup %2636 }
0x18c0   :  { %1471 = vrot.lane.b32.xlu2 %v2637_v23, %s2770_s27 }
0x191a   :  { %v1472_v6 = vpop.permute.xlu2 %1471 }
0x191b   :  { %v3337_v26 = vmul.f32 %v1472_v6, %v1455_v56 }
0x191d   :  { %v1549_v16 = vrot.slane %v3337_v26, 6 }
0x191f   :  { %1550 = vrot.lane.b32.xlu2 %v1549_v16, %s2776_s7 }
0x1921   :  { %v1541_v25 = vpop.permute.xlu1 %1540 }
0x1922   :  { %v1543_v28 = vmul.f32 %v1541_v25, %v1521_v51 }
0x1924   :  { %v1615_v18 = vrot.slane %v1543_v28, 2  ;;  %1545 = vrot.lane.b32.xlu1 %v1543_v28, %s2773_s16 }
0x1926   :  { %1616 = vrot.lane.b32.xlu0 %v1615_v18, %s2773_s16  ;;  %v2329_v18 = vrot.slane %v3337_v26, 7 }
0x1979   :  { %v1551_v21 = vpop.permute.xlu2 %1550 }
0x1996   :  { %v1546_v14 = vpop.permute.xlu1 %1545 }
0x1997   :  { %v1553_v29 = vsel %vm94_vm5, %v1546_v14, %v1551_v21 }
0x1998   :  { %v1555_v30 = vrot.slane %v1553_v29, 2  ;;  %v1617_v47 = vpop.permute.xlu0 %1616 }
0x1999   :  { %2434 = vmatmul.msk.f32.vlgmr.msra.gmra.mxu1 %vm94_vm5, %v1617_v47 }
0x199a   :  { %2432 = vmatmul.msk.f32.vlgmr.msra.gmra.mxu2 %vm161_vm6, %v1555_v30  ;;  %2192 = vmatpush.msra.mxu1 %v3349_v59  ;;  %v2357_v30 = vsel %vm2344_vm2, %v3300_v9, %v2329_v18  ;;  %v2740_v9 = vld [vmem:[%s3520_s2] sm:$0xff] }
0x199b   :  { %2451 = vmatpush.msk.msra.mxu2 %vm165_vm4, %v3166_v10 }
0x199c   :  { %2193 = vmatpush.msra.mxu1 %v3357_v48 }
0x199d   :  { %2130 = vmatpush.msra.mxu2 %v3173_v7 }
0x199e   :  { %2194 = vmatpush.msra.mxu1 %v3364_v31 }
0x199f   :  { %2131 = vmatpush.msra.mxu2 %v3179_v13 }
0x19a0   :  { %2195 = vmatpush.msra.mxu1 %v3130_v5 }
0x19a1   :  { %2132 = vmatpush.msra.mxu2 %v3185_v49 }
0x19a3   :  { %2133 = vmatpush.msra.mxu2 %v3191_v50 }
0x1a16   :  { %v1637_v10 = vpop.f32.mrf.mxu1 }
0x1a17   :  { %v1641_v32 = vrot.slane %v1637_v10, 5 }
0x1a19   :  { %v1643_v33 = vadd.f32 %v1641_v32, %v3247_v27 }
0x1a1b   :  { %2638 = vtanh.f32 %v1643_v33  ;;  %v2435_v5 = vmul.f32 -1.442695, %v1643_v33 }
0x1a1d   :  { %v1575_v7 = vpop.f32.mrf.mxu2 }
0x1a1e   :  { %v1576_v34 = vadd.f32 %v3205_v22, %v1575_v7 }
0x1a20   :  { %2640 = vtanh.f32 %v1576_v34  ;;  %v2433_v13 = vmul.f32 -1.442695, %v1576_v34 }
0x1a21   :  { %v2639_v35 = vpop.eup %2638  ;;  %2642 = vpow2.f32 %v2435_v5 }
0x1a22   :  { %1669 = vrot.lane.b32.xlu0 %v2639_v35, %s2772_s15  ;;  %2644 = vpow2.f32 %v2433_v13 }
0x1a26   :  { %v2641_v36 = vpop.eup %2640 }
0x1a27   :  { %1600 = vrot.lane.b32.xlu1 %v2641_v36, %s2774_s1  ;;  %v2643_v49 = vpop.eup %2642 }
0x1a28   :  { %v1647_v50 = vadd.f32 1.0, %v2643_v49  ;;  %v2645_v37 = vpop.eup %2644 }
0x1a29   :  { %v1581_v39 = vadd.f32 1.0, %v2645_v37 }
0x1a2a   :  { %2646 = vrcp.f32 %v1647_v50  ;;  %v1659_v57 = vand.u32 2147483648, %v1647_v50  ;;  %vm1653_vm13 = vweird.f32 %v1647_v50  ;;  %v1657_v61 = vand.u32 2147483647, %v1647_v50 }
0x1a2b   :  { %2648 = vrcp.f32 %v1581_v39  ;;  %v1593_v56 = vand.u32 2147483648, %v1581_v39  ;;  %vm1587_vm7 = vweird.f32 %v1581_v39  ;;  %v1591_v63 = vand.u32 2147483647, %v1581_v39 }
0x1a2c   :  { %v1660_v44 = vor.u32 1.1754944e-38, %v1659_v57  ;;  %vm1658_vm1 = vcmp.eq.f32.partialorder %v1657_v61, 8.507059e+37 }
0x1a2d   :  { %v1594_v58 = vor.u32 1.1754944e-38, %v1593_v56  ;;  %vm1592_vm9 = vcmp.eq.f32.partialorder %v1591_v63, 8.507059e+37 }
0x1a30   :  { %v2647_v40 = vpop.eup %2646 }
0x1a31   :  { %v1649_v41 = vmul.f32 %v2647_v40, %v1647_v50  ;;  %v2649_v43 = vpop.eup %2648  ;;  %vm1654_vm12 = vweird.f32 %v2647_v40 }
0x1a32   :  { %v1583_v46 = vmul.f32 %v2649_v43, %v1581_v39  ;;  %vm1655_vm14 = vmor %vm1653_vm13, %vm1654_vm12  ;;  %vm1588_vm0 = vweird.f32 %v2649_v43 }
0x1a33   :  { %v1650_v45 = vsub.f32 1.0, %v1649_v41  ;;  %vm1589_vm8 = vmor %vm1587_vm7, %vm1588_vm0 }
0x1a34   :  { %v1584_v55 = vsub.f32 1.0, %v1583_v46 }
0x1a35   :  { %v1651_v54 = vmul.f32 %v2647_v40, %v1650_v45 }
0x1a36   :  { %v1585_v42 = vmul.f32 %v2649_v43, %v1584_v55 }
0x1a37   :  { %v1652_v38 = vadd.f32 %v2647_v40, %v1651_v54 }
0x1a38   :  { %v1586_v2 = vadd.f32 %v2649_v43, %v1585_v42 }
0x1a39   :  { %v1656_v62 = vsel %vm1655_vm14, %v2647_v40, %v1652_v38 }
0x1a3a   :  { %v1661_v60 = vsel %vm1658_vm1, %v1660_v44, %v1656_v62  ;;  %v1590_v0 = vsel %vm1589_vm8, %v2649_v43, %v1586_v2 }
0x1a3b   :  { %v1595_v51 = vsel %vm1592_vm9, %v1594_v58, %v1590_v0  ;;  %v1667_v15 = vmul.f32 %v1665_v53, %v1661_v60 }
0x1a3c   :  { %v1598_v3 = vmul.f32 %v1595_v51, %v3333_v4 }
0x1a94   :  { %v1670_v1 = vpop.permute.xlu0 %1669 }
0x1a95   :  { %v1672_v11 = vmul.f32 %v1670_v1, %v1661_v60 }
0x1a97   :  { %1674 = vrot.lane.b32.xlu2 %v1672_v11, %s2773_s16 }
0x1a99   :  { %v1601_v12 = vpop.permute.xlu1 %1600 }
0x1a9a   :  { %v1603_v52 = vmul.f32 %v1601_v12, %v1595_v51 }
0x1a9c   :  { %1605 = vrot.lane.b32.xlu0 %v1603_v52, %s2775_s30 }
0x1af1   :  { %v1675_v17 = vpop.permute.xlu2 %1674 }
0x1af2   :  { %v3378_v8 = vadd.f32 %v1675_v17, %v1667_v15 }
0x1af4   :  { %2650 = vtanh.f32 %v3378_v8  ;;  %v1805_v53 = vrot.slane %v3378_v8, 7 }
0x1afa   :  { %v2651_v19 = vpop.eup %2650 }
0x1afb   :  { %1680 = vrot.lane.b32.xlu1 %v2651_v19, %s2772_s15 }
0x1b0e   :  { %v1606_v23 = vpop.permute.xlu0 %1605 }
0x1b0f   :  { %v3383_v6 = vadd.f32 %v1606_v23, %v1598_v3 }
0x1b11   :  { %2652 = vtanh.f32 %v3383_v6 }
0x1b17   :  { %v2653_v16 = vpop.eup %2652 }
0x1b18   :  { %1611 = vrot.lane.b32.xlu2 %v2653_v16, %s2770_s27 }
0x1b6d   :  { %v1681_v20 = vpop.permute.xlu1 %1680 }
0x1b6e   :  { %v1683_v25 = vmul.f32 %v1681_v20, %v1661_v60 }
0x1b70   :  { %v1755_v28 = vrot.slane %v1683_v25, 3  ;;  %1685 = vrot.lane.b32.xlu1 %v1683_v25, %s2773_s16 }
0x1b72   :  { %v1612_v21 = vpop.permute.xlu2 %1611  ;;  %1756 = vrot.lane.b32.xlu0 %v1755_v28, %s2773_s16 }
0x1b73   :  { %v1614_v14 = vmul.f32 %v1612_v21, %v1595_v51 }
0x1b75   :  { %v1689_v4 = vrot.slane %v1614_v14, 5  ;;  %v2331_v29 = vrot.slane %v1614_v14, 6 }
0x1b77   :  { %v3393_v47 = vsel %vm2346_vm3, %v2357_v30, %v2331_v29  ;;  %1690 = vrot.lane.b32.xlu2 %v1689_v4, %s2776_s7 }
0x1bd1   :  { %v1691_v10 = vpop.permute.xlu2 %1690 }
0x1be2   :  { %v1686_v32 = vpop.permute.xlu1 %1685 }
0x1be3   :  { %v1693_v33 = vsel %vm94_vm5, %v1686_v32, %v1691_v10 }
0x1be4   :  { %v1695_v7 = vrot.slane %v1693_v33, 3  ;;  %v1757_v26 = vpop.permute.xlu0 %1756 }
0x1be5   :  { %2439 = vmatmul.msk.f32.vlgmr.msrb.gmra.mxu3 %vm94_vm5, %v1757_v26  ;;  %v3434_v26 = vld [vmem:[%s3523_s5] sm:$0x1]  ;;  %s2777_s5 = smov 116  }
0x1be6   :  { %2437 = vmatmul.msk.f32.vlgmr.msrb.gmra.mxu0 %vm161_vm6, %v1695_v7  ;;  %2052 = vmatpush.msrb.mxu3 %v3349_v59 }
0x1be8   :  { %2053 = vmatpush.msrb.mxu3 %v3357_v48 }
0x1bea   :  { %2054 = vmatpush.msrb.mxu3 %v3364_v31 }
0x1bec   :  { %2055 = vmatpush.msrb.mxu3 %v2740_v9 }
0x1c63   :  { %v1715_v34 = vpop.f32.mrf.mxu0 }
0x1c64   :  { %v1716_v35 = vadd.f32 %v3205_v22, %v1715_v34 }
0x1c66   :  { %2654 = vtanh.f32 %v1716_v35  ;;  %v2438_v48 = vmul.f32 -1.442695, %v1716_v35 }
0x1c68   :  { %v1777_v36 = vpop.f32.mrf.mxu3 }
0x1c69   :  { %v1781_v5 = vrot.slane %v1777_v36, 4 }
0x1c6b   :  { %v1783_v13 = vadd.f32 %v1781_v5, %v3247_v27 }
0x1c6c   :  { %v2655_v49 = vpop.eup %2654 }
0x1c6d   :  { %2656 = vtanh.f32 %v1783_v13  ;;  %1740 = vrot.lane.b32.xlu1 %v2655_v49, %s2774_s1  ;;  %v2440_v31 = vmul.f32 -1.442695, %v1783_v13 }
0x1c6e   :  { %2658 = vpow2.f32 %v2438_v48 }
0x1c6f   :  { %2660 = vpow2.f32 %v2440_v31 }
0x1c73   :  { %v2657_v59 = vpop.eup %2656 }
0x1c74   :  { %1809 = vrot.lane.b32.xlu0 %v2657_v59, %s2772_s15  ;;  %v2659_v50 = vpop.eup %2658 }
0x1c75   :  { %v1721_v37 = vadd.f32 1.0, %v2659_v50  ;;  %v2661_v39 = vpop.eup %2660 }
0x1c76   :  { %v1787_v22 = vadd.f32 1.0, %v2661_v39 }
0x1c77   :  { %2662 = vrcp.f32 %v1721_v37  ;;  %v1733_v57 = vand.u32 2147483648, %v1721_v37  ;;  %vm1727_vm3 = vweird.f32 %v1721_v37  ;;  %v1731_v42 = vand.u32 2147483647, %v1721_v37 }
0x1c78   :  { %2664 = vrcp.f32 %v1787_v22  ;;  %v1799_v63 = vand.u32 2147483648, %v1787_v22  ;;  %vm1793_vm0 = vweird.f32 %v1787_v22  ;;  %v1797_v11 = vand.u32 2147483647, %v1787_v22 }
0x1c79   :  { %v1734_v44 = vor.u32 1.1754944e-38, %v1733_v57  ;;  %vm1732_vm13 = vcmp.eq.f32.partialorder %v1731_v42, 8.507059e+37 }
0x1c7a   :  { %v1800_v58 = vor.u32 1.1754944e-38, %v1799_v63  ;;  %vm1798_vm7 = vcmp.eq.f32.partialorder %v1797_v11, 8.507059e+37 }
0x1c7d   :  { %v2663_v40 = vpop.eup %2662 }
0x1c7e   :  { %v1723_v41 = vmul.f32 %v2663_v40, %v1721_v37  ;;  %v2665_v43 = vpop.eup %2664  ;;  %vm1728_vm2 = vweird.f32 %v2663_v40 }
0x1c7f   :  { %v1789_v46 = vmul.f32 %v2665_v43, %v1787_v22  ;;  %vm1729_vm12 = vmor %vm1727_vm3, %vm1728_vm2  ;;  %vm1794_vm14 = vweird.f32 %v2665_v43 }
0x1c80   :  { %v1724_v45 = vsub.f32 1.0, %v1723_v41  ;;  %vm1795_vm1 = vmor %vm1793_vm0, %vm1794_vm14 }
0x1c81   :  { %v1790_v55 = vsub.f32 1.0, %v1789_v46 }
0x1c82   :  { %v1725_v54 = vmul.f32 %v2663_v40, %v1724_v45 }
0x1c83   :  { %v1791_v61 = vmul.f32 %v2665_v43, %v1790_v55 }
0x1c84   :  { %v1726_v38 = vadd.f32 %v2663_v40, %v1725_v54 }
0x1c85   :  { %v1792_v1 = vadd.f32 %v2665_v43, %v1791_v61 }
0x1c86   :  { %v1730_v62 = vsel %vm1729_vm12, %v2663_v40, %v1726_v38 }
0x1c87   :  { %v1735_v56 = vsel %vm1732_vm13, %v1734_v44, %v1730_v62  ;;  %v1796_v0 = vsel %vm1795_vm1, %v2665_v43, %v1792_v1 }
0x1c88   :  { %v1801_v51 = vsel %vm1798_vm7, %v1800_v58, %v1796_v0  ;;  %v1738_v23 = vmul.f32 %v1735_v56, %v3383_v6 }
0x1c89   :  { %v1807_v15 = vmul.f32 %v1805_v53, %v1801_v51 }
0x1cdf   :  { %v1741_v2 = vpop.permute.xlu1 %1740 }
0x1ce0   :  { %v1743_v60 = vmul.f32 %v1741_v2, %v1735_v56 }
0x1ce2   :  { %1745 = vrot.lane.b32.xlu0 %v1743_v60, %s2775_s30 }
0x1ce6   :  { %v1810_v12 = vpop.permute.xlu0 %1809 }
0x1ce7   :  { %v1812_v52 = vmul.f32 %v1810_v12, %v1801_v51 }
0x1ce9   :  { %1814 = vrot.lane.b32.xlu2 %v1812_v52, %s2773_s16 }
0x1d43   :  { %v1815_v17 = vpop.permute.xlu2 %1814 }
0x1d44   :  { %v3412_v19 = vadd.f32 %v1815_v17, %v1807_v15 }
0x1d46   :  { %2666 = vtanh.f32 %v3412_v19  ;;  %v1945_v17 = vrot.slane %v3412_v19, 7 }
0x1d4c   :  { %v2667_v3 = vpop.eup %2666 }
0x1d4d   :  { %1820 = vrot.lane.b32.xlu1 %v2667_v3, %s2772_s15 }
0x1d54   :  { %v1746_v16 = vpop.permute.xlu0 %1745 }
0x1d55   :  { %v3417_v20 = vadd.f32 %v1746_v16, %v1738_v23 }
0x1d57   :  { %2668 = vtanh.f32 %v3417_v20 }
0x1d5d   :  { %v2669_v25 = vpop.eup %2668 }
0x1d5e   :  { %1751 = vrot.lane.b32.xlu2 %v2669_v25, %s2770_s27 }
0x1db8   :  { %v1752_v8 = vpop.permute.xlu2 %1751 }
0x1db9   :  { %v1754_v28 = vmul.f32 %v1752_v8, %v1735_v56 }
0x1dbb   :  { %v1829_v18 = vrot.slane %v1754_v28, 4  ;;  %v2333_v21 = vrot.slane %v1754_v28, 5 }
0x1dbd   :  { %v3423_v14 = vsel %vm2348_vm15, %v3393_v47, %v2333_v21  ;;  %1830 = vrot.lane.b32.xlu2 %v1829_v18, %s2776_s7 }
0x1dbf   :  { %v1821_v4 = vpop.permute.xlu1 %1820 }
0x1dc0   :  { %v1823_v6 = vmul.f32 %v1821_v4, %v1801_v51 }
0x1dc2   :  { %v1895_v29 = vrot.slane %v1823_v6, 4  ;;  %1825 = vrot.lane.b32.xlu1 %v1823_v6, %s2773_s16 }
0x1dc4   :  { %1896 = vrot.lane.b32.xlu0 %v1895_v29, %s2773_s16 }
0x1e17   :  { %v1831_v30 = vpop.permute.xlu2 %1830 }
0x1e34   :  { %v1826_v10 = vpop.permute.xlu1 %1825 }
0x1e35   :  { %v1833_v32 = vsel %vm94_vm5, %v1826_v10, %v1831_v30 }
0x1e36   :  { %v1835_v33 = vrot.slane %v1833_v32, 4  ;;  %v1897_v7 = vpop.permute.xlu0 %1896 }
0x1e37   :  { %2444 = vmatmul.msk.f32.vlgmr.msrb.gmra.mxu2 %vm94_vm5, %v1897_v7 }
0x1e38   :  { %2442 = vmatmul.msk.f32.vlgmr.msrb.gmra.mxu1 %vm161_vm6, %v1835_v33 }
0x1eb5   :  { %v1855_v47 = vpop.f32.mrf.mxu1 }
0x1eb6   :  { %v1856_v9 = vadd.f32 %v3434_v26, %v1855_v47 }
0x1eb8   :  { %2670 = vtanh.f32 %v1856_v9  ;;  %v2443_v49 = vmul.f32 -1.442695, %v1856_v9 }
0x1eba   :  { %v1917_v34 = vpop.f32.mrf.mxu2 }
0x1ebb   :  { %v1921_v35 = vrot.slane %v1917_v34, 3 }
0x1ebd   :  { %v1923_v36 = vadd.f32 %v1921_v35, %v3247_v27 }
0x1ebe   :  { %v2671_v5 = vpop.eup %2670 }
0x1ebf   :  { %2672 = vtanh.f32 %v1923_v36  ;;  %1880 = vrot.lane.b32.xlu0 %v2671_v5, %s2774_s1  ;;  %v2445_v59 = vmul.f32 -1.442695, %v1923_v36 }
0x1ec0   :  { %2674 = vpow2.f32 %v2443_v49 }
0x1ec1   :  { %2676 = vpow2.f32 %v2445_v59 }
0x1ec5   :  { %v2673_v13 = vpop.eup %2672 }
0x1ec6   :  { %1949 = vrot.lane.b32.xlu1 %v2673_v13, %s2772_s15  ;;  %v2675_v48 = vpop.eup %2674 }
0x1ec7   :  { %v1861_v31 = vadd.f32 1.0, %v2675_v48  ;;  %v2677_v50 = vpop.eup %2676 }
0x1ec8   :  { %v1927_v37 = vadd.f32 1.0, %v2677_v50 }
0x1ec9   :  { %2678 = vrcp.f32 %v1861_v31  ;;  %v1873_v55 = vand.u32 2147483648, %v1861_v31  ;;  %vm1867_vm8 = vweird.f32 %v1861_v31  ;;  %v1871_v38 = vand.u32 2147483647, %v1861_v31 }
0x1eca   :  { %2680 = vrcp.f32 %v1927_v37  ;;  %v1939_v1 = vand.u32 2147483648, %v1927_v37  ;;  %vm1933_vm12 = vweird.f32 %v1927_v37  ;;  %v1937_v60 = vand.u32 2147483647, %v1927_v37 }
0x1ecb   :  { %v1874_v61 = vor.u32 1.1754944e-38, %v1873_v55  ;;  %vm1872_vm2 = vcmp.eq.f32.partialorder %v1871_v38, 8.507059e+37 }
0x1ecc   :  { %v1940_v11 = vor.u32 1.1754944e-38, %v1939_v1  ;;  %vm1938_vm14 = vcmp.eq.f32.partialorder %v1937_v60, 8.507059e+37 }
0x1ecf   :  { %v2679_v39 = vpop.eup %2678 }
0x1ed0   :  { %v1863_v22 = vmul.f32 %v2679_v39, %v1861_v31  ;;  %v2681_v40 = vpop.eup %2680  ;;  %vm1868_vm15 = vweird.f32 %v2679_v39 }
0x1ed1   :  { %v1929_v43 = vmul.f32 %v2681_v40, %v1927_v37  ;;  %vm1869_vm9 = vmor %vm1867_vm8, %vm1868_vm15  ;;  %vm1934_vm3 = vweird.f32 %v2681_v40 }
0x1ed2   :  { %v1864_v41 = vsub.f32 1.0, %v1863_v22  ;;  %vm1935_vm13 = vmor %vm1933_vm12, %vm1934_vm3 }
0x1ed3   :  { %v1930_v46 = vsub.f32 1.0, %v1929_v43 }
0x1ed4   :  { %v1865_v45 = vmul.f32 %v2679_v39, %v1864_v41 }
0x1ed5   :  { %v1931_v57 = vmul.f32 %v2681_v40, %v1930_v46 }
0x1ed6   :  { %v1866_v54 = vadd.f32 %v2679_v39, %v1865_v45 }
0x1ed7   :  { %v1932_v2 = vadd.f32 %v2681_v40, %v1931_v57 }
0x1ed8   :  { %v1870_v42 = vsel %vm1869_vm9, %v2679_v39, %v1866_v54 }
0x1ed9   :  { %v1875_v62 = vsel %vm1872_vm2, %v1874_v61, %v1870_v42  ;;  %v1936_v63 = vsel %vm1935_vm13, %v2681_v40, %v1932_v2 }
0x1eda   :  { %v1941_v58 = vsel %vm1938_vm14, %v1940_v11, %v1936_v63  ;;  %v1878_v51 = vmul.f32 %v1875_v62, %v3417_v20 }
0x1edb   :  { %v1947_v3 = vmul.f32 %v1945_v17, %v1941_v58 }
0x1f31   :  { %v1881_v44 = vpop.permute.xlu0 %1880 }
0x1f32   :  { %v1883_v56 = vmul.f32 %v1881_v44, %v1875_v62 }
0x1f34   :  { %1885 = vrot.lane.b32.xlu2 %v1883_v56, %s2775_s30 }
0x1f38   :  { %v1950_v0 = vpop.permute.xlu1 %1949 }
0x1f39   :  { %v1952_v12 = vmul.f32 %v1950_v0, %v1941_v58 }
0x1f3b   :  { %1954 = vrot.lane.b32.xlu0 %v1952_v12, %s2773_s16 }
0x1f8e   :  { %v1886_v52 = vpop.permute.xlu2 %1885 }
0x1f8f   :  { %v3443_v53 = vadd.f32 %v1886_v52, %v1878_v51 }
0x1f91   :  { %2682 = vtanh.f32 %v3443_v53 }
0x1f97   :  { %v2683_v15 = vpop.eup %2682 }
0x1f98   :  { %1891 = vrot.lane.b32.xlu1 %v2683_v15, %s2770_s27 }
0x1fad   :  { %v1955_v23 = vpop.permute.xlu0 %1954 }
0x1fae   :  { %v3448_v16 = vadd.f32 %v1955_v23, %v1947_v3 }
0x1fb0   :  { %2684 = vtanh.f32 %v3448_v16  ;;  %v2085_v15 = vrot.slane %v3448_v16, 7 }
0x1fb6   :  { %v2685_v25 = vpop.eup %2684 }
0x1fb7   :  { %1960 = vrot.lane.b32.xlu2 %v2685_v25, %s2772_s15 }
0x200a   :  { %v1892_v20 = vpop.permute.xlu1 %1891 }
0x200b   :  { %v1894_v8 = vmul.f32 %v1892_v20, %v1875_v62 }
0x200d   :  { %v1969_v28 = vrot.slane %v1894_v8, 3  ;;  %v2335_v18 = vrot.slane %v1894_v8, 4 }
0x200f   :  { %v3454_v21 = vsel %vm165_vm4, %v3423_v14, %v2335_v18  ;;  %1970 = vrot.lane.b32.xlu1 %v1969_v28, %s2776_s7 }
0x2011   :  { %v1961_v19 = vpop.permute.xlu2 %1960 }
0x2012   :  { %v1963_v4 = vmul.f32 %v1961_v19, %v1941_v58 }
0x2014   :  { %v2035_v6 = vrot.slane %v1963_v4, 5  ;;  %1965 = vrot.lane.b32.xlu0 %v1963_v4, %s2773_s16 }
0x2016   :  { %2036 = vrot.lane.b32.xlu2 %v2035_v6, %s2773_s16 }
0x2070   :  { %v2037_v33 = vpop.permute.xlu2 %2036 }
0x2081   :  { %v1971_v29 = vpop.permute.xlu1 %1970 }
0x2086   :  { %v1966_v30 = vpop.permute.xlu0 %1965 }
0x2087   :  { %v1973_v10 = vsel %vm94_vm5, %v1966_v30, %v1971_v29 }
0x2088   :  { %v1975_v32 = vrot.slane %v1973_v10, 5 }
0x208a   :  { %2447 = vmatmul.msk.f32.vlgmr.msra.gmra.mxu3 %vm161_vm6, %v1975_v32 }
0x2092   :  { %2449 = vmatmul.msk.f32.vlgmr.msrb.gmra.mxu3 %vm94_vm5, %v2037_v33 }
0x210d   :  { %v1995_v14 = vpop.f32.mrf.mxu3 }
0x210e   :  { %v1996_v7 = vadd.f32 %v3434_v26, %v1995_v14 }
0x2110   :  { %2686 = vtanh.f32 %v1996_v7  ;;  %v2448_v5 = vmul.f32 -1.442695, %v1996_v7 }
0x2115   :  { %v2057_v47 = vpop.f32.mrf.mxu3 }
0x2116   :  { %v2687_v9 = vpop.eup %2686  ;;  %v2061_v34 = vrot.slane %v2057_v47, 2 }
0x2117   :  { %2020 = vrot.lane.b32.xlu0 %v2687_v9, %s2774_s1 }
0x2118   :  { %v2063_v35 = vadd.f32 %v2061_v34, %v3247_v27 }
0x211a   :  { %2688 = vtanh.f32 %v2063_v35  ;;  %v2450_v49 = vmul.f32 -1.442695, %v2063_v35 }
0x211b   :  { %2690 = vpow2.f32 %v2448_v5 }
0x211c   :  { %2692 = vpow2.f32 %v2450_v49 }
0x2120   :  { %v2689_v36 = vpop.eup %2688 }
0x2121   :  { %2089 = vrot.lane.b32.xlu1 %v2689_v36, %s2772_s15  ;;  %v2691_v13 = vpop.eup %2690 }
0x2122   :  { %v2001_v59 = vadd.f32 1.0, %v2691_v13  ;;  %v2693_v48 = vpop.eup %2692 }
0x2123   :  { %v2067_v50 = vadd.f32 1.0, %v2693_v48 }
0x2124   :  { %2694 = vrcp.f32 %v2001_v59  ;;  %v2013_v45 = vand.u32 2147483648, %v2001_v59  ;;  %vm2007_vm0 = vweird.f32 %v2001_v59  ;;  %v2011_v46 = vand.u32 2147483647, %v2001_v59 }
0x2125   :  { %2696 = vrcp.f32 %v2067_v50  ;;  %v2079_v2 = vand.u32 2147483648, %v2067_v50  ;;  %vm2073_vm8 = vweird.f32 %v2067_v50  ;;  %v2077_v56 = vand.u32 2147483647, %v2067_v50 }
0x2126   :  { %v2014_v38 = vor.u32 1.1754944e-38, %v2013_v45  ;;  %vm2012_vm7 = vcmp.eq.f32.partialorder %v2011_v46, 8.507059e+37 }
0x2127   :  { %v2080_v60 = vor.u32 1.1754944e-38, %v2079_v2  ;;  %vm2078_vm2 = vcmp.eq.f32.partialorder %v2077_v56, 8.507059e+37 }
0x212a   :  { %v2695_v31 = vpop.eup %2694 }
0x212b   :  { %v2003_v37 = vmul.f32 %v2695_v31, %v2001_v59  ;;  %v2697_v22 = vpop.eup %2696  ;;  %vm2008_vm4 = vweird.f32 %v2695_v31 }
0x212c   :  { %v2069_v41 = vmul.f32 %v2697_v22, %v2067_v50  ;;  %vm2009_vm1 = vmor %vm2007_vm0, %vm2008_vm4  ;;  %vm2074_vm15 = vweird.f32 %v2697_v22 }
0x212d   :  { %v2004_v39 = vsub.f32 1.0, %v2003_v37  ;;  %vm2075_vm9 = vmor %vm2073_vm8, %vm2074_vm15  ;;  %vm2372_vm15 = vcmask 31744   ;;  %vm3526_vm8 = vcmask 1046528  }
0x212e   :  { %v2070_v54 = vsub.f32 1.0, %v2069_v41 }
0x212f   :  { %v2005_v40 = vmul.f32 %v2695_v31, %v2004_v39 }
0x2130   :  { %v2071_v57 = vmul.f32 %v2697_v22, %v2070_v54 }
0x2131   :  { %v2006_v43 = vadd.f32 %v2695_v31, %v2005_v40 }
0x2132   :  { %v2072_v44 = vadd.f32 %v2697_v22, %v2071_v57 }
0x2133   :  { %v2010_v55 = vsel %vm2009_vm1, %v2695_v31, %v2006_v43 }
0x2134   :  { %v2015_v61 = vsel %vm2012_vm7, %v2014_v38, %v2010_v55  ;;  %v2076_v1 = vsel %vm2075_vm9, %v2697_v22, %v2072_v44 }
0x2135   :  { %v2081_v11 = vsel %vm2078_vm2, %v2080_v60, %v2076_v1  ;;  %v2018_v58 = vmul.f32 %v2015_v61, %v3443_v53 }
0x2136   :  { %v2087_v17 = vmul.f32 %v2085_v15, %v2081_v11 }
0x2189   :  { %v2021_v42 = vpop.permute.xlu0 %2020 }
0x218a   :  { %v2023_v62 = vmul.f32 %v2021_v42, %v2015_v61 }
0x218c   :  { %2025 = vrot.lane.b32.xlu2 %v2023_v62, %s2775_s30 }
0x2193   :  { %v2090_v63 = vpop.permute.xlu1 %2089 }
0x2194   :  { %v2092_v0 = vmul.f32 %v2090_v63, %v2081_v11 }
0x2196   :  { %2094 = vrot.lane.b32.xlu0 %v2092_v0, %s2773_s16 }
0x21e6   :  { %v2026_v12 = vpop.permute.xlu2 %2025 }
0x21e7   :  { %v3469_v51 = vadd.f32 %v2026_v12, %v2018_v58 }
0x21e9   :  { %2698 = vtanh.f32 %v3469_v51 }
0x21ef   :  { %v2699_v52 = vpop.eup %2698 }
0x21f0   :  { %2031 = vrot.lane.b32.xlu1 %v2699_v52, %s2770_s27 }
0x2208   :  { %v2095_v3 = vpop.permute.xlu0 %2094 }
0x2209   :  { %v3474_v23 = vadd.f32 %v2095_v3, %v2087_v17 }
0x220b   :  { %2700 = vtanh.f32 %v3474_v23  ;;  %v2225_v63 = vrot.slane %v3474_v23, 7 }
0x2211   :  { %v2701_v25 = vpop.eup %2700 }
0x2212   :  { %2100 = vrot.lane.b32.xlu2 %v2701_v25, %s2772_s15 }
0x2262   :  { %v2032_v53 = vpop.permute.xlu1 %2031 }
0x2263   :  { %v2034_v20 = vmul.f32 %v2032_v53, %v2015_v61 }
0x2265   :  { %v2109_v8 = vrot.slane %v2034_v20, 2  ;;  %v2337_v28 = vrot.slane %v2034_v20, 3 }
0x2267   :  { %2110 = vrot.lane.b32.xlu1 %v2109_v8, %s2776_s7  ;;  %v3481_v18 = vsel %vm2351_vm11, %v3454_v21, %v2337_v28 }
0x226c   :  { %v2101_v16 = vpop.permute.xlu2 %2100 }
0x226d   :  { %v2103_v19 = vmul.f32 %v2101_v16, %v2081_v11 }
0x226f   :  { %v2175_v4 = vrot.slane %v2103_v19, 6  ;;  %2105 = vrot.lane.b32.xlu0 %v2103_v19, %s2773_s16 }
0x2271   :  { %2176 = vrot.lane.b32.xlu2 %v2175_v4, %s2773_s16 }
0x22cb   :  { %v2177_v6 = vpop.permute.xlu2 %2176 }
0x22cc   :  { %2454 = vmatmul.msk.f32.vlgmr.msra.gmra.mxu1 %vm94_vm5, %v2177_v6 }
0x22d9   :  { %v2111_v29 = vpop.permute.xlu1 %2110 }
0x22e1   :  { %v2106_v30 = vpop.permute.xlu0 %2105 }
0x22e2   :  { %v2113_v10 = vsel %vm94_vm5, %v2106_v30, %v2111_v29 }
0x22e3   :  { %v2115_v32 = vrot.slane %v2113_v10, 6 }
0x22e5   :  { %2452 = vmatmul.msk.f32.vlgmr.msra.gmra.mxu2 %vm161_vm6, %v2115_v32 }
0x2349   :  { %v2197_v33 = vpop.f32.mrf.mxu1 }
0x234a   :  { %v2201_v21 = vrot.slane %v2197_v33, 1 }
0x234c   :  { %v2203_v14 = vadd.f32 %v2201_v21, %v3247_v27 }
0x234e   :  { %2702 = vtanh.f32 %v2203_v14  ;;  %v2455_v35 = vmul.f32 -1.442695, %v2203_v14 }
0x2354   :  { %v2703_v7 = vpop.eup %2702 }
0x2355   :  { %2229 = vrot.lane.b32.xlu1 %v2703_v7, %s2772_s15 }
0x2368   :  { %v2135_v47 = vpop.f32.mrf.mxu2 }
0x2369   :  { %v2136_v9 = vadd.f32 %v3434_v26, %v2135_v47 }
0x236b   :  { %2704 = vtanh.f32 %v2136_v9  ;;  %v2453_v59 = vmul.f32 -1.442695, %v2136_v9 }
0x236c   :  { %2706 = vpow2.f32 %v2455_v35 }
0x2371   :  { %v2705_v34 = vpop.eup %2704 }
0x2372   :  { %2160 = vrot.lane.b32.xlu0 %v2705_v34, %s2774_s1  ;;  %v2707_v36 = vpop.eup %2706 }
0x2373   :  { %v2207_v5 = vadd.f32 1.0, %v2707_v36 }
0x2375   :  { %2708 = vrcp.f32 %v2207_v5  ;;  %v2219_v37 = vand.u32 2147483648, %v2207_v5  ;;  %vm2213_vm3 = vweird.f32 %v2207_v5  ;;  %v2217_v39 = vand.u32 2147483647, %v2207_v5 }
0x2376   :  { %2710 = vpow2.f32 %v2453_v59 }
0x2377   :  { %v2220_v41 = vor.u32 1.1754944e-38, %v2219_v37  ;;  %vm2218_vm13 = vcmp.eq.f32.partialorder %v2217_v39, 8.507059e+37 }
0x237b   :  { %v2709_v13 = vpop.eup %2708 }
0x237c   :  { %v2209_v49 = vmul.f32 %v2709_v13, %v2207_v5  ;;  %vm2214_vm11 = vweird.f32 %v2709_v13  ;;  %v2711_v50 = vpop.eup %2710 }
0x237d   :  { %vm2215_vm12 = vmor %vm2213_vm3, %vm2214_vm11  ;;  %v2141_v22 = vadd.f32 1.0, %v2711_v50 }
0x237e   :  { %v2210_v27 = vsub.f32 1.0, %v2209_v49 }
0x237f   :  { %2712 = vrcp.f32 %v2141_v22  ;;  %v2153_v61 = vand.u32 2147483648, %v2141_v22  ;;  %vm2147_vm4 = vweird.f32 %v2141_v22  ;;  %v2151_v62 = vand.u32 2147483647, %v2141_v22 }
0x2380   :  { %v2211_v48 = vmul.f32 %v2709_v13, %v2210_v27 }
0x2381   :  { %v2154_v2 = vor.u32 1.1754944e-38, %v2153_v61  ;;  %vm2152_vm1 = vcmp.eq.f32.partialorder %v2151_v62, 8.507059e+37 }
0x2382   :  { %v2212_v31 = vadd.f32 %v2709_v13, %v2211_v48 }
0x2384   :  { %v2216_v40 = vsel %vm2215_vm12, %v2709_v13, %v2212_v31 }
0x2385   :  { %v2221_v45 = vsel %vm2218_vm13, %v2220_v41, %v2216_v40  ;;  %v2713_v54 = vpop.eup %2712 }
0x2386   :  { %v2143_v55 = vmul.f32 %v2713_v54, %v2141_v22  ;;  %vm2148_vm14 = vweird.f32 %v2713_v54  ;;  %v2227_v11 = vmul.f32 %v2225_v63, %v2221_v45 }
0x2387   :  { %vm2149_vm0 = vmor %vm2147_vm4, %vm2148_vm14 }
0x2388   :  { %v2144_v38 = vsub.f32 1.0, %v2143_v55 }
0x238a   :  { %v2145_v57 = vmul.f32 %v2713_v54, %v2144_v38 }
0x238c   :  { %v2146_v42 = vadd.f32 %v2713_v54, %v2145_v57 }
0x238e   :  { %v2150_v44 = vsel %vm2149_vm0, %v2713_v54, %v2146_v42 }
0x238f   :  { %v2155_v1 = vsel %vm2152_vm1, %v2154_v2, %v2150_v44 }
0x2390   :  { %v2158_v12 = vmul.f32 %v2155_v1, %v3469_v51 }
0x23c7   :  { %v2230_v43 = vpop.permute.xlu1 %2229 }
0x23c8   :  { %v2232_v46 = vmul.f32 %v2230_v43, %v2221_v45 }
0x23ca   :  { %2234 = vrot.lane.b32.xlu0 %v2232_v46, %s2773_s16 }
0x23e4   :  { %v2161_v56 = vpop.permute.xlu0 %2160 }
0x23e5   :  { %v2163_v60 = vmul.f32 %v2161_v56, %v2155_v1 }
0x23e7   :  { %2165 = vrot.lane.b32.xlu2 %v2163_v60, %s2775_s30 }
0x243c   :  { %v2235_v0 = vpop.permute.xlu0 %2234 }
0x243d   :  { %v2237_v58 = vadd.f32 %v2235_v0, %v2227_v11 }
0x243f   :  { %2714 = vtanh.f32 %v2237_v58 }
0x2441   :  { %v2166_v52 = vpop.permute.xlu2 %2165 }
0x2442   :  { %v2168_v15 = vadd.f32 %v2166_v52, %v2158_v12 }
0x2444   :  { %2716 = vtanh.f32 %v2168_v15 }
0x2445   :  { %v2715_v17 = vpop.eup %2714 }
0x2446   :  { %2240 = vrot.lane.b32.xlu2 %v2715_v17, %s2772_s15 }
0x244a   :  { %v2717_v3 = vpop.eup %2716 }
0x244b   :  { %2171 = vrot.lane.b32.xlu1 %v2717_v3, %s2770_s27 }
0x24a0   :  { %v2241_v25 = vpop.permute.xlu2 %2240 }
0x24a1   :  { %v2243_v53 = vmul.f32 %v2241_v25, %v2221_v45 }
0x24a3   :  { %2245 = vrot.lane.b32.xlu0 %v2243_v53, %s2773_s16 }
0x24bd   :  { %v2172_v23 = vpop.permute.xlu1 %2171 }
0x24be   :  { %v2174_v20 = vmul.f32 %v2172_v23, %v2155_v1 }
0x24c0   :  { %v2249_v8 = vrot.slane %v2174_v20, 1  ;;  %v2339_v28 = vrot.slane %v2174_v20, 2 }
0x24c2   :  { %2250 = vrot.lane.b32.xlu1 %v2249_v8, %s2776_s7  ;;  %v2362_v51 = vsel %vm2353_vm10, %v3481_v18, %v2339_v28 }
0x2515   :  { %v2246_v16 = vpop.permute.xlu0 %2245 }
0x2534   :  { %v2251_v19 = vpop.permute.xlu1 %2250 }
0x2535   :  { %v2253_v4 = vsel %vm94_vm5, %v2246_v16, %v2251_v19 }
0x2536   :  { %v2255_v6 = vrot.slane %v2253_v4, 7 }
0x2538   :  { %2457 = vmatmul.msk.f32.vlgmr.msra.gmra.mxu0 %vm161_vm6, %v2255_v6 }
0x25b5   :  { %v2275_v29 = vpop.f32.mrf.mxu0 }
0x25b6   :  { %v2276_v30 = vadd.f32 %v3434_v26, %v2275_v29 }
0x25b8   :  { %2718 = vtanh.f32 %v2276_v30  ;;  %v2458_v32 = vmul.f32 -1.442695, %v2276_v30 }
0x25ba   :  { %2720 = vpow2.f32 %v2458_v32 }
0x25be   :  { %v2719_v10 = vpop.eup %2718 }
0x25bf   :  { %2300 = vrot.lane.b32.xlu2 %v2719_v10, %s2774_s1 }
0x25c0   :  { %v2721_v18 = vpop.eup %2720 }
0x25c1   :  { %v2281_v33 = vadd.f32 1.0, %v2721_v18 }
0x25c3   :  { %2722 = vrcp.f32 %v2281_v33  ;;  %v2293_v26 = vand.u32 2147483648, %v2281_v33  ;;  %vm2287_vm6 = vweird.f32 %v2281_v33  ;;  %v2291_v34 = vand.u32 2147483647, %v2281_v33 }
0x25c5   :  { %v2294_v36 = vor.u32 1.1754944e-38, %v2293_v26  ;;  %vm2292_vm7 = vcmp.eq.f32.partialorder %v2291_v34, 8.507059e+37 }
0x25c7   :  { %2366 = vrot.lane.b32.xlu2 %v3269_v24, %s2777_s5 }
0x25c9   :  { %v2723_v21 = vpop.eup %2722 }
0x25ca   :  { %v2283_v14 = vmul.f32 %v2723_v21, %v2281_v33  ;;  %vm2288_vm5 = vweird.f32 %v2723_v21 }
0x25cb   :  { %vm2289_vm10 = vmor %vm2287_vm6, %vm2288_vm5 }
0x25cc   :  { %v2284_v7 = vsub.f32 1.0, %v2283_v14 }
0x25ce   :  { %v2285_v47 = vmul.f32 %v2723_v21, %v2284_v7 }
0x25d0   :  { %v2286_v9 = vadd.f32 %v2723_v21, %v2285_v47 }
0x25d2   :  { %v2290_v35 = vsel %vm2289_vm10, %v2723_v21, %v2286_v9 }
0x25d3   :  { %v2295_v24 = vsel %vm2292_vm7, %v2294_v36, %v2290_v35 }
0x25d4   :  { %v2298_v59 = vmul.f32 %v2295_v24, %v2168_v15 }
0x2619   :  { %v2301_v5 = vpop.permute.xlu2 %2300 }
0x261a   :  { %v2303_v13 = vmul.f32 %v2301_v5, %v2295_v24 }
0x261c   :  { %2305 = vrot.lane.b32.xlu0 %v2303_v13, %s2775_s30 }
0x2621   :  { %v2367_v49 = vpop.permute.xlu2 %2366 }
0x2622   :  { %2373 = vst.msk [vmem:[%s3524_s6] sm:$0xff] %vm2372_vm15, %v2367_v49 }
0x268e   :  { %v2306_v27 = vpop.permute.xlu0 %2305 }
0x268f   :  { %v2308_v48 = vadd.f32 %v2306_v27, %v2298_v59 }
0x2691   :  { %2724 = vtanh.f32 %v2308_v48 }
0x2697   :  { %v2725_v31 = vpop.eup %2724 }
0x2698   :  { %2311 = vrot.lane.b32.xlu1 %v2725_v31, %s2770_s27 }
0x270a   :  { %v2312_v50 = vpop.permute.xlu1 %2311 }
0x270b   :  { %v2314_v37 = vmul.f32 %v2312_v50, %v2295_v24 }
0x270d   :  { %v2342_v39 = vrot.slane %v2314_v37, 1 }
0x270f   :  { %v2363_v22 = vsel %vm3526_vm8, %v2362_v51, %v2342_v39 }
0x2710   :  { %2368 = vrot.lane.b32.xlu0 %v2363_v22, %s2777_s5 }
0x2782   :  { %v2369_v40 = vpop.permute.xlu0 %2368 }
0x2783   :  { %2374 = vst.msk [vmem:[%s3524_s6 + $0x8] sm:$0xff] %vm2372_vm15, %v2369_v40 }
0x2784   :  { %2379 = vsyncpa [#allocation3], 1 }

</bundles_post_ra>
